<compile_context>
chip_gen: v7x
topology: tpu7x:2x2x1
jax: 0.10.0
libtpu: 0.0.40
codegen_flags: <defaults>
</compile_context>

<pallas_src>
import functools

import jax
import jax.numpy as jnp
from jax.experimental import pallas as pl
from jax.experimental.pallas import tpu as pltpu


def _round_up(x, m):
    return (x + m - 1) // m * m


def _vmem_limit_bytes(H, W, C, kh, kw, dtype):
    """Padded-layout VMEM estimate (lanes pad to 128, sublanes to 8) + headroom.

    Floor at 32 MiB (>= every generation's default scoped limit, and v5e's
    default is only 16 MiB), cap at v7x's 64 MiB physical VMEM.
    """
    isz = jnp.dtype(dtype).itemsize
    ph, pw = kh // 2, kw // 2
    Hp, Wp = H + 2 * ph, W + 2 * pw
    K = kh * kw * C
    lane = lambda c: _round_up(c, 128)
    sub = lambda s: _round_up(s, 8)

    img = H * sub(W) * lane(C) * isz            # one (1, H, W, C) activation block
    pad_scr = Hp * sub(Wp) * lane(C) * isz      # padded scratch
    wts = sub(K) * lane(C) * isz                # one reshaped weight block
    patches = sub(H * W) * lane(K) * isz        # im2col value (may spill to VMEM)
    acc = sub(H * W) * lane(C) * 4              # f32 accumulator value

    est = (2 * img + 2 * img                    # double-buffered input + output
           + 2 * 2 * wts                        # two (double-buffered) weights
           + pad_scr + patches + 2 * acc
           + (2 << 20))                         # slack: biases, compiler temporaries
    return int(min(max(2 * est, 32 << 20), 64 << 20))


def _conv_patches(pad_ref, *, H, W, kh, kw):
    """im2col: gather one (H*W, kh*kw*C) patch matrix from the padded (Hp,Wp,C) scratch."""
    C = pad_ref.shape[-1]
    taps = [pad_ref[dy:dy + H, dx:dx + W, :]        # (H, W, C) window loads
            for dy in range(kh) for dx in range(kw)]
    patches = jnp.concatenate(taps, axis=-1)        # (H, W, kh*kw*C)
    return patches.reshape(H * W, kh * kw * C)


def resblock_kernel(x_ref, w1_ref, b1_ref, w2_ref, b2_ref, o_ref, pad_ref,
                    *, kh, kw, H, W, res_scale):
    C = x_ref.shape[-1]
    ph, pw = kh // 2, kw // 2
    Hp, Wp = H + 2 * ph, W + 2 * pw
    cdt = pad_ref.dtype

    # Keep the halo of the persistent padded scratch zeroed.  Only the thin
    # border is written (interior is fully overwritten every step), and it is
    # done every step so the kernel stays correct when the "parallel" batch
    # axis is sharded across TensorCores (per-core scratch).
    if ph > 0:
        pad_ref[0:ph, :, :] = jnp.zeros((ph, Wp, C), cdt)
        pad_ref[ph + H:Hp, :, :] = jnp.zeros((ph, Wp, C), cdt)
    if pw > 0:
        pad_ref[:, 0:pw, :] = jnp.zeros((Hp, pw, C), cdt)
        pad_ref[:, pw + W:Wp, :] = jnp.zeros((Hp, pw, C), cdt)

    # In-kernel "same" padding: copy this image into the scratch interior.
    pad_ref[ph:ph + H, pw:pw + W, :] = x_ref[0]

    # ---- conv1: single fused matmul (K = kh*kw*C), f32 accumulation, bias, ReLU.
    p1 = _conv_patches(pad_ref, H=H, W=W, kh=kh, kw=kw)
    a1 = jnp.dot(p1, w1_ref[...], preferred_element_type=jnp.float32)
    a1 = jnp.maximum(a1 + b1_ref[...].astype(jnp.float32), 0.0)

    # Reuse the same padded scratch for the intermediate activation (halo is
    # still zero; interior overwritten).  Stored in the compute dtype so conv2
    # runs at full MXU rate for bf16 inputs.
    pad_ref[ph:ph + H, pw:pw + W, :] = a1.reshape(H, W, C).astype(cdt)

    # ---- conv2: single fused matmul + bias.
    p2 = _conv_patches(pad_ref, H=H, W=W, kh=kh, kw=kw)
    a2 = jnp.dot(p2, w2_ref[...], preferred_element_type=jnp.float32)
    a2 = a2 + b2_ref[...].astype(jnp.float32)

    # ---- residual: res * res_scale + x.
    out = a2.reshape(H, W, C) * res_scale + x_ref[0].astype(jnp.float32)
    o_ref[0] = out.astype(o_ref.dtype)


def resblock_pallas(x_nchw, w1, b1, w2, b2, res_scale=1.0):
    """x_nchw: (N, C, H, W). Conv weights in HWIO: (kh, kw, C, C). Bias: (C,)."""
    N, C, H, W = x_nchw.shape
    kh, kw = int(w1.shape[0]), int(w1.shape[1])
    ph, pw = kh // 2, kw // 2
    Hp, Wp = H + 2 * ph, W + 2 * pw
    K = kh * kw * C

    x = jnp.transpose(x_nchw, (0, 2, 3, 1))        # NHWC: channels in lanes
    # Fused im2col weights: (kh, kw, Cin, Cout) -> (kh*kw*Cin, Cout); bias -> (1, C).
    w1r = w1.reshape(K, C)
    w2r = w2.reshape(K, C)
    b1r = b1.reshape(1, C)
    b2r = b2.reshape(1, C)

    kern = functools.partial(resblock_kernel, kh=kh, kw=kw, H=H, W=W,
                             res_scale=float(res_scale))

    out_nhwc = pl.pallas_call(
        kern,
        out_shape=jax.ShapeDtypeStruct((N, H, W, C), x.dtype),
        grid=(N,),
        in_specs=[
            pl.BlockSpec((1, H, W, C), lambda n: (n, 0, 0, 0)),
            pl.BlockSpec((K, C), lambda n: (0, 0)),
            pl.BlockSpec((1, C), lambda n: (0, 0)),
            pl.BlockSpec((K, C), lambda n: (0, 0)),
            pl.BlockSpec((1, C), lambda n: (0, 0)),
        ],
        out_specs=pl.BlockSpec((1, H, W, C), lambda n: (n, 0, 0, 0)),
        scratch_shapes=[pltpu.VMEM((Hp, Wp, C), x.dtype)],
        compiler_params=pltpu.CompilerParams(
            dimension_semantics=("parallel",),       # batch images are independent
            vmem_limit_bytes=_vmem_limit_bytes(H, W, C, kh, kw, x.dtype)),
    )(x, w1r, b1r, w2r, b2r)

    return jnp.transpose(out_nhwc, (0, 3, 1, 2))     # back to NCHW


def resblock_reference(x_nchw, w1, b1, w2, b2, res_scale=1.0):
    """Pure-JAX reference (lax.conv) for correctness check."""
    x = jnp.transpose(x_nchw, (0, 2, 3, 1))
    dn = jax.lax.conv_dimension_numbers(x.shape, w1.shape,
                                        ('NHWC', 'HWIO', 'NHWC'))
    y = jax.lax.conv_general_dilated(x, w1, (1, 1), 'SAME',
                                     dimension_numbers=dn) + b1
    y = jnp.maximum(y, 0.0)
    y = jax.lax.conv_general_dilated(y, w2, (1, 1), 'SAME',
                                     dimension_numbers=dn) + b2
    out = y * res_scale + x
    return jnp.transpose(out, (0, 3, 1, 2))


if __name__ == "__main__":
    N, C, H, W = 2, 4, 16, 16
    kh = kw = 3
    res_scale = 1.0

    key = jax.random.PRNGKey(0)
    kx, k1, kb1, k2, kb2 = jax.random.split(key, 5)

    x = jax.random.normal(kx, (N, C, H, W), dtype=jnp.float32)
    # Deterministic synthetic parameters (HWIO layout for the conv weights).
    w1 = jax.random.normal(k1, (kh, kw, C, C), dtype=jnp.float32) * 0.1
    b1 = jax.random.normal(kb1, (C,), dtype=jnp.float32) * 0.1
    w2 = jax.random.normal(k2, (kh, kw, C, C), dtype=jnp.float32) * 0.1
    b2 = jax.random.normal(kb2, (C,), dtype=jnp.float32) * 0.1

    out = resblock_pallas(x, w1, b1, w2, b2, res_scale)
    out = jax.block_until_ready(out)

    ref = resblock_reference(x, w1, b1, w2, b2, res_scale)
    assert out.shape == (N, C, H, W)
    assert out.dtype == x.dtype
    assert jnp.allclose(out, ref, atol=5e-4, rtol=5e-4), "mismatch vs reference"

    print("KERNEL_OK")
</pallas_src>

<mosaic_0001>
module attributes {stable_mosaic.version = 11 : i64} {
  func.func @resblock_kernel(%arg0: i32, %arg1: memref<1x16x16x4xf32, #tpu.memory_space<vmem>>, %arg2: memref<36x4xf32, #tpu.memory_space<vmem>>, %arg3: memref<1x4xf32, #tpu.memory_space<vmem>>, %arg4: memref<36x4xf32, #tpu.memory_space<vmem>>, %arg5: memref<1x4xf32, #tpu.memory_space<vmem>>, %arg6: memref<1x16x16x4xf32, #tpu.memory_space<vmem>>, %arg7: memref<18x18x4xf32, #tpu.memory_space<vmem>>) attributes {dimension_semantics = [#tpu.dimension_semantics<parallel>], iteration_bounds = array<i64: 2>, scalar_prefetch = 0 : i64, scratch_operands = 1 : i64, tpu.core_type = #tpu.core_type<tc>, window_params = [{transform_indices = @transform_0, window_bounds = array<i64: 1, 16, 16, 4>}, {pipeline_mode = #tpu.pipeline_mode<synchronous>, transform_indices = @transform_1, window_bounds = array<i64: 36, 4>}, {pipeline_mode = #tpu.pipeline_mode<synchronous>, transform_indices = @transform_2, window_bounds = array<i64: 1, 4>}, {pipeline_mode = #tpu.pipeline_mode<synchronous>, transform_indices = @transform_3, window_bounds = array<i64: 36, 4>}, {pipeline_mode = #tpu.pipeline_mode<synchronous>, transform_indices = @transform_4, window_bounds = array<i64: 1, 4>}, {transform_indices = @transform_5, window_bounds = array<i64: 1, 16, 16, 4>}]} {
    %cst = arith.constant 0.000000e+00 : f32
    %0 = vector.broadcast %cst : f32 to vector<1x18x4xf32>
    %c0 = arith.constant 0 : index
    %c0_0 = arith.constant 0 : index
    %c0_1 = arith.constant 0 : index
    %1 = vector.load %arg7[%c0, %c0_0, %c0_1] : memref<18x18x4xf32, #tpu.memory_space<vmem>>, vector<1x18x4xf32>
    tpu.vector_store %arg7[%c0, %c0_0, %c0_1], %0 {strides = array<i32>} : memref<18x18x4xf32, #tpu.memory_space<vmem>>, vector<1x18x4xf32>,
    %cst_2 = arith.constant 0.000000e+00 : f32
    %2 = vector.broadcast %cst_2 : f32 to vector<1x18x4xf32>
    %c17 = arith.constant 17 : index
    %c0_3 = arith.constant 0 : index
    %c0_4 = arith.constant 0 : index
    %3 = vector.load %arg7[%c17, %c0_3, %c0_4] : memref<18x18x4xf32, #tpu.memory_space<vmem>>, vector<1x18x4xf32>
    tpu.vector_store %arg7[%c17, %c0_3, %c0_4], %2 {strides = array<i32>} : memref<18x18x4xf32, #tpu.memory_space<vmem>>, vector<1x18x4xf32>,
    %cst_5 = arith.constant 0.000000e+00 : f32
    %4 = vector.broadcast %cst_5 : f32 to vector<18x1x4xf32>
    %c0_6 = arith.constant 0 : index
    %c0_7 = arith.constant 0 : index
    %c0_8 = arith.constant 0 : index
    %5 = vector.load %arg7[%c0_6, %c0_7, %c0_8] : memref<18x18x4xf32, #tpu.memory_space<vmem>>, vector<18x1x4xf32>
    tpu.vector_store %arg7[%c0_6, %c0_7, %c0_8], %4 {strides = array<i32>} : memref<18x18x4xf32, #tpu.memory_space<vmem>>, vector<18x1x4xf32>,
    %cst_9 = arith.constant 0.000000e+00 : f32
    %6 = vector.broadcast %cst_9 : f32 to vector<18x1x4xf32>
    %c0_10 = arith.constant 0 : index
    %c17_11 = arith.constant 17 : index
    %c0_12 = arith.constant 0 : index
    %7 = vector.load %arg7[%c0_10, %c17_11, %c0_12] : memref<18x18x4xf32, #tpu.memory_space<vmem>>, vector<18x1x4xf32>
    tpu.vector_store %arg7[%c0_10, %c17_11, %c0_12], %6 {strides = array<i32>} : memref<18x18x4xf32, #tpu.memory_space<vmem>>, vector<18x1x4xf32>,
    %c0_13 = arith.constant 0 : index
    %c0_14 = arith.constant 0 : index
    %c0_15 = arith.constant 0 : index
    %c0_16 = arith.constant 0 : index
    %8 = vector.load %arg1[%c0_13, %c0_14, %c0_15, %c0_16] : memref<1x16x16x4xf32, #tpu.memory_space<vmem>>, vector<1x16x16x4xf32>
    %9 = vector.shape_cast %8 : vector<1x16x16x4xf32> to vector<16x16x4xf32>
    %c1 = arith.constant 1 : index
    %c1_17 = arith.constant 1 : index
    %c0_18 = arith.constant 0 : index
    %10 = vector.load %arg7[%c1, %c1_17, %c0_18] : memref<18x18x4xf32, #tpu.memory_space<vmem>>, vector<16x16x4xf32>
    tpu.vector_store %arg7[%c1, %c1_17, %c0_18], %9 {strides = array<i32>} : memref<18x18x4xf32, #tpu.memory_space<vmem>>, vector<16x16x4xf32>,
    %c0_19 = arith.constant 0 : index
    %c0_20 = arith.constant 0 : index
    %c0_21 = arith.constant 0 : index
    %11 = vector.load %arg7[%c0_19, %c0_20, %c0_21] : memref<18x18x4xf32, #tpu.memory_space<vmem>>, vector<16x16x4xf32>
    %c0_22 = arith.constant 0 : index
    %c1_23 = arith.constant 1 : index
    %c0_24 = arith.constant 0 : index
    %12 = vector.load %arg7[%c0_22, %c1_23, %c0_24] : memref<18x18x4xf32, #tpu.memory_space<vmem>>, vector<16x16x4xf32>
    %c0_25 = arith.constant 0 : index
    %c2 = arith.constant 2 : index
    %c0_26 = arith.constant 0 : index
    %13 = vector.load %arg7[%c0_25, %c2, %c0_26] : memref<18x18x4xf32, #tpu.memory_space<vmem>>, vector<16x16x4xf32>
    %c1_27 = arith.constant 1 : index
    %c0_28 = arith.constant 0 : index
    %c0_29 = arith.constant 0 : index
    %14 = vector.load %arg7[%c1_27, %c0_28, %c0_29] : memref<18x18x4xf32, #tpu.memory_space<vmem>>, vector<16x16x4xf32>
    %c1_30 = arith.constant 1 : index
    %c1_31 = arith.constant 1 : index
    %c0_32 = arith.constant 0 : index
    %15 = vector.load %arg7[%c1_30, %c1_31, %c0_32] : memref<18x18x4xf32, #tpu.memory_space<vmem>>, vector<16x16x4xf32>
    %c1_33 = arith.constant 1 : index
    %c2_34 = arith.constant 2 : index
    %c0_35 = arith.constant 0 : index
    %16 = vector.load %arg7[%c1_33, %c2_34, %c0_35] : memref<18x18x4xf32, #tpu.memory_space<vmem>>, vector<16x16x4xf32>
    %c2_36 = arith.constant 2 : index
    %c0_37 = arith.constant 0 : index
    %c0_38 = arith.constant 0 : index
    %17 = vector.load %arg7[%c2_36, %c0_37, %c0_38] : memref<18x18x4xf32, #tpu.memory_space<vmem>>, vector<16x16x4xf32>
    %c2_39 = arith.constant 2 : index
    %c1_40 = arith.constant 1 : index
    %c0_41 = arith.constant 0 : index
    %18 = vector.load %arg7[%c2_39, %c1_40, %c0_41] : memref<18x18x4xf32, #tpu.memory_space<vmem>>, vector<16x16x4xf32>
    %c2_42 = arith.constant 2 : index
    %c2_43 = arith.constant 2 : index
    %c0_44 = arith.constant 0 : index
    %19 = vector.load %arg7[%c2_42, %c2_43, %c0_44] : memref<18x18x4xf32, #tpu.memory_space<vmem>>, vector<16x16x4xf32>
    %20 = tpu.concatenate %11, %12, %13, %14, %15, %16, %17, %18, %19 in 2 : vector<16x16x4xf32>, vector<16x16x4xf32>, vector<16x16x4xf32>, vector<16x16x4xf32>, vector<16x16x4xf32>, vector<16x16x4xf32>, vector<16x16x4xf32>, vector<16x16x4xf32>, vector<16x16x4xf32> -> vector<16x16x36xf32>
    %21 = vector.shape_cast %20 : vector<16x16x36xf32> to vector<256x36xf32>
    %c0_45 = arith.constant 0 : index
    %c0_46 = arith.constant 0 : index
    %22 = vector.load %arg2[%c0_45, %c0_46] : memref<36x4xf32, #tpu.memory_space<vmem>>, vector<36x4xf32>
    %cst_47 = arith.constant dense<0.000000e+00> : vector<256x4xf32>
    %23 = tpu.matmul %21, %22, %cst_47 {dimension_numbers = #tpu.dot_dimension_numbers<[1], [0], [0], [1], [0, 0, 1, 1], [], []>} : vector<256x36xf32>, vector<36x4xf32>, vector<256x4xf32> -> vector<256x4xf32>
    %c0_48 = arith.constant 0 : index
    %c0_49 = arith.constant 0 : index
    %24 = vector.load %arg3[%c0_48, %c0_49] : memref<1x4xf32, #tpu.memory_space<vmem>>, vector<1x4xf32>
    %25 = vector.broadcast %24 : vector<1x4xf32> to vector<256x4xf32>
    %26 = arith.addf %23, %25 : vector<256x4xf32>
    %cst_50 = arith.constant 0.000000e+00 : f32
    %27 = vector.broadcast %cst_50 : f32 to vector<256x4xf32>
    %28 = arith.maximumf %26, %27 : vector<256x4xf32>
    %29 = vector.shape_cast %28 : vector<256x4xf32> to vector<16x16x4xf32>
    %c1_51 = arith.constant 1 : index
    %c1_52 = arith.constant 1 : index
    %c0_53 = arith.constant 0 : index
    %30 = vector.load %arg7[%c1_51, %c1_52, %c0_53] : memref<18x18x4xf32, #tpu.memory_space<vmem>>, vector<16x16x4xf32>
    tpu.vector_store %arg7[%c1_51, %c1_52, %c0_53], %29 {strides = array<i32>} : memref<18x18x4xf32, #tpu.memory_space<vmem>>, vector<16x16x4xf32>,
    %c0_54 = arith.constant 0 : index
    %c0_55 = arith.constant 0 : index
    %c0_56 = arith.constant 0 : index
    %31 = vector.load %arg7[%c0_54, %c0_55, %c0_56] : memref<18x18x4xf32, #tpu.memory_space<vmem>>, vector<16x16x4xf32>
    %c0_57 = arith.constant 0 : index
    %c1_58 = arith.constant 1 : index
    %c0_59 = arith.constant 0 : index
    %32 = vector.load %arg7[%c0_57, %c1_58, %c0_59] : memref<18x18x4xf32, #tpu.memory_space<vmem>>, vector<16x16x4xf32>
    %c0_60 = arith.constant 0 : index
    %c2_61 = arith.constant 2 : index
    %c0_62 = arith.constant 0 : index
    %33 = vector.load %arg7[%c0_60, %c2_61, %c0_62] : memref<18x18x4xf32, #tpu.memory_space<vmem>>, vector<16x16x4xf32>
    %c1_63 = arith.constant 1 : index
    %c0_64 = arith.constant 0 : index
    %c0_65 = arith.constant 0 : index
    %34 = vector.load %arg7[%c1_63, %c0_64, %c0_65] : memref<18x18x4xf32, #tpu.memory_space<vmem>>, vector<16x16x4xf32>
    %c1_66 = arith.constant 1 : index
    %c1_67 = arith.constant 1 : index
    %c0_68 = arith.constant 0 : index
    %35 = vector.load %arg7[%c1_66, %c1_67, %c0_68] : memref<18x18x4xf32, #tpu.memory_space<vmem>>, vector<16x16x4xf32>
    %c1_69 = arith.constant 1 : index
    %c2_70 = arith.constant 2 : index
    %c0_71 = arith.constant 0 : index
    %36 = vector.load %arg7[%c1_69, %c2_70, %c0_71] : memref<18x18x4xf32, #tpu.memory_space<vmem>>, vector<16x16x4xf32>
    %c2_72 = arith.constant 2 : index
    %c0_73 = arith.constant 0 : index
    %c0_74 = arith.constant 0 : index
    %37 = vector.load %arg7[%c2_72, %c0_73, %c0_74] : memref<18x18x4xf32, #tpu.memory_space<vmem>>, vector<16x16x4xf32>
    %c2_75 = arith.constant 2 : index
    %c1_76 = arith.constant 1 : index
    %c0_77 = arith.constant 0 : index
    %38 = vector.load %arg7[%c2_75, %c1_76, %c0_77] : memref<18x18x4xf32, #tpu.memory_space<vmem>>, vector<16x16x4xf32>
    %c2_78 = arith.constant 2 : index
    %c2_79 = arith.constant 2 : index
    %c0_80 = arith.constant 0 : index
    %39 = vector.load %arg7[%c2_78, %c2_79, %c0_80] : memref<18x18x4xf32, #tpu.memory_space<vmem>>, vector<16x16x4xf32>
    %40 = tpu.concatenate %31, %32, %33, %34, %35, %36, %37, %38, %39 in 2 : vector<16x16x4xf32>, vector<16x16x4xf32>, vector<16x16x4xf32>, vector<16x16x4xf32>, vector<16x16x4xf32>, vector<16x16x4xf32>, vector<16x16x4xf32>, vector<16x16x4xf32>, vector<16x16x4xf32> -> vector<16x16x36xf32>
    %41 = vector.shape_cast %40 : vector<16x16x36xf32> to vector<256x36xf32>
    %c0_81 = arith.constant 0 : index
    %c0_82 = arith.constant 0 : index
    %42 = vector.load %arg4[%c0_81, %c0_82] : memref<36x4xf32, #tpu.memory_space<vmem>>, vector<36x4xf32>
    %cst_83 = arith.constant dense<0.000000e+00> : vector<256x4xf32>
    %43 = tpu.matmul %41, %42, %cst_83 {dimension_numbers = #tpu.dot_dimension_numbers<[1], [0], [0], [1], [0, 0, 1, 1], [], []>} : vector<256x36xf32>, vector<36x4xf32>, vector<256x4xf32> -> vector<256x4xf32>
    %c0_84 = arith.constant 0 : index
    %c0_85 = arith.constant 0 : index
    %44 = vector.load %arg5[%c0_84, %c0_85] : memref<1x4xf32, #tpu.memory_space<vmem>>, vector<1x4xf32>
    %45 = vector.broadcast %44 : vector<1x4xf32> to vector<256x4xf32>
    %46 = arith.addf %43, %45 : vector<256x4xf32>
    %47 = vector.shape_cast %46 : vector<256x4xf32> to vector<16x16x4xf32>
    %cst_86 = arith.constant 1.000000e+00 : f32
    %48 = vector.broadcast %cst_86 : f32 to vector<16x16x4xf32>
    %49 = arith.mulf %47, %48 : vector<16x16x4xf32>
    %c0_87 = arith.constant 0 : index
    %c0_88 = arith.constant 0 : index
    %c0_89 = arith.constant 0 : index
    %c0_90 = arith.constant 0 : index
    %50 = vector.load %arg1[%c0_87, %c0_88, %c0_89, %c0_90] : memref<1x16x16x4xf32, #tpu.memory_space<vmem>>, vector<1x16x16x4xf32>
    %51 = vector.shape_cast %50 : vector<1x16x16x4xf32> to vector<16x16x4xf32>
    %52 = arith.addf %49, %51 : vector<16x16x4xf32>
    %c0_91 = arith.constant 0 : index
    %c0_92 = arith.constant 0 : index
    %c0_93 = arith.constant 0 : index
    %c0_94 = arith.constant 0 : index
    %53 = vector.load %arg6[%c0_91, %c0_92, %c0_93, %c0_94] : memref<1x16x16x4xf32, #tpu.memory_space<vmem>>, vector<1x16x16x4xf32>
    %54 = vector.shape_cast %53 : vector<1x16x16x4xf32> to vector<16x16x4xf32>
    %55 = vector.shape_cast %52 : vector<16x16x4xf32> to vector<1x16x16x4xf32>
    tpu.vector_store %arg6[%c0_91, %c0_92, %c0_93, %c0_94], %55 {strides = array<i32>} : memref<1x16x16x4xf32, #tpu.memory_space<vmem>>, vector<1x16x16x4xf32>,
    return
  }
  func.func @transform_0(%arg0: i32) -> (i32, i32, i32, i32) {
    %c0_i32 = arith.constant 0 : i32
    %c0_i32_0 = arith.constant 0 : i32
    %c0_i32_1 = arith.constant 0 : i32
    %c0_i32_2 = arith.constant 0 : i32
    return %arg0, %c0_i32, %c0_i32_0, %c0_i32_1 : i32, i32, i32, i32
  }
  func.func @transform_1(%arg0: i32) -> (i32, i32) {
    %c0_i32 = arith.constant 0 : i32
    %c0_i32_0 = arith.constant 0 : i32
    %c0_i32_1 = arith.constant 0 : i32
    return %c0_i32, %c0_i32_0 : i32, i32
  }
  func.func @transform_2(%arg0: i32) -> (i32, i32) {
    %c0_i32 = arith.constant 0 : i32
    %c0_i32_0 = arith.constant 0 : i32
    %c0_i32_1 = arith.constant 0 : i32
    return %c0_i32, %c0_i32_0 : i32, i32
  }
  func.func @transform_3(%arg0: i32) -> (i32, i32) {
    %c0_i32 = arith.constant 0 : i32
    %c0_i32_0 = arith.constant 0 : i32
    %c0_i32_1 = arith.constant 0 : i32
    return %c0_i32, %c0_i32_0 : i32, i32
  }
  func.func @transform_4(%arg0: i32) -> (i32, i32) {
    %c0_i32 = arith.constant 0 : i32
    %c0_i32_0 = arith.constant 0 : i32
    %c0_i32_1 = arith.constant 0 : i32
    return %c0_i32, %c0_i32_0 : i32, i32
  }
  func.func @transform_5(%arg0: i32) -> (i32, i32, i32, i32) {
    %c0_i32 = arith.constant 0 : i32
    %c0_i32_0 = arith.constant 0 : i32
    %c0_i32_1 = arith.constant 0 : i32
    %c0_i32_2 = arith.constant 0 : i32
    return %arg0, %c0_i32, %c0_i32_0, %c0_i32_1 : i32, i32, i32, i32
  }
}

</mosaic_0001>

<bundles_post_ra>
// kernel: tpu_custom_call.1
= control target key start
LH: loop header
LB: loop body
LE: loop exit
PB: predicated region body
PF: predicated region fallthrough
CT: control target
= control target key end

     0   :  { %s4757_s18 = smov 0   ;;  %s7706_s0 = inlined_call_operand.vmem [shape: f32[2,16,16,4], index: 0, kind: input, shape index: {}]   ;;  %s7707_s1 = inlined_call_operand.vmem [shape: f32[36,4], index: 1, kind: input, shape index: {}]   ;;  %s7708_s2 = inlined_call_operand.vmem [shape: f32[1,4], index: 2, kind: input, shape index: {}]   ;;  %s7709_s3 = inlined_call_operand.vmem [shape: f32[36,4], index: 3, kind: input, shape index: {}]   ;;  %s7710_s4 = inlined_call_operand.vmem [shape: f32[1,4], index: 4, kind: input, shape index: {}]   ;;  %s7711_s5 = inlined_call_operand.vmem [shape: f32[2,16,16,4], index: 5, kind: output, shape index: {}]  }
   0x1 LB: > { %s4369_s19 = sadd.s32 4294967295, %s4716_s18   ;;  %p4373_p0 = scmp.ge.s32.totalorder %s4716_s18, 1  ;;  %s4716_s18 = sphi %s4757_s18, %s15_s18  }
   0x2   : > { %p187_p1 = scmp.lt.s32.totalorder %s4716_s18, 3 }
   0x4   : > { %p188_p2 = pnand %p4373_p0, %p187_p1 }
   0x6   : > { %191 = sbr.rel (%p188_p2) target bundleno = 1667 (0x683), region = 40 }
   0xd   : > { %vm225_vm0 = vcmask 31744   ;;  %vm228_vm1 = vcmask 25600   ;;  %p4767_p3 = scmp.lt.s32.totalorder %s4369_s19, 1  ;;  %vm234_vm2 = vcmask 24576   ;;  %v4718_v0 = vmov 0.0   ;;  %s4719_s25 = smov 4  }
   0xe   : > { %226 = vst.msk [vmem:[#allocation2] sm:$0xff] %vm225_vm0, %v4718_v0  ;;  %227 = vst.msk [vmem:[#allocation2 + $0x8] sm:$0xff] %vm225_vm0, %v4718_v0  ;;  %s4720_s26 = smov 8   ;;  %s4721_s27 = smov 12   ;;  %vm2021_vm3 = vcmask 1043456   ;;  %vm1681_vm4 = vcmask 64512  }
   0xf   : > { %231 = vst.msk [vmem:[#allocation2 + $0x198] sm:$0xff] %vm225_vm0, %v4718_v0  ;;  %232 = vst.msk [vmem:[#allocation2 + $0x1a0] sm:$0xff] %vm225_vm0, %v4718_v0  ;;  %s8232_s19 = smov (!%p4767_p3, %s4369_s19), 1  ;;  %s4722_s28 = smov 16   ;;  %vm1714_vm5 = vcmask 97280   ;;  %vm1747_vm6 = vcmask 130048  }
  0x10   : > { %229 = vst.msk [vmem:[#allocation2 + $0x10] sm:$0x3] %vm228_vm1, %v4718_v0  ;;  %233 = vst.msk [vmem:[#allocation2 + $0x1a8] sm:$0x3] %vm228_vm1, %v4718_v0  ;;  %s4448_s21 = sshll.u32 %s8232_s19, 8  ;;  %s4723_s29 = smov 20  }
  0x11   : > { %236 = vst.msk [vmem:[#allocation2 + $0x18] sm:$0x1] %vm234_vm2, %v4718_v0  ;;  %237 = vst.msk [vmem:[#allocation2 + $0x30] sm:$0x1] %vm234_vm2, %v4718_v0  ;;  %s4823_s24 = scalar_lea.vmem %s7706_s0, %s4448_s21  ;;  %s4724_s30 = smov 24   ;;  %vm1780_vm7 = vcmask 162816  }
  0x12   : > { %238 = vst.msk [vmem:[#allocation2 + $0x48] sm:$0x1] %vm234_vm2, %v4718_v0  ;;  %239 = vst.msk [vmem:[#allocation2 + $0x60] sm:$0x1] %vm234_vm2, %v4718_v0  ;;  %v271_v1 = vld [vmem:[%s4823_s24] sm:$0xff]  ;;  %v273_v2 = vld [vmem:[%s4823_s24 + $0x10] sm:$0xff]  ;;  %s7467_s13 = scalar_lea.vmem %s7711_s5, %s4448_s21 }
  0x13   : > { %240 = vst.msk [vmem:[#allocation2 + $0x78] sm:$0x1] %vm234_vm2, %v4718_v0  ;;  %241 = vst.msk [vmem:[#allocation2 + $0x90] sm:$0x1] %vm234_vm2, %v4718_v0  ;;  %v272_v3 = vld [vmem:[%s4823_s24 + $0x8] sm:$0xff]  ;;  %v275_v4 = vld [vmem:[%s4823_s24 + $0x20] sm:$0xff] }
  0x14   : > { %242 = vst.msk [vmem:[#allocation2 + $0xa8] sm:$0x1] %vm234_vm2, %v4718_v0  ;;  %243 = vst.msk [vmem:[#allocation2 + $0xc0] sm:$0x1] %vm234_vm2, %v4718_v0  ;;  %v274_v5 = vld [vmem:[%s4823_s24 + $0x18] sm:$0xff]  ;;  %v277_v6 = vld [vmem:[%s4823_s24 + $0x30] sm:$0xff] }
  0x15   : > { %244 = vst.msk [vmem:[#allocation2 + $0xd8] sm:$0x1] %vm234_vm2, %v4718_v0  ;;  %245 = vst.msk [vmem:[#allocation2 + $0xf0] sm:$0x1] %vm234_vm2, %v4718_v0  ;;  %v368_v7 = vld [vmem:[#allocation2 + $0x1] sm:$0xff]  ;;  %v278_v11 = vld [vmem:[%s4823_s24 + $0x38] sm:$0xff] }
  0x16   : > { %246 = vst.msk [vmem:[#allocation2 + $0x108] sm:$0x1] %vm234_vm2, %v4718_v0  ;;  %247 = vst.msk [vmem:[#allocation2 + $0x120] sm:$0x1] %vm234_vm2, %v4718_v0  ;;  %v276_v9 = vld [vmem:[%s4823_s24 + $0x28] sm:$0xff]  ;;  %657 = vrot.lane.b32.xlu0 %v368_v7, %s4719_s25  ;;  %v279_v10 = vld [vmem:[%s4823_s24 + $0x40] sm:$0xff] }
  0x17   : > { %248 = vst.msk [vmem:[#allocation2 + $0x138] sm:$0x1] %vm234_vm2, %v4718_v0  ;;  %249 = vst.msk [vmem:[#allocation2 + $0x150] sm:$0x1] %vm234_vm2, %v4718_v0  ;;  %v369_v8 = vld [vmem:[#allocation2 + $0x9] sm:$0xff]  ;;  %v283_v14 = vld [vmem:[%s4823_s24 + $0x60] sm:$0xff] }
  0x18   : > { %250 = vst.msk [vmem:[#allocation2 + $0x168] sm:$0x1] %vm234_vm2, %v4718_v0  ;;  %251 = vst.msk [vmem:[#allocation2 + $0x180] sm:$0x1] %vm234_vm2, %v4718_v0  ;;  %v281_v12 = vld [vmem:[%s4823_s24 + $0x50] sm:$0xff]  ;;  %v280_v13 = vld [vmem:[%s4823_s24 + $0x48] sm:$0xff] }
  0x19   : > { %254 = vst.msk [vmem:[#allocation2 + $0x29] sm:$0x1] %vm234_vm2, %v4718_v0  ;;  %255 = vst.msk [vmem:[#allocation2 + $0x41] sm:$0x1] %vm234_vm2, %v4718_v0  ;;  %v282_v15 = vld [vmem:[%s4823_s24 + $0x58] sm:$0xff]  ;;  %v285_v16 = vld [vmem:[%s4823_s24 + $0x70] sm:$0xff] }
  0x1a   : > { %256 = vst.msk [vmem:[#allocation2 + $0x59] sm:$0x1] %vm234_vm2, %v4718_v0  ;;  %257 = vst.msk [vmem:[#allocation2 + $0x71] sm:$0x1] %vm234_vm2, %v4718_v0  ;;  %v284_v17 = vld [vmem:[%s4823_s24 + $0x68] sm:$0xff]  ;;  %v287_v18 = vld [vmem:[%s4823_s24 + $0x80] sm:$0xff]  ;;  %659 = vrot.lane.b32.xlu0 %v369_v8, %s4719_s25 }
  0x1b   : > { %258 = vst.msk [vmem:[#allocation2 + $0x89] sm:$0x1] %vm234_vm2, %v4718_v0  ;;  %259 = vst.msk [vmem:[#allocation2 + $0xa1] sm:$0x1] %vm234_vm2, %v4718_v0  ;;  %v286_v19 = vld [vmem:[%s4823_s24 + $0x78] sm:$0xff]  ;;  %v289_v20 = vld [vmem:[%s4823_s24 + $0x90] sm:$0xff] }
  0x1c   : > { %260 = vst.msk [vmem:[#allocation2 + $0xb9] sm:$0x1] %vm234_vm2, %v4718_v0  ;;  %261 = vst.msk [vmem:[#allocation2 + $0xd1] sm:$0x1] %vm234_vm2, %v4718_v0  ;;  %v288_v21 = vld [vmem:[%s4823_s24 + $0x88] sm:$0xff]  ;;  %v291_v22 = vld [vmem:[%s4823_s24 + $0xa0] sm:$0xff] }
  0x1d   : > { %262 = vst.msk [vmem:[#allocation2 + $0xe9] sm:$0x1] %vm234_vm2, %v4718_v0  ;;  %263 = vst.msk [vmem:[#allocation2 + $0x101] sm:$0x1] %vm234_vm2, %v4718_v0  ;;  %v290_v23 = vld [vmem:[%s4823_s24 + $0x98] sm:$0xff]  ;;  %v293_v24 = vld [vmem:[%s4823_s24 + $0xb0] sm:$0xff] }
  0x1e   : > { %264 = vst.msk [vmem:[#allocation2 + $0x119] sm:$0x1] %vm234_vm2, %v4718_v0  ;;  %265 = vst.msk [vmem:[#allocation2 + $0x131] sm:$0x1] %vm234_vm2, %v4718_v0  ;;  %v292_v28 = vld [vmem:[%s4823_s24 + $0xa8] sm:$0xff]  ;;  %v295_v29 = vld [vmem:[%s4823_s24 + $0xc0] sm:$0xff] }
  0x1f   : > { %266 = vst.msk [vmem:[#allocation2 + $0x149] sm:$0x1] %vm234_vm2, %v4718_v0  ;;  %267 = vst.msk [vmem:[#allocation2 + $0x161] sm:$0x1] %vm234_vm2, %v4718_v0  ;;  %v294_v33 = vld [vmem:[%s4823_s24 + $0xb8] sm:$0xff]  ;;  %v297_v34 = vld [vmem:[%s4823_s24 + $0xd0] sm:$0xff] }
  0x20   : > { %268 = vst.msk [vmem:[#allocation2 + $0x179] sm:$0x1] %vm234_vm2, %v4718_v0  ;;  %269 = vst.msk [vmem:[#allocation2 + $0x191] sm:$0x1] %vm234_vm2, %v4718_v0  ;;  %v296_v35 = vld [vmem:[%s4823_s24 + $0xc8] sm:$0xff]  ;;  %v299_v36 = vld [vmem:[%s4823_s24 + $0xe0] sm:$0xff] }
  0x21   : > { %253 = vst.msk [vmem:[#allocation2 + $0x11] sm:$0x1] %vm234_vm2, %v4718_v0  ;;  %235 = vst.msk [vmem:[#allocation2] sm:$0x1] %vm234_vm2, %v4718_v0  ;;  %v298_v37 = vld [vmem:[%s4823_s24 + $0xd8] sm:$0xff]  ;;  %v300_v39 = vld [vmem:[%s4823_s24 + $0xe8] sm:$0xff] }
  0x22   : > { %252 = vst.msk [vmem:[#allocation2 + $0x198] sm:$0x1] %vm234_vm2, %v4718_v0  ;;  %270 = vst.msk [vmem:[#allocation2 + $0x1a9] sm:$0x1] %vm234_vm2, %v4718_v0  ;;  %v301_v58 = vld [vmem:[%s4823_s24 + $0xf0] sm:$0xff]  ;;  %v302_v62 = vld [vmem:[%s4823_s24 + $0xf8] sm:$0xff] }
  0x23   : > { %304 = vst.msk [vmem:[#allocation2 + $0x19] sm:$0xff] %vm225_vm0, %v271_v1  ;;  %306 = vst.msk [vmem:[#allocation2 + $0x31] sm:$0xff] %vm225_vm0, %v273_v2  ;;  %v400_v0 = vld [vmem:[#allocation2 + $0x2] sm:$0xff]  ;;  %s4725_s14 = smov 28   ;;  %s4726_s17 = smov 32   ;;  %vm1813_vm8 = vcmask 195584  }
  0x24   : > { %305 = vst.msk [vmem:[#allocation2 + $0x21] sm:$0xff] %vm225_vm0, %v272_v3  ;;  %308 = vst.msk [vmem:[#allocation2 + $0x49] sm:$0xff] %vm225_vm0, %v275_v4  ;;  %vm1846_vm9 = vcmask 228352   ;;  %vm1879_vm10 = vcmask 261120   ;;  %vm1924_vm11 = vcmask 293888  }
  0x25   : > { %307 = vst.msk [vmem:[#allocation2 + $0x39] sm:$0xff] %vm225_vm0, %v274_v5  ;;  %310 = vst.msk [vmem:[#allocation2 + $0x61] sm:$0xff] %vm225_vm0, %v277_v6 }
  0x26   : > { %309 = vst.msk [vmem:[#allocation2 + $0x51] sm:$0xff] %vm225_vm0, %v276_v9  ;;  %312 = vst.msk [vmem:[#allocation2 + $0x79] sm:$0xff] %vm225_vm0, %v279_v10 }
  0x27   : > { %311 = vst.msk [vmem:[#allocation2 + $0x69] sm:$0xff] %vm225_vm0, %v278_v11  ;;  %314 = vst.msk [vmem:[#allocation2 + $0x91] sm:$0xff] %vm225_vm0, %v281_v12 }
  0x28   : > { %313 = vst.msk [vmem:[#allocation2 + $0x81] sm:$0xff] %vm225_vm0, %v280_v13  ;;  %316 = vst.msk [vmem:[#allocation2 + $0xa9] sm:$0xff] %vm225_vm0, %v283_v14  ;;  %v401_v3 = vld [vmem:[#allocation2 + $0xa] sm:$0xff] }
  0x29   : > { %315 = vst.msk [vmem:[#allocation2 + $0x99] sm:$0xff] %vm225_vm0, %v282_v15  ;;  %318 = vst.msk [vmem:[#allocation2 + $0xc1] sm:$0xff] %vm225_vm0, %v285_v16 }
  0x2a   : > { %317 = vst.msk [vmem:[#allocation2 + $0xb1] sm:$0xff] %vm225_vm0, %v284_v17  ;;  %320 = vst.msk [vmem:[#allocation2 + $0xd9] sm:$0xff] %vm225_vm0, %v287_v18  ;;  %v4868_v25 = vld [vmem:[#allocation2 + $0x19] sm:$0xff]  ;;  %v4870_v26 = vld [vmem:[#allocation2 + $0x31] sm:$0xff] }
  0x2b   : > { %319 = vst.msk [vmem:[#allocation2 + $0xc9] sm:$0xff] %vm225_vm0, %v286_v19  ;;  %322 = vst.msk [vmem:[#allocation2 + $0xf1] sm:$0xff] %vm225_vm0, %v289_v20  ;;  %661 = vrot.lane.b32.xlu1 %v4868_v25, %s4719_s25  ;;  %v4877_v27 = vld [vmem:[#allocation2 + $0x21] sm:$0xff]  ;;  %665 = vrot.lane.b32.xlu0 %v4870_v26, %s4719_s25  ;;  %v4885_v30 = vld [vmem:[#allocation2 + $0x49] sm:$0xff] }
  0x2c   : > { %321 = vst.msk [vmem:[#allocation2 + $0xe1] sm:$0xff] %vm225_vm0, %v288_v21  ;;  %324 = vst.msk [vmem:[#allocation2 + $0x109] sm:$0xff] %vm225_vm0, %v291_v22  ;;  %v4889_v31 = vld [vmem:[#allocation2 + $0x39] sm:$0xff]  ;;  %v4893_v32 = vld [vmem:[#allocation2 + $0x61] sm:$0xff] }
  0x2d   : > { %323 = vst.msk [vmem:[#allocation2 + $0xf9] sm:$0xff] %vm225_vm0, %v290_v23  ;;  %326 = vst.msk [vmem:[#allocation2 + $0x121] sm:$0xff] %vm225_vm0, %v293_v24  ;;  %v4905_v38 = vld [vmem:[#allocation2 + $0x51] sm:$0xff]  ;;  %v4913_v40 = vld [vmem:[#allocation2 + $0x79] sm:$0xff] }
  0x2e   : > { %325 = vst.msk [vmem:[#allocation2 + $0x111] sm:$0xff] %vm225_vm0, %v292_v28  ;;  %328 = vst.msk [vmem:[#allocation2 + $0x139] sm:$0xff] %vm225_vm0, %v295_v29  ;;  %v4917_v41 = vld [vmem:[#allocation2 + $0x69] sm:$0xff]  ;;  %v4921_v42 = vld [vmem:[#allocation2 + $0x91] sm:$0xff] }
  0x2f   : > { %663 = vrot.lane.b32.xlu1 %v4877_v27, %s4719_s25  ;;  %669 = vrot.lane.b32.xlu0 %v4885_v30, %s4719_s25  ;;  %327 = vst.msk [vmem:[#allocation2 + $0x129] sm:$0xff] %vm225_vm0, %v294_v33  ;;  %330 = vst.msk [vmem:[#allocation2 + $0x151] sm:$0xff] %vm225_vm0, %v297_v34  ;;  %v4925_v43 = vld [vmem:[#allocation2 + $0x81] sm:$0xff]  ;;  %v4929_v44 = vld [vmem:[#allocation2 + $0xa9] sm:$0xff] }
  0x30   : > { %329 = vst.msk [vmem:[#allocation2 + $0x141] sm:$0xff] %vm225_vm0, %v296_v35  ;;  %332 = vst.msk [vmem:[#allocation2 + $0x169] sm:$0xff] %vm225_vm0, %v299_v36  ;;  %v4933_v45 = vld [vmem:[#allocation2 + $0x99] sm:$0xff]  ;;  %v4937_v46 = vld [vmem:[#allocation2 + $0xc1] sm:$0xff] }
  0x31   : > { %331 = vst.msk [vmem:[#allocation2 + $0x159] sm:$0xff] %vm225_vm0, %v298_v37  ;;  %333 = vst.msk [vmem:[#allocation2 + $0x171] sm:$0xff] %vm225_vm0, %v300_v39  ;;  %v4941_v47 = vld [vmem:[#allocation2 + $0xb1] sm:$0xff]  ;;  %v4945_v48 = vld [vmem:[#allocation2 + $0xd9] sm:$0xff] }
  0x32   : > { %v4949_v49 = vld [vmem:[#allocation2 + $0xc9] sm:$0xff]  ;;  %v4953_v50 = vld [vmem:[#allocation2 + $0xf1] sm:$0xff]  ;;  %334 = vst.msk [vmem:[#allocation2 + $0x181] sm:$0xff] %vm225_vm0, %v301_v58  ;;  %335 = vst.msk [vmem:[#allocation2 + $0x189] sm:$0xff] %vm225_vm0, %v302_v62 }
  0x33   : > { %667 = vrot.lane.b32.xlu1 %v4889_v31, %s4719_s25  ;;  %673 = vrot.lane.b32.xlu0 %v4893_v32, %s4719_s25  ;;  %v4957_v51 = vld [vmem:[#allocation2 + $0xe1] sm:$0xff]  ;;  %v4961_v52 = vld [vmem:[#allocation2 + $0x109] sm:$0xff]  ;;  %v5016_v4 = vld [vmem:[#allocation2 + $0x32] sm:$0xff] }
  0x34   : > { %v4965_v53 = vld [vmem:[#allocation2 + $0xf9] sm:$0xff]  ;;  %v4969_v54 = vld [vmem:[#allocation2 + $0x121] sm:$0xff]  ;;  %v5023_v6 = vld [vmem:[#allocation2 + $0x4a] sm:$0xff] }
  0x35   : > { %v4973_v55 = vld [vmem:[#allocation2 + $0x111] sm:$0xff]  ;;  %v4977_v56 = vld [vmem:[#allocation2 + $0x139] sm:$0xff]  ;;  %v5019_v5 = vld [vmem:[#allocation2 + $0x22] sm:$0xff] }
  0x36   : > { %v4981_v57 = vld [vmem:[#allocation2 + $0x129] sm:$0xff]  ;;  %v4987_v59 = vld [vmem:[#allocation2 + $0x151] sm:$0xff]  ;;  %v5010_v2 = vld [vmem:[#allocation2 + $0x1a] sm:$0xff] }
  0x37   : > { %671 = vrot.lane.b32.xlu1 %v4905_v38, %s4719_s25  ;;  %677 = vrot.lane.b32.xlu0 %v4913_v40, %s4719_s25  ;;  %v4991_v60 = vld [vmem:[#allocation2 + $0x141] sm:$0xff]  ;;  %v4995_v61 = vld [vmem:[#allocation2 + $0x169] sm:$0xff]  ;;  %v5035_v9 = vld [vmem:[#allocation2 + $0x52] sm:$0xff] }
  0x38   : > { %v5001_v63 = vld [vmem:[#allocation2 + $0x159] sm:$0xff]  ;;  %v5007_v1 = vld [vmem:[#allocation2 + $0x171] sm:$0xff]  ;;  %v5031_v8 = vld [vmem:[#allocation2 + $0x62] sm:$0xff] }
  0x39   : > { %v5027_v7 = vld [vmem:[#allocation2 + $0x3a] sm:$0xff]  ;;  %v5043_v11 = vld [vmem:[#allocation2 + $0x6a] sm:$0xff]  ;;  %v5047_v12 = vld [vmem:[#allocation2 + $0x92] sm:$0xff] }
  0x3a   : > { %v5039_v10 = vld [vmem:[#allocation2 + $0x7a] sm:$0xff]  ;;  %v5051_v13 = vld [vmem:[#allocation2 + $0x82] sm:$0xff]  ;;  %v5055_v14 = vld [vmem:[#allocation2 + $0xaa] sm:$0xff] }
  0x3b   : > { %675 = vrot.lane.b32.xlu1 %v4917_v41, %s4719_s25  ;;  %681 = vrot.lane.b32.xlu0 %v4921_v42, %s4719_s25  ;;  %v5059_v15 = vld [vmem:[#allocation2 + $0x9a] sm:$0xff]  ;;  %v5063_v16 = vld [vmem:[#allocation2 + $0xc2] sm:$0xff]  ;;  %v5067_v17 = vld [vmem:[#allocation2 + $0xb2] sm:$0xff] }
  0x3c   : > { %v5071_v18 = vld [vmem:[#allocation2 + $0xda] sm:$0xff]  ;;  %v5075_v19 = vld [vmem:[#allocation2 + $0xca] sm:$0xff]  ;;  %v5079_v20 = vld [vmem:[#allocation2 + $0xf2] sm:$0xff] }
  0x3d   : > { %v5083_v21 = vld [vmem:[#allocation2 + $0xe2] sm:$0xff]  ;;  %v5087_v22 = vld [vmem:[#allocation2 + $0x10a] sm:$0xff]  ;;  %v5091_v23 = vld [vmem:[#allocation2 + $0xfa] sm:$0xff] }
  0x3e   : > { %v5095_v24 = vld [vmem:[#allocation2 + $0x122] sm:$0xff]  ;;  %v5099_v28 = vld [vmem:[#allocation2 + $0x112] sm:$0xff]  ;;  %v5103_v29 = vld [vmem:[#allocation2 + $0x13a] sm:$0xff] }
  0x3f   : > { %679 = vrot.lane.b32.xlu1 %v4925_v43, %s4719_s25  ;;  %685 = vrot.lane.b32.xlu0 %v4929_v44, %s4719_s25  ;;  %v5109_v34 = vld [vmem:[#allocation2 + $0x12a] sm:$0xff]  ;;  %v5113_v35 = vld [vmem:[#allocation2 + $0x152] sm:$0xff]  ;;  %v5119_v37 = vld [vmem:[#allocation2 + $0x142] sm:$0xff] }
  0x40   : > { %7753 = vst [vmem:[#allocation5_spill] sm:$0xff] %v5119_v37  ;;  %v5125_v58 = vld [vmem:[#allocation2 + $0x16a] sm:$0xff] }
  0x41   : > { %7755 = vst [vmem:[#allocation7_spill] sm:$0xff] %v5125_v58 }
  0x43   : > { %683 = vrot.lane.b32.xlu1 %v4933_v45, %s4719_s25  ;;  %689 = vrot.lane.b32.xlu0 %v4937_v46, %s4719_s25 }
  0x47   : > { %687 = vrot.lane.b32.xlu1 %v4941_v47, %s4719_s25  ;;  %693 = vrot.lane.b32.xlu0 %v4945_v48, %s4719_s25 }
  0x4b   : > { %691 = vrot.lane.b32.xlu1 %v4949_v49, %s4719_s25  ;;  %697 = vrot.lane.b32.xlu0 %v4953_v50, %s4719_s25 }
  0x4f   : > { %695 = vrot.lane.b32.xlu1 %v4957_v51, %s4719_s25  ;;  %701 = vrot.lane.b32.xlu0 %v4961_v52, %s4719_s25 }
  0x53   : > { %699 = vrot.lane.b32.xlu1 %v4965_v53, %s4719_s25  ;;  %705 = vrot.lane.b32.xlu0 %v4969_v54, %s4719_s25 }
  0x57   : > { %703 = vrot.lane.b32.xlu1 %v4973_v55, %s4719_s25  ;;  %709 = vrot.lane.b32.xlu0 %v4977_v56, %s4719_s25 }
  0x5b   : > { %707 = vrot.lane.b32.xlu1 %v4981_v57, %s4719_s25  ;;  %713 = vrot.lane.b32.xlu0 %v4987_v59, %s4719_s25 }
  0x5f   : > { %711 = vrot.lane.b32.xlu1 %v4991_v60, %s4719_s25  ;;  %717 = vrot.lane.b32.xlu0 %v4995_v61, %s4719_s25 }
  0x63   : > { %715 = vrot.lane.b32.xlu1 %v5001_v63, %s4719_s25  ;;  %785 = vrot.lane.b32.xlu0 %v400_v0, %s4720_s26  ;;  %v5131_v0 = vld [vmem:[#allocation2 + $0x15a] sm:$0xff] }
  0x64   : > { %7757 = vst [vmem:[#allocation9_spill] sm:$0xff] %v5131_v0 }
  0x67   : > { %719 = vrot.lane.b32.xlu1 %v5007_v1, %s4719_s25  ;;  %789 = vrot.lane.b32.xlu0 %v5010_v2, %s4720_s26 }
  0x6b   : > { %787 = vrot.lane.b32.xlu1 %v401_v3, %s4720_s26  ;;  %793 = vrot.lane.b32.xlu0 %v5016_v4, %s4720_s26 }
  0x6f   : > { %791 = vrot.lane.b32.xlu1 %v5019_v5, %s4720_s26  ;;  %797 = vrot.lane.b32.xlu0 %v5023_v6, %s4720_s26 }
  0x73   : > { %795 = vrot.lane.b32.xlu1 %v5027_v7, %s4720_s26  ;;  %801 = vrot.lane.b32.xlu0 %v5031_v8, %s4720_s26 }
  0x77   : > { %799 = vrot.lane.b32.xlu1 %v5035_v9, %s4720_s26  ;;  %805 = vrot.lane.b32.xlu0 %v5039_v10, %s4720_s26 }
  0x7b   : > { %803 = vrot.lane.b32.xlu1 %v5043_v11, %s4720_s26  ;;  %809 = vrot.lane.b32.xlu0 %v5047_v12, %s4720_s26 }
  0x7f   : > { %807 = vrot.lane.b32.xlu1 %v5051_v13, %s4720_s26  ;;  %813 = vrot.lane.b32.xlu0 %v5055_v14, %s4720_s26 }
  0x83   : > { %811 = vrot.lane.b32.xlu1 %v5059_v15, %s4720_s26  ;;  %817 = vrot.lane.b32.xlu0 %v5063_v16, %s4720_s26 }
  0x87   : > { %815 = vrot.lane.b32.xlu1 %v5067_v17, %s4720_s26  ;;  %821 = vrot.lane.b32.xlu0 %v5071_v18, %s4720_s26 }
  0x88   : > { %v5105_v33 = vpop.permute.xlu0 %657 }
  0x89   : > { %7751 = vst [vmem:[#allocation3_spill] sm:$0xff] %v5105_v33  ;;  %v5141_v33 = vld [vmem:[#allocation2 + $0x172] sm:$0xff] }
  0x8a   : > { %7760 = vst [vmem:[#allocation12_spill] sm:$0xff] %v5141_v33 }
  0x8b   : > { %819 = vrot.lane.b32.xlu1 %v5075_v19, %s4720_s26  ;;  %825 = vrot.lane.b32.xlu0 %v5079_v20, %s4720_s26 }
  0x8c   : > { %v5115_v36 = vpop.permute.xlu0 %659 }
  0x8d   : > { %7752 = vst [vmem:[#allocation4_spill] sm:$0xff] %v5115_v36 }
  0x8f   : > { %823 = vrot.lane.b32.xlu1 %v5083_v21, %s4720_s26  ;;  %829 = vrot.lane.b32.xlu0 %v5087_v22, %s4720_s26 }
  0x93   : > { %827 = vrot.lane.b32.xlu1 %v5091_v23, %s4720_s26  ;;  %833 = vrot.lane.b32.xlu0 %v5095_v24, %s4720_s26 }
  0x97   : > { %831 = vrot.lane.b32.xlu1 %v5099_v28, %s4720_s26  ;;  %837 = vrot.lane.b32.xlu0 %v5103_v29, %s4720_s26 }
  0x9b   : > { %835 = vrot.lane.b32.xlu1 %v5109_v34, %s4720_s26  ;;  %841 = vrot.lane.b32.xlu0 %v5113_v35, %s4720_s26 }
  0x9d   : > { %v5123_v39 = vpop.permute.xlu1 %661  ;;  %v5127_v62 = vpop.permute.xlu0 %665 }
  0x9e   : > { %7754 = vst [vmem:[#allocation6_spill] sm:$0xff] %v5123_v39  ;;  %7756 = vst [vmem:[#allocation8_spill] sm:$0xff] %v5127_v62  ;;  %v338_v39 = vld [vmem:[#allocation2 + $0x18] sm:$0xff] }
  0x9f   : > { %839 = vrot.lane.b32.xlu1 %v5119_v37, %s4720_s26  ;;  %845 = vrot.lane.b32.xlu0 %v5125_v58, %s4720_s26  ;;  %v5150_v58 = vld [vmem:[#allocation2 + $0x30] sm:$0xff] }
  0xa0   : > { %7763 = vst [vmem:[#allocation15_spill] sm:$0xff] %v5150_v58 }
  0xa1   : > { %v5135_v3 = vpop.permute.xlu1 %663  ;;  %v5137_v36 = vpop.permute.xlu0 %669 }
  0xa2   : > { %7758 = vst [vmem:[#allocation10_spill] sm:$0xff] %v5135_v3  ;;  %7759 = vst [vmem:[#allocation11_spill] sm:$0xff] %v5137_v36  ;;  %v339_v3 = vld [vmem:[#allocation2 + $0x20] sm:$0xff] }
  0xa3   : > { %843 = vrot.lane.b32.xlu1 %v5131_v0, %s4720_s26  ;;  %913 = vrot.lane.b32.xlu0 %v338_v39, %s4721_s27  ;;  %v5159_v39 = vld [vmem:[#allocation2 + $0x48] sm:$0xff] }
  0xa4   : > { %7766 = vst [vmem:[#allocation18_spill] sm:$0xff] %v5159_v39 }
  0xa5   : > { %v5144_v62 = vpop.permute.xlu1 %667  ;;  %v5146_v37 = vpop.permute.xlu0 %673 }
  0xa6   : > { %7761 = vst [vmem:[#allocation13_spill] sm:$0xff] %v5144_v62  ;;  %7762 = vst [vmem:[#allocation14_spill] sm:$0xff] %v5146_v37  ;;  %v5165_v62 = vld [vmem:[#allocation2 + $0x38] sm:$0xff] }
  0xa7   : > { %847 = vrot.lane.b32.xlu1 %v5141_v33, %s4720_s26  ;;  %917 = vrot.lane.b32.xlu0 %v5150_v58, %s4721_s27  ;;  %7768 = vst [vmem:[#allocation20_spill] sm:$0xff] %v5165_v62 }
  0xa9   : > { %v5154_v36 = vpop.permute.xlu1 %671  ;;  %v5156_v0 = vpop.permute.xlu0 %677 }
  0xaa   : > { %7764 = vst [vmem:[#allocation16_spill] sm:$0xff] %v5154_v36  ;;  %7765 = vst [vmem:[#allocation17_spill] sm:$0xff] %v5156_v0  ;;  %v5171_v36 = vld [vmem:[#allocation2 + $0x60] sm:$0xff]  ;;  %v5177_v0 = vld [vmem:[#allocation2 + $0x50] sm:$0xff] }
  0xab   : > { %915 = vrot.lane.b32.xlu1 %v339_v3, %s4721_s27  ;;  %921 = vrot.lane.b32.xlu0 %v5159_v39, %s4721_s27  ;;  %7770 = vst [vmem:[#allocation22_spill] sm:$0xff] %v5171_v36  ;;  %7772 = vst [vmem:[#allocation24_spill] sm:$0xff] %v5177_v0 }
  0xad   : > { %v5163_v37 = vpop.permute.xlu1 %675  ;;  %v5167_v33 = vpop.permute.xlu0 %681 }
  0xae   : > { %7767 = vst [vmem:[#allocation19_spill] sm:$0xff] %v5163_v37  ;;  %7769 = vst [vmem:[#allocation21_spill] sm:$0xff] %v5167_v33  ;;  %v5183_v37 = vld [vmem:[#allocation2 + $0x78] sm:$0xff] }
  0xaf   : > { %919 = vrot.lane.b32.xlu1 %v5165_v62, %s4721_s27  ;;  %925 = vrot.lane.b32.xlu0 %v5171_v36, %s4721_s27  ;;  %7774 = vst [vmem:[#allocation26_spill] sm:$0xff] %v5183_v37  ;;  %v5189_v62 = vld [vmem:[#allocation2 + $0x68] sm:$0xff] }
  0xb0   : > { %7776 = vst [vmem:[#allocation28_spill] sm:$0xff] %v5189_v62 }
  0xb1   : > { %v5175_v3 = vpop.permute.xlu1 %679  ;;  %v5179_v58 = vpop.permute.xlu0 %685 }
  0xb2   : > { %7771 = vst [vmem:[#allocation23_spill] sm:$0xff] %v5175_v3  ;;  %7773 = vst [vmem:[#allocation25_spill] sm:$0xff] %v5179_v58  ;;  %v5195_v3 = vld [vmem:[#allocation2 + $0x90] sm:$0xff] }
  0xb3   : > { %923 = vrot.lane.b32.xlu1 %v5177_v0, %s4721_s27  ;;  %929 = vrot.lane.b32.xlu0 %v5183_v37, %s4721_s27  ;;  %7778 = vst [vmem:[#allocation30_spill] sm:$0xff] %v5195_v3  ;;  %v5201_v0 = vld [vmem:[#allocation2 + $0x80] sm:$0xff] }
  0xb4   : > { %7780 = vst [vmem:[#allocation32_spill] sm:$0xff] %v5201_v0 }
  0xb5   : > { %v5187_v33 = vpop.permute.xlu1 %683  ;;  %v5191_v39 = vpop.permute.xlu0 %689 }
  0xb6   : > { %7775 = vst [vmem:[#allocation27_spill] sm:$0xff] %v5187_v33  ;;  %7777 = vst [vmem:[#allocation29_spill] sm:$0xff] %v5191_v39  ;;  %v5207_v33 = vld [vmem:[#allocation2 + $0xa8] sm:$0xff] }
  0xb7   : > { %927 = vrot.lane.b32.xlu1 %v5189_v62, %s4721_s27  ;;  %933 = vrot.lane.b32.xlu0 %v5195_v3, %s4721_s27  ;;  %7782 = vst [vmem:[#allocation34_spill] sm:$0xff] %v5207_v33  ;;  %v5213_v62 = vld [vmem:[#allocation2 + $0x98] sm:$0xff] }
  0xb8   : > { %7784 = vst [vmem:[#allocation36_spill] sm:$0xff] %v5213_v62 }
  0xb9   : > { %v5199_v58 = vpop.permute.xlu1 %687  ;;  %v5203_v36 = vpop.permute.xlu0 %693 }
  0xba   : > { %7779 = vst [vmem:[#allocation31_spill] sm:$0xff] %v5199_v58  ;;  %7781 = vst [vmem:[#allocation33_spill] sm:$0xff] %v5203_v36  ;;  %v5219_v58 = vld [vmem:[#allocation2 + $0xc0] sm:$0xff] }
  0xbb   : > { %931 = vrot.lane.b32.xlu1 %v5201_v0, %s4721_s27  ;;  %937 = vrot.lane.b32.xlu0 %v5207_v33, %s4721_s27  ;;  %7786 = vst [vmem:[#allocation38_spill] sm:$0xff] %v5219_v58  ;;  %v5225_v0 = vld [vmem:[#allocation2 + $0xb0] sm:$0xff] }
  0xbc   : > { %7788 = vst [vmem:[#allocation40_spill] sm:$0xff] %v5225_v0 }
  0xbd   : > { %v5211_v39 = vpop.permute.xlu1 %691  ;;  %v5215_v37 = vpop.permute.xlu0 %697 }
  0xbe   : > { %7783 = vst [vmem:[#allocation35_spill] sm:$0xff] %v5211_v39  ;;  %7785 = vst [vmem:[#allocation37_spill] sm:$0xff] %v5215_v37  ;;  %v5231_v39 = vld [vmem:[#allocation2 + $0xd8] sm:$0xff] }
  0xbf   : > { %935 = vrot.lane.b32.xlu1 %v5213_v62, %s4721_s27  ;;  %941 = vrot.lane.b32.xlu0 %v5219_v58, %s4721_s27  ;;  %7790 = vst [vmem:[#allocation42_spill] sm:$0xff] %v5231_v39  ;;  %v5237_v62 = vld [vmem:[#allocation2 + $0xc8] sm:$0xff] }
  0xc0   : > { %7792 = vst [vmem:[#allocation44_spill] sm:$0xff] %v5237_v62 }
  0xc1   : > { %v5223_v36 = vpop.permute.xlu1 %695  ;;  %v5227_v3 = vpop.permute.xlu0 %701 }
  0xc2   : > { %7787 = vst [vmem:[#allocation39_spill] sm:$0xff] %v5223_v36  ;;  %7789 = vst [vmem:[#allocation41_spill] sm:$0xff] %v5227_v3  ;;  %v5243_v36 = vld [vmem:[#allocation2 + $0xf0] sm:$0xff] }
  0xc3   : > { %939 = vrot.lane.b32.xlu1 %v5225_v0, %s4721_s27  ;;  %945 = vrot.lane.b32.xlu0 %v5231_v39, %s4721_s27  ;;  %7794 = vst [vmem:[#allocation46_spill] sm:$0xff] %v5243_v36  ;;  %v5249_v0 = vld [vmem:[#allocation2 + $0xe0] sm:$0xff] }
  0xc4   : > { %7796 = vst [vmem:[#allocation48_spill] sm:$0xff] %v5249_v0 }
  0xc5   : > { %v5235_v37 = vpop.permute.xlu1 %699  ;;  %v5239_v33 = vpop.permute.xlu0 %705 }
  0xc6   : > { %7791 = vst [vmem:[#allocation43_spill] sm:$0xff] %v5235_v37  ;;  %7793 = vst [vmem:[#allocation45_spill] sm:$0xff] %v5239_v33  ;;  %v5255_v37 = vld [vmem:[#allocation2 + $0x108] sm:$0xff] }
  0xc7   : > { %943 = vrot.lane.b32.xlu1 %v5237_v62, %s4721_s27  ;;  %949 = vrot.lane.b32.xlu0 %v5243_v36, %s4721_s27  ;;  %7798 = vst [vmem:[#allocation50_spill] sm:$0xff] %v5255_v37  ;;  %v5261_v62 = vld [vmem:[#allocation2 + $0xf8] sm:$0xff] }
  0xc8   : > { %7800 = vst [vmem:[#allocation52_spill] sm:$0xff] %v5261_v62 }
  0xc9   : > { %v5247_v3 = vpop.permute.xlu1 %703  ;;  %v5251_v58 = vpop.permute.xlu0 %709 }
  0xca   : > { %7795 = vst [vmem:[#allocation47_spill] sm:$0xff] %v5247_v3  ;;  %7797 = vst [vmem:[#allocation49_spill] sm:$0xff] %v5251_v58  ;;  %v5267_v3 = vld [vmem:[#allocation2 + $0x120] sm:$0xff] }
  0xcb   : > { %947 = vrot.lane.b32.xlu1 %v5249_v0, %s4721_s27  ;;  %953 = vrot.lane.b32.xlu0 %v5255_v37, %s4721_s27  ;;  %7802 = vst [vmem:[#allocation54_spill] sm:$0xff] %v5267_v3  ;;  %v5273_v0 = vld [vmem:[#allocation2 + $0x110] sm:$0xff] }
  0xcc   : > { %7804 = vst [vmem:[#allocation56_spill] sm:$0xff] %v5273_v0 }
  0xcd   : > { %v5259_v33 = vpop.permute.xlu1 %707  ;;  %v5263_v39 = vpop.permute.xlu0 %713 }
  0xce   : > { %7799 = vst [vmem:[#allocation51_spill] sm:$0xff] %v5259_v33  ;;  %7801 = vst [vmem:[#allocation53_spill] sm:$0xff] %v5263_v39  ;;  %v5279_v33 = vld [vmem:[#allocation2 + $0x138] sm:$0xff] }
  0xcf   : > { %951 = vrot.lane.b32.xlu1 %v5261_v62, %s4721_s27  ;;  %957 = vrot.lane.b32.xlu0 %v5267_v3, %s4721_s27  ;;  %7806 = vst [vmem:[#allocation58_spill] sm:$0xff] %v5279_v33  ;;  %v5285_v62 = vld [vmem:[#allocation2 + $0x128] sm:$0xff] }
  0xd0   : > { %7808 = vst [vmem:[#allocation60_spill] sm:$0xff] %v5285_v62 }
  0xd1   : > { %v5271_v58 = vpop.permute.xlu1 %711  ;;  %v5275_v36 = vpop.permute.xlu0 %717 }
  0xd2   : > { %7803 = vst [vmem:[#allocation55_spill] sm:$0xff] %v5271_v58  ;;  %7805 = vst [vmem:[#allocation57_spill] sm:$0xff] %v5275_v36  ;;  %v5291_v58 = vld [vmem:[#allocation2 + $0x150] sm:$0xff] }
  0xd3   : > { %955 = vrot.lane.b32.xlu1 %v5273_v0, %s4721_s27  ;;  %961 = vrot.lane.b32.xlu0 %v5279_v33, %s4721_s27  ;;  %7810 = vst [vmem:[#allocation62_spill] sm:$0xff] %v5291_v58  ;;  %v5297_v0 = vld [vmem:[#allocation2 + $0x140] sm:$0xff] }
  0xd4   : > { %7812 = vst [vmem:[#allocation64_spill] sm:$0xff] %v5297_v0  ;;  %v5311_v33 = vld [vmem:[#allocation2 + $0x180] sm:$0xff] }
  0xd5   : > { %v5283_v39 = vpop.permute.xlu1 %715  ;;  %v5287_v37 = vpop.permute.xlu0 %785 }
  0xd6   : > { %7807 = vst [vmem:[#allocation59_spill] sm:$0xff] %v5283_v39  ;;  %7809 = vst [vmem:[#allocation61_spill] sm:$0xff] %v5287_v37  ;;  %v5303_v39 = vld [vmem:[#allocation2 + $0x168] sm:$0xff] }
  0xd7   : > { %959 = vrot.lane.b32.xlu1 %v5285_v62, %s4721_s27  ;;  %965 = vrot.lane.b32.xlu0 %v5291_v58, %s4721_s27  ;;  %v5309_v62 = vld [vmem:[#allocation2 + $0x158] sm:$0xff] }
  0xd8   : > { %7815 = vst [vmem:[#allocation67_spill] sm:$0xff] %v5309_v62 }
  0xd9   : > { %v5295_v36 = vpop.permute.xlu1 %719  ;;  %v5299_v3 = vpop.permute.xlu0 %789 }
  0xda   : > { %7811 = vst [vmem:[#allocation63_spill] sm:$0xff] %v5295_v36  ;;  %7813 = vst [vmem:[#allocation65_spill] sm:$0xff] %v5299_v3  ;;  %v5321_v3 = vld [vmem:[#allocation2 + $0x170] sm:$0xff] }
  0xdb   : > { %963 = vrot.lane.b32.xlu1 %v5297_v0, %s4721_s27  ;;  %969 = vrot.lane.b32.xlu0 %v5303_v39, %s4721_s27 }
  0xdd   : > { %v5307_v37 = vpop.permute.xlu1 %787  ;;  %v5313_v58 = vpop.permute.xlu0 %793 }
  0xde   : > { %7814 = vst [vmem:[#allocation66_spill] sm:$0xff] %v5307_v37  ;;  %7816 = vst [vmem:[#allocation68_spill] sm:$0xff] %v5313_v58  ;;  %v5327_v37 = vld [vmem:[#allocation2 + $0x188] sm:$0xff] }
  0xdf   : > { %967 = vrot.lane.b32.xlu1 %v5309_v62, %s4721_s27  ;;  %973 = vrot.lane.b32.xlu0 %v5311_v33, %s4721_s27 }
  0xe1   : > { %v5319_v36 = vpop.permute.xlu1 %791  ;;  %v5323_v0 = vpop.permute.xlu0 %797 }
  0xe2   : > { %7817 = vst [vmem:[#allocation69_spill] sm:$0xff] %v5319_v36  ;;  %7818 = vst [vmem:[#allocation70_spill] sm:$0xff] %v5323_v0 }
  0xe3   : > { %971 = vrot.lane.b32.xlu1 %v5321_v3, %s4721_s27  ;;  %1041 = vrot.lane.b32.xlu0 %v4868_v25, %s4722_s28 }
  0xe5   : > { %v5331_v58 = vpop.permute.xlu1 %795  ;;  %v5333_v62 = vpop.permute.xlu0 %801 }
  0xe6   : > { %7819 = vst [vmem:[#allocation71_spill] sm:$0xff] %v5331_v58  ;;  %7820 = vst [vmem:[#allocation72_spill] sm:$0xff] %v5333_v62 }
  0xe7   : > { %975 = vrot.lane.b32.xlu1 %v5327_v37, %s4721_s27  ;;  %1045 = vrot.lane.b32.xlu0 %v4870_v26, %s4722_s28 }
  0xe9   : > { %v5339_v0 = vpop.permute.xlu1 %799  ;;  %v5341_v36 = vpop.permute.xlu0 %805 }
  0xeb   : > { %1043 = vrot.lane.b32.xlu1 %v4877_v27, %s4722_s28  ;;  %1049 = vrot.lane.b32.xlu0 %v4885_v30, %s4722_s28 }
  0xed   : > { %v5347_v25 = vpop.permute.xlu1 %803  ;;  %v5349_v58 = vpop.permute.xlu0 %809 }
  0xee   : > { %7821 = vst [vmem:[#allocation73_spill] sm:$0xff] %v5349_v58 }
  0xef   : > { %1047 = vrot.lane.b32.xlu1 %v4889_v31, %s4722_s28  ;;  %1053 = vrot.lane.b32.xlu0 %v4893_v32, %s4722_s28 }
  0xf1   : > { %v5355_v26 = vpop.permute.xlu1 %807  ;;  %v5357_v62 = vpop.permute.xlu0 %813 }
  0xf2   : > { %7822 = vst [vmem:[#allocation74_spill] sm:$0xff] %v5355_v26  ;;  %7823 = vst [vmem:[#allocation75_spill] sm:$0xff] %v5357_v62  ;;  %v624_v26 = vld [vmem:[#allocation2 + $0x1a2] sm:$0xff] }
  0xf3   : > { %1051 = vrot.lane.b32.xlu1 %v4905_v38, %s4722_s28  ;;  %1057 = vrot.lane.b32.xlu0 %v4913_v40, %s4722_s28 }
  0xf5   : > { %v5363_v27 = vpop.permute.xlu1 %811  ;;  %v5365_v30 = vpop.permute.xlu0 %817 }
  0xf6   : > { %7824 = vst [vmem:[#allocation76_spill] sm:$0xff] %v5363_v27  ;;  %7825 = vst [vmem:[#allocation77_spill] sm:$0xff] %v5365_v30  ;;  %v597_v30 = vld [vmem:[#allocation2 + $0x62] sm:$0xff] }
  0xf7   : > { %1055 = vrot.lane.b32.xlu1 %v4917_v41, %s4722_s28  ;;  %1061 = vrot.lane.b32.xlu0 %v4921_v42, %s4722_s28 }
  0xf9   : > { %v5371_v31 = vpop.permute.xlu1 %815  ;;  %v5373_v32 = vpop.permute.xlu0 %821 }
  0xfa   : > { %7826 = vst [vmem:[#allocation78_spill] sm:$0xff] %v5371_v31  ;;  %7827 = vst [vmem:[#allocation79_spill] sm:$0xff] %v5373_v32  ;;  %v567_v31 = vld [vmem:[#allocation2 + $0x79] sm:$0xff] }
  0xfb   : > { %1059 = vrot.lane.b32.xlu1 %v4925_v43, %s4722_s28  ;;  %1065 = vrot.lane.b32.xlu0 %v4929_v44, %s4722_s28 }
  0xfd   : > { %v5379_v38 = vpop.permute.xlu1 %819  ;;  %v5381_v40 = vpop.permute.xlu0 %825 }
  0xfe   : > { %7828 = vst [vmem:[#allocation80_spill] sm:$0xff] %v5379_v38  ;;  %7829 = vst [vmem:[#allocation81_spill] sm:$0xff] %v5381_v40  ;;  %v1916_v38 = vld [vmem:[%s7707_s1 + $0x20] sm:$0xf] }
  0xff   : > { %1063 = vrot.lane.b32.xlu1 %v4933_v45, %s4722_s28  ;;  %1069 = vrot.lane.b32.xlu0 %v4937_v46, %s4722_s28 }
 0x101   : > { %v5387_v41 = vpop.permute.xlu1 %823  ;;  %v5389_v42 = vpop.permute.xlu0 %829 }
 0x102   : > { %7830 = vst [vmem:[#allocation82_spill] sm:$0xff] %v5387_v41  ;;  %7831 = vst [vmem:[#allocation83_spill] sm:$0xff] %v5389_v42 }
 0x103   : > { %1067 = vrot.lane.b32.xlu1 %v4941_v47, %s4722_s28  ;;  %1073 = vrot.lane.b32.xlu0 %v4945_v48, %s4722_s28 }
 0x105   : > { %v5395_v43 = vpop.permute.xlu1 %827  ;;  %v5397_v44 = vpop.permute.xlu0 %833 }
 0x106   : > { %7832 = vst [vmem:[#allocation84_spill] sm:$0xff] %v5395_v43  ;;  %7833 = vst [vmem:[#allocation85_spill] sm:$0xff] %v5397_v44  ;;  %v7872_v44 = vld [vmem:[#allocation24_spill] sm:$0xff] }
 0x107   : > { %1071 = vrot.lane.b32.xlu1 %v4949_v49, %s4722_s28  ;;  %1077 = vrot.lane.b32.xlu0 %v4953_v50, %s4722_s28 }
 0x109   : > { %v5403_v45 = vpop.permute.xlu1 %831  ;;  %v5405_v46 = vpop.permute.xlu0 %837 }
 0x10a   : > { %7834 = vst [vmem:[#allocation86_spill] sm:$0xff] %v5403_v45  ;;  %7835 = vst [vmem:[#allocation87_spill] sm:$0xff] %v5405_v46 }
 0x10b   : > { %1075 = vrot.lane.b32.xlu1 %v4957_v51, %s4722_s28  ;;  %1081 = vrot.lane.b32.xlu0 %v4961_v52, %s4722_s28 }
 0x10d   : > { %v5411_v47 = vpop.permute.xlu1 %835  ;;  %v5413_v48 = vpop.permute.xlu0 %841 }
 0x10e   : > { %7836 = vst [vmem:[#allocation88_spill] sm:$0xff] %v5411_v47  ;;  %7837 = vst [vmem:[#allocation89_spill] sm:$0xff] %v5413_v48  ;;  %v7870_v47 = vld [vmem:[#allocation22_spill] sm:$0xff] }
 0x10f   : > { %1079 = vrot.lane.b32.xlu1 %v4965_v53, %s4722_s28  ;;  %1085 = vrot.lane.b32.xlu0 %v4969_v54, %s4722_s28 }
 0x111   : > { %v5419_v49 = vpop.permute.xlu1 %839  ;;  %v5421_v50 = vpop.permute.xlu0 %845 }
 0x112   : > { %7838 = vst [vmem:[#allocation90_spill] sm:$0xff] %v5419_v49  ;;  %7839 = vst [vmem:[#allocation91_spill] sm:$0xff] %v5421_v50 }
 0x113   : > { %1083 = vrot.lane.b32.xlu1 %v4973_v55, %s4722_s28  ;;  %1089 = vrot.lane.b32.xlu0 %v4977_v56, %s4722_s28  ;;  %v5445_v56 = vld [vmem:[#allocation2 + $0x181] sm:$0xff] }
 0x115   : > { %v5427_v51 = vpop.permute.xlu1 %843  ;;  %v5429_v52 = vpop.permute.xlu0 %913 }
 0x116   : > { %7840 = vst [vmem:[#allocation92_spill] sm:$0xff] %v5427_v51 }
 0x117   : > { %1087 = vrot.lane.b32.xlu1 %v4981_v57, %s4722_s28  ;;  %1093 = vrot.lane.b32.xlu0 %v4987_v59, %s4722_s28 }
 0x119   : > { %v5435_v53 = vpop.permute.xlu1 %847  ;;  %v5437_v54 = vpop.permute.xlu0 %917 }
 0x11a   : > { %7841 = vst [vmem:[#allocation93_spill] sm:$0xff] %v5435_v53 }
 0x11b   : > { %1091 = vrot.lane.b32.xlu1 %v4991_v60, %s4722_s28  ;;  %1097 = vrot.lane.b32.xlu0 %v4995_v61, %s4722_s28  ;;  %v5459_v60 = vld [vmem:[#allocation2 + $0x189] sm:$0xff] }
 0x11d   : > { %v5443_v55 = vpop.permute.xlu1 %915  ;;  %v5447_v50 = vpop.permute.xlu0 %921 }
 0x11f   : > { %1095 = vrot.lane.b32.xlu1 %v5001_v63, %s4722_s28  ;;  %1101 = vrot.lane.b32.xlu0 %v5445_v56, %s4722_s28 }
 0x121   : > { %v5453_v57 = vpop.permute.xlu1 %919  ;;  %v5455_v59 = vpop.permute.xlu0 %925 }
 0x123   : > { %1099 = vrot.lane.b32.xlu1 %v5007_v1, %s4722_s28  ;;  %1169 = vrot.lane.b32.xlu0 %v5010_v2, %s4723_s29 }
 0x125   : > { %v5463_v61 = vpop.permute.xlu1 %923  ;;  %v5465_v53 = vpop.permute.xlu0 %929 }
 0x127   : > { %1103 = vrot.lane.b32.xlu1 %v5459_v60, %s4722_s28  ;;  %1173 = vrot.lane.b32.xlu0 %v5016_v4, %s4723_s29 }
 0x129   : > { %v5471_v63 = vpop.permute.xlu1 %927  ;;  %v5473_v51 = vpop.permute.xlu0 %933 }
 0x12b   : > { %1171 = vrot.lane.b32.xlu1 %v5019_v5, %s4723_s29  ;;  %1177 = vrot.lane.b32.xlu0 %v5023_v6, %s4723_s29 }
 0x12d   : > { %v5479_v1 = vpop.permute.xlu1 %931  ;;  %v5481_v2 = vpop.permute.xlu0 %937 }
 0x12e   : > { %7842 = vst [vmem:[#allocation94_spill] sm:$0xff] %v5481_v2 }
 0x12f   : > { %1175 = vrot.lane.b32.xlu1 %v5027_v7, %s4723_s29  ;;  %1181 = vrot.lane.b32.xlu0 %v5031_v8, %s4723_s29 }
 0x131   : > { %v5487_v4 = vpop.permute.xlu1 %935  ;;  %v5489_v48 = vpop.permute.xlu0 %941 }
 0x132   : > { %7843 = vst [vmem:[#allocation95_spill] sm:$0xff] %v5487_v4  ;;  %7844 = vst [vmem:[#allocation96_spill] sm:$0xff] %v5489_v48 }
 0x133   : > { %1179 = vrot.lane.b32.xlu1 %v5035_v9, %s4723_s29  ;;  %1185 = vrot.lane.b32.xlu0 %v5039_v10, %s4723_s29 }
 0x135   : > { %v5495_v5 = vpop.permute.xlu1 %939  ;;  %v5497_v6 = vpop.permute.xlu0 %945 }
 0x136   : > { %7845 = vst [vmem:[#allocation97_spill] sm:$0xff] %v5495_v5  ;;  %7846 = vst [vmem:[#allocation98_spill] sm:$0xff] %v5497_v6  ;;  %v579_v5 = vld [vmem:[#allocation2 + $0x109] sm:$0xff] }
 0x137   : > { %1183 = vrot.lane.b32.xlu1 %v5043_v11, %s4723_s29  ;;  %1189 = vrot.lane.b32.xlu0 %v5047_v12, %s4723_s29 }
 0x139   : > { %v5503_v7 = vpop.permute.xlu1 %943  ;;  %v5505_v8 = vpop.permute.xlu0 %949 }
 0x13a   : > { %7847 = vst [vmem:[#allocation99_spill] sm:$0xff] %v5503_v7  ;;  %7848 = vst [vmem:[#allocation100_spill] sm:$0xff] %v5505_v8 }
 0x13b   : > { %1187 = vrot.lane.b32.xlu1 %v5051_v13, %s4723_s29  ;;  %1193 = vrot.lane.b32.xlu0 %v5055_v14, %s4723_s29 }
 0x13d   : > { %v5511_v9 = vpop.permute.xlu1 %947  ;;  %v5513_v10 = vpop.permute.xlu0 %953 }
 0x13e   : > { %7849 = vst [vmem:[#allocation101_spill] sm:$0xff] %v5511_v9  ;;  %7850 = vst [vmem:[#allocation102_spill] sm:$0xff] %v5513_v10  ;;  %v7884_v10 = vld [vmem:[#allocation36_spill] sm:$0xff] }
 0x13f   : > { %1191 = vrot.lane.b32.xlu1 %v5059_v15, %s4723_s29  ;;  %1197 = vrot.lane.b32.xlu0 %v5063_v16, %s4723_s29  ;;  %v562_v9 = vld [vmem:[#allocation2 + $0x39] sm:$0xff] }
 0x141   : > { %v5519_v11 = vpop.permute.xlu1 %951  ;;  %v5521_v12 = vpop.permute.xlu0 %957 }
 0x142   : > { %7851 = vst [vmem:[#allocation103_spill] sm:$0xff] %v5519_v11  ;;  %7852 = vst [vmem:[#allocation104_spill] sm:$0xff] %v5521_v12  ;;  %v7876_v12 = vld [vmem:[#allocation28_spill] sm:$0xff] }
 0x143   : > { %1195 = vrot.lane.b32.xlu1 %v5067_v17, %s4723_s29  ;;  %1201 = vrot.lane.b32.xlu0 %v5071_v18, %s4723_s29  ;;  %v7888_v11 = vld [vmem:[#allocation40_spill] sm:$0xff] }
 0x145   : > { %v5527_v13 = vpop.permute.xlu1 %955  ;;  %v5529_v14 = vpop.permute.xlu0 %961 }
 0x146   : > { %7853 = vst [vmem:[#allocation105_spill] sm:$0xff] %v5527_v13  ;;  %7854 = vst [vmem:[#allocation106_spill] sm:$0xff] %v5529_v14  ;;  %v7880_v13 = vld [vmem:[#allocation32_spill] sm:$0xff] }
 0x147   : > { %1199 = vrot.lane.b32.xlu1 %v5075_v19, %s4723_s29  ;;  %1205 = vrot.lane.b32.xlu0 %v5079_v20, %s4723_s29 }
 0x149   : > { %v5535_v15 = vpop.permute.xlu1 %959  ;;  %v5537_v16 = vpop.permute.xlu0 %965 }
 0x14a   : > { %7855 = vst [vmem:[#allocation107_spill] sm:$0xff] %v5535_v15  ;;  %7856 = vst [vmem:[#allocation108_spill] sm:$0xff] %v5537_v16  ;;  %v7873_v15 = vld [vmem:[#allocation26_spill] sm:$0xff] }
 0x14b   : > { %1203 = vrot.lane.b32.xlu1 %v5083_v21, %s4723_s29  ;;  %1209 = vrot.lane.b32.xlu0 %v5087_v22, %s4723_s29 }
 0x14d   : > { %v5543_v17 = vpop.permute.xlu1 %963  ;;  %v5545_v18 = vpop.permute.xlu0 %969 }
 0x14e   : > { %7857 = vst [vmem:[#allocation109_spill] sm:$0xff] %v5543_v17  ;;  %7858 = vst [vmem:[#allocation110_spill] sm:$0xff] %v5545_v18 }
 0x14f   : > { %1207 = vrot.lane.b32.xlu1 %v5091_v23, %s4723_s29  ;;  %1213 = vrot.lane.b32.xlu0 %v5095_v24, %s4723_s29 }
 0x151   : > { %v5551_v19 = vpop.permute.xlu1 %967  ;;  %v5553_v20 = vpop.permute.xlu0 %973 }
 0x152   : > { %7859 = vst [vmem:[#allocation111_spill] sm:$0xff] %v5551_v19  ;;  %7860 = vst [vmem:[#allocation112_spill] sm:$0xff] %v5553_v20  ;;  %v7863_v20 = vld [vmem:[#allocation5_spill] sm:$0xff]  ;;  %v7867_v19 = vld [vmem:[#allocation15_spill] sm:$0xff] }
 0x153   : > { %1211 = vrot.lane.b32.xlu1 %v5099_v28, %s4723_s29  ;;  %1217 = vrot.lane.b32.xlu0 %v5103_v29, %s4723_s29  ;;  %v7864_v28 = vld [vmem:[#allocation7_spill] sm:$0xff] }
 0x155   : > { %v5559_v21 = vpop.permute.xlu1 %971  ;;  %v5561_v22 = vpop.permute.xlu0 %1041 }
 0x156   : > { %7861 = vst [vmem:[#allocation113_spill] sm:$0xff] %v5559_v21  ;;  %v5577_v21 = vld [vmem:[#allocation2 + $0x182] sm:$0xff] }
 0x157   : > { %1215 = vrot.lane.b32.xlu1 %v5109_v34, %s4723_s29  ;;  %1221 = vrot.lane.b32.xlu0 %v5113_v35, %s4723_s29  ;;  %v7865_v34 = vld [vmem:[#allocation9_spill] sm:$0xff] }
 0x159   : > { %v5567_v23 = vpop.permute.xlu1 %975  ;;  %v5569_v24 = vpop.permute.xlu0 %1045 }
 0x15a   : > { %7862 = vst [vmem:[#allocation114_spill] sm:$0xff] %v5567_v23 }
 0x15b   : > { %1219 = vrot.lane.b32.xlu1 %v7863_v20, %s4723_s29  ;;  %1225 = vrot.lane.b32.xlu0 %v7864_v28, %s4723_s29  ;;  %v7866_v20 = vld [vmem:[#allocation12_spill] sm:$0xff]  ;;  %v5591_v28 = vld [vmem:[#allocation2 + $0x18a] sm:$0xff] }
 0x15d   : > { %v5575_v29 = vpop.permute.xlu1 %1043  ;;  %v5579_v18 = vpop.permute.xlu0 %1049 }
 0x15f   : > { %1223 = vrot.lane.b32.xlu1 %v7865_v34, %s4723_s29  ;;  %1229 = vrot.lane.b32.xlu0 %v5577_v21, %s4723_s29  ;;  %v7868_v34 = vld [vmem:[#allocation18_spill] sm:$0xff] }
 0x161   : > { %v5585_v35 = vpop.permute.xlu1 %1047  ;;  %v5587_v23 = vpop.permute.xlu0 %1053 }
 0x163   : > { %1227 = vrot.lane.b32.xlu1 %v7866_v20, %s4723_s29  ;;  %1297 = vrot.lane.b32.xlu0 %v7867_v19, %s4724_s30  ;;  %v7869_v20 = vld [vmem:[#allocation20_spill] sm:$0xff] }
 0x165   : > { %v5595_v49 = vpop.permute.xlu1 %1051  ;;  %v5597_v16 = vpop.permute.xlu0 %1057 }
 0x167   : > { %1231 = vrot.lane.b32.xlu1 %v5591_v28, %s4723_s29  ;;  %1301 = vrot.lane.b32.xlu0 %v7868_v34, %s4724_s30 }
 0x169   : > { %v5603_v46 = vpop.permute.xlu1 %1055  ;;  %v5605_v17 = vpop.permute.xlu0 %1061 }
 0x16b   : > { %1299 = vrot.lane.b32.xlu1 %v7869_v20, %s4724_s30  ;;  %1305 = vrot.lane.b32.xlu0 %v7870_v47, %s4724_s30  ;;  %v7877_v20 = vld [vmem:[#allocation30_spill] sm:$0xff] }
 0x16d   : > { %v5611_v19 = vpop.permute.xlu1 %1059  ;;  %v5613_v14 = vpop.permute.xlu0 %1065 }
 0x16e   : > { %7871 = vst [vmem:[#allocation5_spill] sm:$0xff] %v5613_v14 }
 0x16f   : > { %1303 = vrot.lane.b32.xlu1 %v7872_v44, %s4724_s30  ;;  %1309 = vrot.lane.b32.xlu0 %v7873_v15, %s4724_s30  ;;  %v7881_v44 = vld [vmem:[#allocation34_spill] sm:$0xff] }
 0x171   : > { %v5619_v34 = vpop.permute.xlu1 %1063  ;;  %v5621_v45 = vpop.permute.xlu0 %1069 }
 0x172   : > { %7874 = vst [vmem:[#allocation7_spill] sm:$0xff] %v5619_v34  ;;  %7875 = vst [vmem:[#allocation9_spill] sm:$0xff] %v5621_v45  ;;  %v613_v34 = vld [vmem:[#allocation2 + $0x122] sm:$0xff] }
 0x173   : > { %1307 = vrot.lane.b32.xlu1 %v7876_v12, %s4724_s30  ;;  %1313 = vrot.lane.b32.xlu0 %v7877_v20, %s4724_s30  ;;  %v7885_v12 = vld [vmem:[#allocation38_spill] sm:$0xff] }
 0x175   : > { %v5627_v47 = vpop.permute.xlu1 %1067  ;;  %v5629_v42 = vpop.permute.xlu0 %1073 }
 0x176   : > { %7878 = vst [vmem:[#allocation12_spill] sm:$0xff] %v5627_v47  ;;  %7879 = vst [vmem:[#allocation15_spill] sm:$0xff] %v5629_v42  ;;  %v609_v47 = vld [vmem:[#allocation2 + $0xf2] sm:$0xff] }
 0x177   : > { %1311 = vrot.lane.b32.xlu1 %v7880_v13, %s4724_s30  ;;  %1317 = vrot.lane.b32.xlu0 %v7881_v44, %s4724_s30  ;;  %v7889_v13 = vld [vmem:[#allocation42_spill] sm:$0xff] }
 0x179   : > { %v5635_v15 = vpop.permute.xlu1 %1071  ;;  %v5637_v43 = vpop.permute.xlu0 %1077 }
 0x17a   : > { %7882 = vst [vmem:[#allocation18_spill] sm:$0xff] %v5635_v15  ;;  %7883 = vst [vmem:[#allocation20_spill] sm:$0xff] %v5637_v43  ;;  %v7892_v43 = vld [vmem:[#allocation44_spill] sm:$0xff] }
 0x17b   : > { %1315 = vrot.lane.b32.xlu1 %v7884_v10, %s4724_s30  ;;  %1321 = vrot.lane.b32.xlu0 %v7885_v12, %s4724_s30  ;;  %v7893_v10 = vld [vmem:[#allocation46_spill] sm:$0xff] }
 0x17d   : > { %v5643_v20 = vpop.permute.xlu1 %1075  ;;  %v5645_v40 = vpop.permute.xlu0 %1081 }
 0x17e   : > { %7886 = vst [vmem:[#allocation22_spill] sm:$0xff] %v5643_v20  ;;  %7887 = vst [vmem:[#allocation24_spill] sm:$0xff] %v5645_v40  ;;  %v7896_v40 = vld [vmem:[#allocation48_spill] sm:$0xff] }
 0x17f   : > { %1319 = vrot.lane.b32.xlu1 %v7888_v11, %s4724_s30  ;;  %1325 = vrot.lane.b32.xlu0 %v7889_v13, %s4724_s30  ;;  %v7897_v11 = vld [vmem:[#allocation50_spill] sm:$0xff]  ;;  %v1915_v20 = vld [vmem:[%s7707_s1 + $0x18] sm:$0xff] }
 0x181   : > { %v5651_v44 = vpop.permute.xlu1 %1079  ;;  %v5653_v41 = vpop.permute.xlu0 %1085 }
 0x182   : > { %7890 = vst [vmem:[#allocation26_spill] sm:$0xff] %v5651_v44  ;;  %7891 = vst [vmem:[#allocation28_spill] sm:$0xff] %v5653_v41  ;;  %v7900_v41 = vld [vmem:[#allocation52_spill] sm:$0xff] }
 0x183   : > { %1323 = vrot.lane.b32.xlu1 %v7892_v43, %s4724_s30  ;;  %1329 = vrot.lane.b32.xlu0 %v7893_v10, %s4724_s30  ;;  %v7901_v43 = vld [vmem:[#allocation54_spill] sm:$0xff] }
 0x185   : > { %v5659_v12 = vpop.permute.xlu1 %1083  ;;  %v5661_v8 = vpop.permute.xlu0 %1089 }
 0x186   : > { %7894 = vst [vmem:[#allocation30_spill] sm:$0xff] %v5659_v12  ;;  %7895 = vst [vmem:[#allocation32_spill] sm:$0xff] %v5661_v8  ;;  %v7904_v8 = vld [vmem:[#allocation56_spill] sm:$0xff] }
 0x187   : > { %1327 = vrot.lane.b32.xlu1 %v7896_v40, %s4724_s30  ;;  %1333 = vrot.lane.b32.xlu0 %v7897_v11, %s4724_s30  ;;  %v7905_v40 = vld [vmem:[#allocation58_spill] sm:$0xff] }
 0x189   : > { %v5667_v13 = vpop.permute.xlu1 %1087  ;;  %v5669_v44 = vpop.permute.xlu0 %1093 }
 0x18a   : > { %7898 = vst [vmem:[#allocation34_spill] sm:$0xff] %v5667_v13  ;;  %7899 = vst [vmem:[#allocation36_spill] sm:$0xff] %v5669_v44  ;;  %v7908_v44 = vld [vmem:[#allocation60_spill] sm:$0xff] }
 0x18b   : > { %1331 = vrot.lane.b32.xlu1 %v7900_v41, %s4724_s30  ;;  %1337 = vrot.lane.b32.xlu0 %v7901_v43, %s4724_s30  ;;  %v7909_v41 = vld [vmem:[#allocation62_spill] sm:$0xff] }
 0x18d   : > { %v5675_v10 = vpop.permute.xlu1 %1091  ;;  %v5677_v12 = vpop.permute.xlu0 %1097 }
 0x18e   : > { %7902 = vst [vmem:[#allocation38_spill] sm:$0xff] %v5675_v10  ;;  %7903 = vst [vmem:[#allocation40_spill] sm:$0xff] %v5677_v12  ;;  %v7911_v12 = vld [vmem:[#allocation64_spill] sm:$0xff] }
 0x18f   : > { %1335 = vrot.lane.b32.xlu1 %v7904_v8, %s4724_s30  ;;  %1341 = vrot.lane.b32.xlu0 %v7905_v40, %s4724_s30 }
 0x191   : > { %v5683_v11 = vpop.permute.xlu1 %1095  ;;  %v5685_v13 = vpop.permute.xlu0 %1101 }
 0x192   : > { %7906 = vst [vmem:[#allocation42_spill] sm:$0xff] %v5683_v11  ;;  %7907 = vst [vmem:[#allocation44_spill] sm:$0xff] %v5685_v13  ;;  %v7913_v13 = vld [vmem:[#allocation67_spill] sm:$0xff] }
 0x193   : > { %1339 = vrot.lane.b32.xlu1 %v7908_v44, %s4724_s30  ;;  %1345 = vrot.lane.b32.xlu0 %v7909_v41, %s4724_s30  ;;  %v559_v41 = vld [vmem:[#allocation2 + $0x198] sm:$0xff]  ;;  %v1914_v11 = vld [vmem:[%s7707_s1 + $0x10] sm:$0xff] }
 0x195   : > { %v5691_v43 = vpop.permute.xlu1 %1099  ;;  %v5693_v10 = vpop.permute.xlu0 %1169 }
 0x196   : > { %7910 = vst [vmem:[#allocation46_spill] sm:$0xff] %v5691_v43  ;;  %v561_v43 = vld [vmem:[#allocation2 + $0x31] sm:$0xff] }
 0x197   : > { %1343 = vrot.lane.b32.xlu1 %v7911_v12, %s4724_s30  ;;  %1349 = vrot.lane.b32.xlu0 %v5303_v39, %s4724_s30  ;;  %v1912_v12 = vld [vmem:[%s7707_s1] sm:$0xff]  ;;  %v1913_v39 = vld [vmem:[%s7707_s1 + $0x8] sm:$0xff] }
 0x199   : > { %v5699_v8 = vpop.permute.xlu1 %1103  ;;  %v5701_v40 = vpop.permute.xlu0 %1173 }
 0x19a   : > { %7912 = vst [vmem:[#allocation48_spill] sm:$0xff] %v5699_v8 }
 0x19b   : > { %1347 = vrot.lane.b32.xlu1 %v7913_v13, %s4724_s30  ;;  %1353 = vrot.lane.b32.xlu0 %v5311_v33, %s4724_s30  ;;  %v4640_v13 = vpack.c.bf16 %v1913_v39, %v1912_v12  ;;  %v563_v39 = vld [vmem:[#allocation2 + $0x49] sm:$0xff] }
 0x19d   : > { %v5707_v44 = vpop.permute.xlu1 %1171  ;;  %v5715_v8 = vpop.permute.xlu0 %1177  ;;  %4641 = vmatprep.subr.bf16.mxu0 %v4640_v13 }
 0x19e   : > { %4643 = vmatpush3.bf16.msra.mxu0 %v4640_v13 }
 0x19f   : > { %1351 = vrot.lane.b32.xlu1 %v5321_v3, %s4724_s30  ;;  %1357 = vrot.lane.b32.xlu0 %v559_v41, %s4724_s30  ;;  %v4644_v3 = vpack.c.bf16 %v1915_v20, %v1914_v11  ;;  %v560_v41 = vld [vmem:[#allocation2 + $0x1a0] sm:$0xff] }
 0x1a0   : > { %v565_v20 = vld [vmem:[#allocation2 + $0x61] sm:$0xff] }
 0x1a1   : > { %v5720_v33 = vpop.permute.xlu1 %1175  ;;  %v5728_v32 = vpop.permute.xlu0 %1181  ;;  %4645 = vmatprep.subr.bf16.mxu0 %v4644_v3 }
 0x1a2   : > { %4647 = vmatpush3.bf16.msra.mxu0 %v4644_v3 }
 0x1a3   : > { %1355 = vrot.lane.b32.xlu1 %v5327_v37, %s4724_s30  ;;  %1425 = vrot.lane.b32.xlu0 %v561_v43, %s4725_s14  ;;  %v564_v43 = vld [vmem:[#allocation2 + $0x51] sm:$0xff] }
 0x1a4   : > { %4532 = vmatprep.subr.msk.mxu0 %vm2021_vm3, %v1916_v38 }
 0x1a5   : > { %v5733_v12 = vpop.permute.xlu1 %1179  ;;  %v5735_v13 = vpop.permute.xlu0 %1185 }
 0x1a6   : > { %4533 = vmatpush3.msk.msra.mxu0 %vm2021_vm3, %v1916_v38  ;;  %v595_v38 = vld [vmem:[#allocation2 + $0x4a] sm:$0xff] }
 0x1a7   : > { %1359 = vrot.lane.b32.xlu1 %v560_v41, %s4724_s30  ;;  %1429 = vrot.lane.b32.xlu0 %v563_v39, %s4725_s14  ;;  %v593_v41 = vld [vmem:[#allocation2 + $0x32] sm:$0xff]  ;;  %v566_v39 = vld [vmem:[#allocation2 + $0x69] sm:$0xff] }
 0x1a9   : > { %v5742_v37 = vpop.permute.xlu1 %1183  ;;  %v5746_v11 = vpop.permute.xlu0 %1189 }
 0x1ab   : > { %1427 = vrot.lane.b32.xlu1 %v562_v9, %s4725_s14  ;;  %1433 = vrot.lane.b32.xlu0 %v565_v20, %s4725_s14  ;;  %v594_v9 = vld [vmem:[#allocation2 + $0x3a] sm:$0xff] }
 0x1ad   : > { %v5750_v3 = vpop.permute.xlu1 %1187  ;;  %v5752_v42 = vpop.permute.xlu0 %1193 }
 0x1ae   : > { %7914 = vst [vmem:[#allocation50_spill] sm:$0xff] %v5752_v42  ;;  %v611_v42 = vld [vmem:[#allocation2 + $0x10a] sm:$0xff] }
 0x1af   : > { %1431 = vrot.lane.b32.xlu1 %v564_v43, %s4725_s14  ;;  %1553 = vrot.lane.b32.xlu0 %v593_v41, %s4726_s17  ;;  %v596_v43 = vld [vmem:[#allocation2 + $0x52] sm:$0xff] }
 0x1b1   : > { %v5756_v6 = vpop.permute.xlu1 %1191  ;;  %v5758_v15 = vpop.permute.xlu0 %1197 }
 0x1b2   : > { %7915 = vst [vmem:[#allocation52_spill] sm:$0xff] %v5756_v6  ;;  %7916 = vst [vmem:[#allocation54_spill] sm:$0xff] %v5758_v15  ;;  %v599_v15 = vld [vmem:[#allocation2 + $0x7a] sm:$0xff] }
 0x1b3   : > { %1435 = vrot.lane.b32.xlu1 %v566_v39, %s4725_s14  ;;  %1557 = vrot.lane.b32.xlu0 %v595_v38, %s4726_s17  ;;  %v598_v39 = vld [vmem:[#allocation2 + $0x6a] sm:$0xff]  ;;  %v581_v6 = vld [vmem:[#allocation2 + $0x121] sm:$0xff] }
 0x1b5   : > { %v5762_v20 = vpop.permute.xlu1 %1195  ;;  %v5764_v7 = vpop.permute.xlu0 %1201 }
 0x1b6   : > { %7917 = vst [vmem:[#allocation56_spill] sm:$0xff] %v5762_v20  ;;  %7918 = vst [vmem:[#allocation58_spill] sm:$0xff] %v5764_v7  ;;  %v569_v7 = vld [vmem:[#allocation2 + $0x91] sm:$0xff] }
 0x1b7   : > { %1555 = vrot.lane.b32.xlu1 %v594_v9, %s4726_s17  ;;  %1561 = vrot.lane.b32.xlu0 %v597_v30, %s4726_s17  ;;  %v568_v9 = vld [vmem:[#allocation2 + $0x81] sm:$0xff] }
 0x1b9   : > { %v5768_v41 = vpop.permute.xlu1 %1199  ;;  %v5770_v45 = vpop.permute.xlu0 %1205 }
 0x1ba   : > { %7919 = vst [vmem:[#allocation60_spill] sm:$0xff] %v5768_v41  ;;  %7920 = vst [vmem:[#allocation62_spill] sm:$0xff] %v5770_v45  ;;  %v601_v45 = vld [vmem:[#allocation2 + $0x92] sm:$0xff] }
 0x1bb   : > { %1559 = vrot.lane.b32.xlu1 %v596_v43, %s4726_s17  ;;  %1437 = vrot.lane.b32.xlu0 %v567_v31, %s4725_s14  ;;  %v600_v43 = vld [vmem:[#allocation2 + $0x82] sm:$0xff] }
 0x1bd   : > { %v5774_v38 = vpop.permute.xlu1 %1203  ;;  %v5776_v20 = vpop.permute.xlu0 %1209 }
 0x1be   : > { %7921 = vst [vmem:[#allocation64_spill] sm:$0xff] %v5774_v38  ;;  %7922 = vst [vmem:[#allocation67_spill] sm:$0xff] %v5776_v20  ;;  %v571_v20 = vld [vmem:[#allocation2 + $0xa9] sm:$0xff] }
 0x1bf   : > { %1563 = vrot.lane.b32.xlu1 %v598_v39, %s4726_s17  ;;  %1565 = vrot.lane.b32.xlu0 %v599_v15, %s4726_s17  ;;  %v570_v39 = vld [vmem:[#allocation2 + $0x99] sm:$0xff] }
 0x1c1   : > { %v5780_v30 = vpop.permute.xlu1 %1207  ;;  %v5782_v41 = vpop.permute.xlu0 %1213 }
 0x1c2   : > { %7923 = vst [vmem:[#allocation115_spill] sm:$0xff] %v5780_v30  ;;  %7924 = vst [vmem:[#allocation116_spill] sm:$0xff] %v5782_v41  ;;  %v603_v41 = vld [vmem:[#allocation2 + $0xaa] sm:$0xff] }
 0x1c3   : > { %1439 = vrot.lane.b32.xlu1 %v568_v9, %s4725_s14  ;;  %1441 = vrot.lane.b32.xlu0 %v569_v7, %s4725_s14  ;;  %v602_v9 = vld [vmem:[#allocation2 + $0x9a] sm:$0xff] }
 0x1c5   : > { %v5786_v31 = vpop.permute.xlu1 %1211  ;;  %v5788_v38 = vpop.permute.xlu0 %1217 }
 0x1c6   : > { %7925 = vst [vmem:[#allocation117_spill] sm:$0xff] %v5786_v31  ;;  %7926 = vst [vmem:[#allocation118_spill] sm:$0xff] %v5788_v38  ;;  %v573_v38 = vld [vmem:[#allocation2 + $0xc1] sm:$0xff] }
 0x1c7   : > { %1567 = vrot.lane.b32.xlu1 %v600_v43, %s4726_s17  ;;  %1569 = vrot.lane.b32.xlu0 %v601_v45, %s4726_s17  ;;  %v572_v43 = vld [vmem:[#allocation2 + $0xb1] sm:$0xff] }
 0x1c9   : > { %v5792_v15 = vpop.permute.xlu1 %1215  ;;  %v5794_v30 = vpop.permute.xlu0 %1221 }
 0x1ca   : > { %7927 = vst [vmem:[#allocation119_spill] sm:$0xff] %v5792_v15  ;;  %7928 = vst [vmem:[#allocation120_spill] sm:$0xff] %v5794_v30  ;;  %v605_v30 = vld [vmem:[#allocation2 + $0xc2] sm:$0xff] }
 0x1cb   : > { %1443 = vrot.lane.b32.xlu1 %v570_v39, %s4725_s14  ;;  %1445 = vrot.lane.b32.xlu0 %v571_v20, %s4725_s14  ;;  %v604_v39 = vld [vmem:[#allocation2 + $0xb2] sm:$0xff] }
 0x1cd   : > { %v5798_v7 = vpop.permute.xlu1 %1219  ;;  %v5800_v31 = vpop.permute.xlu0 %1225 }
 0x1ce   : > { %7929 = vst [vmem:[#allocation121_spill] sm:$0xff] %v5798_v7  ;;  %7930 = vst [vmem:[#allocation122_spill] sm:$0xff] %v5800_v31  ;;  %v575_v31 = vld [vmem:[#allocation2 + $0xd9] sm:$0xff] }
 0x1cf   : > { %1571 = vrot.lane.b32.xlu1 %v602_v9, %s4726_s17  ;;  %1573 = vrot.lane.b32.xlu0 %v603_v41, %s4726_s17  ;;  %v574_v9 = vld [vmem:[#allocation2 + $0xc9] sm:$0xff] }
 0x1d1   : > { %v5804_v45 = vpop.permute.xlu1 %1223  ;;  %v5806_v15 = vpop.permute.xlu0 %1229 }
 0x1d2   : > { %7931 = vst [vmem:[#allocation123_spill] sm:$0xff] %v5804_v45  ;;  %7932 = vst [vmem:[#allocation124_spill] sm:$0xff] %v5806_v15  ;;  %v607_v15 = vld [vmem:[#allocation2 + $0xda] sm:$0xff] }
 0x1d3   : > { %1447 = vrot.lane.b32.xlu1 %v572_v43, %s4725_s14  ;;  %1449 = vrot.lane.b32.xlu0 %v573_v38, %s4725_s14  ;;  %v606_v43 = vld [vmem:[#allocation2 + $0xca] sm:$0xff] }
 0x1d5   : > { %v5810_v20 = vpop.permute.xlu1 %1227  ;;  %v5812_v7 = vpop.permute.xlu0 %1297 }
 0x1d6   : > { %7933 = vst [vmem:[#allocation125_spill] sm:$0xff] %v5810_v20 }
 0x1d7   : > { %1575 = vrot.lane.b32.xlu1 %v604_v39, %s4726_s17  ;;  %1577 = vrot.lane.b32.xlu0 %v605_v30, %s4726_s17  ;;  %v576_v39 = vld [vmem:[#allocation2 + $0xe1] sm:$0xff] }
 0x1d9   : > { %v5816_v41 = vpop.permute.xlu1 %1231  ;;  %v5818_v45 = vpop.permute.xlu0 %1301 }
 0x1da   : > { %7934 = vst [vmem:[#allocation126_spill] sm:$0xff] %v5816_v41  ;;  %v577_v41 = vld [vmem:[#allocation2 + $0xf1] sm:$0xff] }
 0x1db   : > { %1451 = vrot.lane.b32.xlu1 %v574_v9, %s4725_s14  ;;  %1453 = vrot.lane.b32.xlu0 %v575_v31, %s4725_s14  ;;  %v608_v9 = vld [vmem:[#allocation2 + $0xe2] sm:$0xff] }
 0x1dd   : > { %v5822_v38 = vpop.permute.xlu1 %1299  ;;  %v5824_v20 = vpop.permute.xlu0 %1305 }
 0x1df   : > { %1579 = vrot.lane.b32.xlu1 %v606_v43, %s4726_s17  ;;  %1581 = vrot.lane.b32.xlu0 %v607_v15, %s4726_s17  ;;  %v578_v43 = vld [vmem:[#allocation2 + $0xf9] sm:$0xff] }
 0x1e1   : > { %v5828_v30 = vpop.permute.xlu1 %1303  ;;  %v5830_v48 = vpop.permute.xlu0 %1309 }
 0x1e3   : > { %1455 = vrot.lane.b32.xlu1 %v576_v39, %s4725_s14  ;;  %1457 = vrot.lane.b32.xlu0 %v577_v41, %s4725_s14  ;;  %v610_v39 = vld [vmem:[#allocation2 + $0xfa] sm:$0xff] }
 0x1e5   : > { %v5834_v31 = vpop.permute.xlu1 %1307  ;;  %v5836_v62 = vpop.permute.xlu0 %1313 }
 0x1e7   : > { %1583 = vrot.lane.b32.xlu1 %v608_v9, %s4726_s17  ;;  %1585 = vrot.lane.b32.xlu0 %v609_v47, %s4726_s17  ;;  %v580_v9 = vld [vmem:[#allocation2 + $0x111] sm:$0xff] }
 0x1e9   : > { %v5840_v15 = vpop.permute.xlu1 %1311  ;;  %v5842_v27 = vpop.permute.xlu0 %1317 }
 0x1eb   : > { %1459 = vrot.lane.b32.xlu1 %v578_v43, %s4725_s14  ;;  %1461 = vrot.lane.b32.xlu0 %v579_v5, %s4725_s14  ;;  %v612_v43 = vld [vmem:[#allocation2 + $0x112] sm:$0xff] }
 0x1ed   : > { %v5846_v41 = vpop.permute.xlu1 %1315  ;;  %v5848_v14 = vpop.permute.xlu0 %1321 }
 0x1ee   : > { %7935 = vst [vmem:[#allocation127_spill] sm:$0xff] %v5848_v14  ;;  %v583_v14 = vld [vmem:[#allocation2 + $0x139] sm:$0xff] }
 0x1ef   : > { %1587 = vrot.lane.b32.xlu1 %v610_v39, %s4726_s17  ;;  %1589 = vrot.lane.b32.xlu0 %v611_v42, %s4726_s17  ;;  %v582_v39 = vld [vmem:[#allocation2 + $0x129] sm:$0xff] }
 0x1f1   : > { %v5852_v47 = vpop.permute.xlu1 %1319  ;;  %v5854_v2 = vpop.permute.xlu0 %1325 }
 0x1f2   : > { %7936 = vst [vmem:[#allocation128_spill] sm:$0xff] %v5852_v47  ;;  %7937 = vst [vmem:[#allocation129_spill] sm:$0xff] %v5854_v2  ;;  %v615_v2 = vld [vmem:[#allocation2 + $0x13a] sm:$0xff] }
 0x1f3   : > { %1463 = vrot.lane.b32.xlu1 %v580_v9, %s4725_s14  ;;  %1465 = vrot.lane.b32.xlu0 %v581_v6, %s4725_s14  ;;  %v614_v9 = vld [vmem:[#allocation2 + $0x12a] sm:$0xff] }
 0x1f5   : > { %v5858_v5 = vpop.permute.xlu1 %1323  ;;  %v5860_v58 = vpop.permute.xlu0 %1329 }
 0x1f6   : > { %7938 = vst [vmem:[#allocation130_spill] sm:$0xff] %v5858_v5  ;;  %7939 = vst [vmem:[#allocation131_spill] sm:$0xff] %v5860_v58  ;;  %v585_v58 = vld [vmem:[#allocation2 + $0x151] sm:$0xff] }
 0x1f7   : > { %1591 = vrot.lane.b32.xlu1 %v612_v43, %s4726_s17  ;;  %1593 = vrot.lane.b32.xlu0 %v613_v34, %s4726_s17  ;;  %v584_v43 = vld [vmem:[#allocation2 + $0x141] sm:$0xff] }
 0x1f9   : > { %v5864_v42 = vpop.permute.xlu1 %1327  ;;  %v5866_v47 = vpop.permute.xlu0 %1333 }
 0x1fa   : > { %7940 = vst [vmem:[#allocation132_spill] sm:$0xff] %v5864_v42  ;;  %7941 = vst [vmem:[#allocation133_spill] sm:$0xff] %v5866_v47  ;;  %v617_v47 = vld [vmem:[#allocation2 + $0x152] sm:$0xff] }
 0x1fb   : > { %1467 = vrot.lane.b32.xlu1 %v582_v39, %s4725_s14  ;;  %1469 = vrot.lane.b32.xlu0 %v583_v14, %s4725_s14  ;;  %v616_v39 = vld [vmem:[#allocation2 + $0x142] sm:$0xff] }
 0x1fd   : > { %v5870_v6 = vpop.permute.xlu1 %1331  ;;  %v5872_v5 = vpop.permute.xlu0 %1337 }
 0x1fe   : > { %7942 = vst [vmem:[#allocation134_spill] sm:$0xff] %v5870_v6  ;;  %7943 = vst [vmem:[#allocation135_spill] sm:$0xff] %v5872_v5  ;;  %v587_v5 = vld [vmem:[#allocation2 + $0x169] sm:$0xff] }
 0x1ff   : > { %1595 = vrot.lane.b32.xlu1 %v614_v9, %s4726_s17  ;;  %1597 = vrot.lane.b32.xlu0 %v615_v2, %s4726_s17  ;;  %v586_v9 = vld [vmem:[#allocation2 + $0x159] sm:$0xff] }
 0x201   : > { %v5876_v34 = vpop.permute.xlu1 %1335  ;;  %v5878_v42 = vpop.permute.xlu0 %1341 }
 0x202   : > { %7944 = vst [vmem:[#allocation136_spill] sm:$0xff] %v5876_v34  ;;  %7945 = vst [vmem:[#allocation137_spill] sm:$0xff] %v5878_v42  ;;  %v619_v42 = vld [vmem:[#allocation2 + $0x16a] sm:$0xff] }
 0x203   : > { %1471 = vrot.lane.b32.xlu1 %v584_v43, %s4725_s14  ;;  %1473 = vrot.lane.b32.xlu0 %v585_v58, %s4725_s14  ;;  %v618_v43 = vld [vmem:[#allocation2 + $0x15a] sm:$0xff] }
 0x205   : > { %v5882_v14 = vpop.permute.xlu1 %1339  ;;  %v5884_v6 = vpop.permute.xlu0 %1345 }
 0x206   : > { %7946 = vst [vmem:[#allocation138_spill] sm:$0xff] %v5882_v14  ;;  %7947 = vst [vmem:[#allocation139_spill] sm:$0xff] %v5884_v6 }
 0x207   : > { %1599 = vrot.lane.b32.xlu1 %v616_v39, %s4726_s17  ;;  %1601 = vrot.lane.b32.xlu0 %v617_v47, %s4726_s17  ;;  %v588_v39 = vld [vmem:[#allocation2 + $0x171] sm:$0xff] }
 0x209   : > { %v5888_v2 = vpop.permute.xlu1 %1343  ;;  %v5890_v34 = vpop.permute.xlu0 %1349 }
 0x20a   : > { %7948 = vst [vmem:[#allocation140_spill] sm:$0xff] %v5888_v2  ;;  %7949 = vst [vmem:[#allocation141_spill] sm:$0xff] %v5890_v34 }
 0x20b   : > { %1475 = vrot.lane.b32.xlu1 %v586_v9, %s4725_s14  ;;  %1477 = vrot.lane.b32.xlu0 %v587_v5, %s4725_s14  ;;  %v620_v9 = vld [vmem:[#allocation2 + $0x172] sm:$0xff] }
 0x20d   : > { %v5894_v58 = vpop.permute.xlu1 %1347  ;;  %v5896_v14 = vpop.permute.xlu0 %1353 }
 0x20e   : > { %7950 = vst [vmem:[#allocation142_spill] sm:$0xff] %v5894_v58  ;;  %7951 = vst [vmem:[#allocation143_spill] sm:$0xff] %v5896_v14  ;;  %v591_v14 = vld [vmem:[#allocation2 + $0x199] sm:$0xff] }
 0x20f   : > { %1603 = vrot.lane.b32.xlu1 %v618_v43, %s4726_s17  ;;  %1605 = vrot.lane.b32.xlu0 %v619_v42, %s4726_s17  ;;  %v336_v42 = vld [vmem:[#allocation2] sm:$0xff] }
 0x211   : > { %v5900_v47 = vpop.permute.xlu1 %1351  ;;  %v5902_v6 = vpop.permute.xlu0 %1357 }
 0x212   : > { %7952 = vst [vmem:[#allocation144_spill] sm:$0xff] %v5900_v47  ;;  %7953 = vst [vmem:[#allocation145_spill] sm:$0xff] %v5902_v6 }
 0x213   : > { %1479 = vrot.lane.b32.xlu1 %v588_v39, %s4725_s14  ;;  %1481 = vrot.lane.b32.xlu0 %v5445_v56, %s4725_s14  ;;  %v7956_v39 = vld [vmem:[#allocation3_spill] sm:$0xff] }
 0x214   : > { %v1649_v56 = vsel %vm225_vm0, %v336_v42, %v7956_v39 }
 0x215   : > { %v5907_v5 = vpop.permute.xlu1 %1355  ;;  %v1426_v34 = vpop.permute.xlu0 %1425 }
 0x216   : > { %7954 = vst [vmem:[#allocation146_spill] sm:$0xff] %v5907_v5  ;;  %v7957_v5 = vld [vmem:[#allocation61_spill] sm:$0xff] }
 0x217   : > { %1607 = vrot.lane.b32.xlu1 %v620_v9, %s4726_s17  ;;  %1609 = vrot.lane.b32.xlu0 %v5577_v21, %s4726_s17  ;;  %v1682_v21 = vsel %vm1681_vm4, %v1649_v56, %v7957_v5  ;;  %v7958_v56 = vld [vmem:[#allocation4_spill] sm:$0xff] }
 0x218   : > { %v1715_v47 = vsel %vm1714_vm5, %v1682_v21, %v5429_v52 }
 0x219   : > { %v5912_v43 = vpop.permute.xlu1 %1359  ;;  %v1430_v6 = vpop.permute.xlu0 %1429  ;;  %v1748_v42 = vsel %vm1747_vm6, %v1715_v47, %v5561_v22  ;;  %v4673_v22 = vld [vmem:[#allocation2 + $0x18] sm:$0xff]  ;;  %v7959_v47 = vld [vmem:[#allocation6_spill] sm:$0xff] }
 0x21a   : > { %7955 = vst [vmem:[#allocation147_spill] sm:$0xff] %v5912_v43  ;;  %v623_v43 = vld [vmem:[#allocation2 + $0x19a] sm:$0xff]  ;;  %v1781_v5 = vsel %vm1780_vm7, %v1748_v42, %v5693_v10  ;;  %v1651_v10 = vsel %vm225_vm0, %v4673_v22, %v7959_v47  ;;  %v7960_v42 = vld [vmem:[#allocation66_spill] sm:$0xff] }
 0x21b   : > { %1483 = vrot.lane.b32.xlu1 %v5459_v60, %s4725_s14  ;;  %1485 = vrot.lane.b32.xlu0 %v591_v14, %s4725_s14  ;;  %v337_v60 = vld [vmem:[#allocation2 + $0x8] sm:$0xff]  ;;  %v1814_v52 = vsel %vm1813_vm8, %v1781_v5, %v5812_v7  ;;  %v7961_v7 = vld [vmem:[#allocation65_spill] sm:$0xff]  ;;  %v7963_v47 = vld [vmem:[#allocation8_spill] sm:$0xff] }
 0x21c   : > { %v592_v14 = vld [vmem:[#allocation2 + $0x1a1] sm:$0xff]  ;;  %v1847_v21 = vsel %vm1846_vm9, %v1814_v52, %v1426_v34  ;;  %v1684_v5 = vsel %vm1681_vm4, %v1651_v10, %v7961_v7 }
 0x21d   : > { %v1428_v9 = vpop.permute.xlu1 %1427  ;;  %v5923_v58 = vpop.permute.xlu0 %1433  ;;  %v7964_v10 = vld [vmem:[#allocation69_spill] sm:$0xff] }
 0x21f   : > { %1611 = vrot.lane.b32.xlu1 %v5591_v28, %s4726_s17  ;;  %1613 = vrot.lane.b32.xlu0 %v623_v43, %s4726_s17  ;;  %v1650_v28 = vsel %vm225_vm0, %v337_v60, %v7958_v56  ;;  %v4674_v56 = vld [vmem:[#allocation2 + $0x20] sm:$0xff] }
 0x220   : > { %v1683_v43 = vsel %vm1681_vm4, %v1650_v28, %v7960_v42  ;;  %v7962_v28 = vld [vmem:[#allocation10_spill] sm:$0xff] }
 0x221   : > { %v1432_v39 = vpop.permute.xlu1 %1431  ;;  %v1554_v2 = vpop.permute.xlu0 %1553  ;;  %v1716_v60 = vsel %vm1714_vm5, %v1683_v43, %v5443_v55 }
 0x222   : > { %v1880_v4 = vsel %vm1879_vm10, %v1847_v21, %v1554_v2  ;;  %v1749_v52 = vsel %vm1747_vm6, %v1716_v60, %v5575_v29  ;;  %v1652_v2 = vsel %vm225_vm0, %v4674_v56, %v7962_v28  ;;  %v4676_v56 = vld [vmem:[#allocation2 + $0x38] sm:$0xff]  ;;  %v7966_v28 = vld [vmem:[#allocation13_spill] sm:$0xff] }
 0x223   : > { %1487 = vrot.lane.b32.xlu1 %v592_v14, %s4725_s14  ;;  %4534 = vmatprep.mubr.msk.f32.mxu0 %vm1924_vm11, %v1880_v4  ;;  %v1717_v14 = vsel %vm1714_vm5, %v1684_v5, %v5437_v54  ;;  %v1782_v22 = vsel %vm1780_vm7, %v1749_v52, %v5707_v44  ;;  %v4675_v4 = vld [vmem:[#allocation2 + $0x30] sm:$0xff]  ;;  %v1685_v29 = vsel %vm1681_vm4, %v1652_v2, %v7964_v10 }
 0x224   : > { %v1750_v21 = vsel %vm1747_vm6, %v1717_v14, %v5569_v24  ;;  %v1653_v54 = vsel %vm225_vm0, %v4675_v4, %v7963_v47  ;;  %v1815_v43 = vsel %vm1813_vm8, %v1782_v22, %v5822_v38  ;;  %v7965_v24 = vld [vmem:[#allocation68_spill] sm:$0xff]  ;;  %v1718_v44 = vsel %vm1714_vm5, %v1685_v29, %v5453_v57  ;;  %v7968_v4 = vld [vmem:[#allocation11_spill] sm:$0xff]  ;;  %v7969_v29 = vld [vmem:[#allocation70_spill] sm:$0xff] }
 0x225   : > { %v1436_v34 = vpop.permute.xlu1 %1435  ;;  %v1558_v55 = vpop.permute.xlu0 %1557  ;;  %v1783_v42 = vsel %vm1780_vm7, %v1750_v21, %v5701_v40  ;;  %v1686_v7 = vsel %vm1681_vm4, %v1653_v54, %v7965_v24  ;;  %v1848_v5 = vsel %vm1846_vm9, %v1815_v43, %v1428_v9  ;;  %v1751_v40 = vsel %vm1747_vm6, %v1718_v44, %v5585_v35  ;;  %v7967_v35 = vld [vmem:[#allocation71_spill] sm:$0xff] }
 0x226   : > { %v1719_v14 = vsel %vm1714_vm5, %v1686_v7, %v5447_v50  ;;  %v1654_v57 = vsel %vm225_vm0, %v4676_v56, %v7966_v28  ;;  %v1784_v9 = vsel %vm1780_vm7, %v1751_v40, %v5720_v33  ;;  %v4679_v40 = vld [vmem:[#allocation2 + $0x60] sm:$0xff]  ;;  %v7972_v28 = vld [vmem:[#allocation72_spill] sm:$0xff] }
 0x227   : > { %1615 = vrot.lane.b32.xlu1 %v624_v26, %s4726_s17  ;;  %v1816_v26 = vsel %vm1813_vm8, %v1783_v42, %v5818_v45  ;;  %v1752_v45 = vsel %vm1747_vm6, %v1719_v14, %v5579_v18  ;;  %v1817_v22 = vsel %vm1813_vm8, %v1784_v9, %v5828_v30  ;;  %v4677_v18 = vld [vmem:[#allocation2 + $0x48] sm:$0xff] }
 0x228   : > { %v1849_v38 = vsel %vm1846_vm9, %v1816_v26, %v1430_v6  ;;  %v1687_v6 = vsel %vm1681_vm4, %v1654_v57, %v7967_v35  ;;  %v1785_v21 = vsel %vm1780_vm7, %v1752_v45, %v5715_v8  ;;  %v1655_v33 = vsel %vm225_vm0, %v4677_v18, %v7968_v4 }
 0x229   : > { %v1556_v60 = vpop.permute.xlu1 %1555  ;;  %v1882_v2 = vsel %vm1879_vm10, %v1849_v38, %v1558_v55  ;;  %v1562_v50 = vpop.permute.xlu0 %1561  ;;  %v1720_v55 = vsel %vm1714_vm5, %v1687_v6, %v5463_v61  ;;  %v1818_v47 = vsel %vm1813_vm8, %v1785_v21, %v5824_v20  ;;  %v1850_v54 = vsel %vm1846_vm9, %v1817_v22, %v1432_v39  ;;  %v7971_v38 = vld [vmem:[#allocation14_spill] sm:$0xff] }
 0x22a   : > { %v1881_v52 = vsel %vm1879_vm10, %v1848_v5, %v1556_v60  ;;  %v1688_v8 = vsel %vm1681_vm4, %v1655_v33, %v7969_v29  ;;  %v1753_v30 = vsel %vm1747_vm6, %v1720_v55, %v5595_v49  ;;  %v1851_v42 = vsel %vm1846_vm9, %v1818_v47, %v5923_v58  ;;  %v4678_v5 = vld [vmem:[#allocation2 + $0x50] sm:$0xff]  ;;  %v7970_v60 = vld [vmem:[#allocation16_spill] sm:$0xff]  ;;  %v4680_v22 = vld [vmem:[#allocation2 + $0x68] sm:$0xff] }
 0x22b   : > { %4535 = vmatmul.mubr.msk.f32.vlgmr.msra.gmra.mrb[0].mxu0 %vm1924_vm11, %v1881_v52  ;;  %v1721_v61 = vsel %vm1714_vm5, %v1688_v8, %v5455_v59  ;;  %v1786_v20 = vsel %vm1780_vm7, %v1753_v30, %v5733_v12  ;;  %v1884_v39 = vsel %vm1879_vm10, %v1851_v42, %v1562_v50  ;;  %v4681_v33 = vld [vmem:[#allocation2 + $0x78] sm:$0xff]  ;;  %v7974_v55 = vld [vmem:[#allocation17_spill] sm:$0xff] }
 0x22c   : > { %4537 = vmatprep.mubr.msk.f32.mxu0 %vm1924_vm11, %v1882_v2  ;;  %v1754_v7 = vsel %vm1747_vm6, %v1721_v61, %v5587_v23  ;;  %v1819_v49 = vsel %vm1813_vm8, %v1786_v20, %v5834_v31  ;;  %v1656_v23 = vsel %vm225_vm0, %v4678_v5, %v7970_v60  ;;  %v4682_v20 = vld [vmem:[#allocation2 + $0x80] sm:$0xff]  ;;  %v7980_v60 = vld [vmem:[#allocation7_spill] sm:$0xff] }
 0x22d   : > { %v1560_v10 = vpop.permute.xlu1 %1559  ;;  %v1438_v24 = vpop.permute.xlu0 %1437  ;;  %v1787_v58 = vsel %vm1780_vm7, %v1754_v7, %v5728_v32  ;;  %v1852_v59 = vsel %vm1846_vm9, %v1819_v49, %v1436_v34  ;;  %v1689_v32 = vsel %vm1681_vm4, %v1656_v23, %v5339_v0  ;;  %v4683_v49 = vld [vmem:[#allocation2 + $0x90] sm:$0xff] }
 0x22e   : > { %v1883_v43 = vsel %vm1879_vm10, %v1850_v54, %v1560_v10  ;;  %v1820_v12 = vsel %vm1813_vm8, %v1787_v58, %v5830_v48  ;;  %v1657_v48 = vsel %vm225_vm0, %v4679_v40, %v7971_v38  ;;  %v1722_v52 = vsel %vm1714_vm5, %v1689_v32, %v5471_v63  ;;  %v7977_v58 = vld [vmem:[#allocation21_spill] sm:$0xff]  ;;  %v7982_v32 = vld [vmem:[#allocation52_spill] sm:$0xff] }
 0x22f   : > { %4538 = vmatmul.mubr.msk.f32.gmra.mrb[2].mxu0 %vm1924_vm11, %v1883_v43  ;;  %v1853_v14 = vsel %vm1846_vm9, %v1820_v12, %v1438_v24  ;;  %v1690_v57 = vsel %vm1681_vm4, %v1657_v48, %v7972_v28  ;;  %v1755_v45 = vsel %vm1747_vm6, %v1722_v52, %v5603_v46  ;;  %v7983_v38 = vld [vmem:[#allocation5_spill] sm:$0xff]  ;;  %v7984_v52 = vld [vmem:[#allocation128_spill] sm:$0xff]  ;;  %v7985_v28 = vld [vmem:[#allocation50_spill] sm:$0xff] }
 0x230   : > { %4540 = vmatprep.mubr.msk.f32.mxu0 %vm1924_vm11, %v1884_v39  ;;  %v1723_v0 = vsel %vm1714_vm5, %v1690_v57, %v5465_v53  ;;  %v1788_v9 = vsel %vm1780_vm7, %v1755_v45, %v5742_v37  ;;  %v7973_v37 = vld [vmem:[#allocation19_spill] sm:$0xff] }
 0x231   : > { %v1564_v44 = vpop.permute.xlu1 %1563  ;;  %v1566_v31 = vpop.permute.xlu0 %1565  ;;  %v1756_v50 = vsel %vm1747_vm6, %v1723_v0, %v5597_v16  ;;  %v1821_v63 = vsel %vm1813_vm8, %v1788_v9, %v5840_v15  ;;  %v1658_v18 = vsel %vm225_vm0, %v4680_v22, %v7973_v37  ;;  %v7986_v9 = vld [vmem:[#allocation127_spill] sm:$0xff] }
 0x232   : > { %v1885_v26 = vsel %vm1879_vm10, %v1852_v59, %v1564_v44  ;;  %v1886_v34 = vsel %vm1879_vm10, %v1853_v14, %v1566_v31  ;;  %v1789_v35 = vsel %vm1780_vm7, %v1756_v50, %v5735_v13  ;;  %v1691_v13 = vsel %vm1681_vm4, %v1658_v18, %v5347_v25  ;;  %v7978_v59 = vld [vmem:[#allocation95_spill] sm:$0xff]  ;;  %v7981_v14 = vld [vmem:[#allocation94_spill] sm:$0xff] }
 0x233   : > { %4541 = vmatmul.mubr.msk.f32.gmra.mrb[4].mxu0 %vm1924_vm11, %v1885_v26  ;;  %v1822_v46 = vsel %vm1813_vm8, %v1789_v35, %v5836_v62  ;;  %v1659_v62 = vsel %vm225_vm0, %v4681_v33, %v7974_v55  ;;  %v1724_v47 = vsel %vm1714_vm5, %v1691_v13, %v5479_v1  ;;  %v7979_v26 = vld [vmem:[#allocation73_spill] sm:$0xff]  ;;  %v7987_v35 = vld [vmem:[#allocation27_spill] sm:$0xff]  ;;  %v4685_v18 = vld [vmem:[#allocation2 + $0xa8] sm:$0xff] }
 0x234   : > { %4543 = vmatprep.mubr.msk.f32.mxu0 %vm1924_vm11, %v1886_v34  ;;  %v1692_v10 = vsel %vm1681_vm4, %v1659_v62, %v5341_v36  ;;  %v1757_v29 = vsel %vm1747_vm6, %v1724_v47, %v5611_v19  ;;  %v7990_v13 = vld [vmem:[#allocation97_spill] sm:$0xff]  ;;  %v7991_v55 = vld [vmem:[#allocation75_spill] sm:$0xff]  ;;  %v7992_v47 = vld [vmem:[#allocation12_spill] sm:$0xff] }
 0x235   : > { %v1440_v56 = vpop.permute.xlu1 %1439  ;;  %v1442_v2 = vpop.permute.xlu0 %1441  ;;  %v1725_v25 = vsel %vm1714_vm5, %v1692_v10, %v5473_v51  ;;  %v1790_v8 = vsel %vm1780_vm7, %v1757_v29, %v5750_v3  ;;  %v7975_v3 = vld [vmem:[#allocation23_spill] sm:$0xff]  ;;  %v7993_v10 = vld [vmem:[#allocation96_spill] sm:$0xff] }
 0x236   : > { %v1854_v6 = vsel %vm1846_vm9, %v1821_v63, %v1440_v56  ;;  %v1855_v16 = vsel %vm1846_vm9, %v1822_v46, %v1442_v2  ;;  %v1758_v42 = vsel %vm1747_vm6, %v1725_v25, %v5605_v17  ;;  %v1823_v1 = vsel %vm1813_vm8, %v1790_v8, %v5846_v41  ;;  %v7976_v41 = vld [vmem:[#allocation74_spill] sm:$0xff]  ;;  %v4684_v63 = vld [vmem:[#allocation2 + $0x98] sm:$0xff] }
 0x237   : > { %v1791_v43 = vsel %vm1780_vm7, %v1758_v42, %v5746_v11  ;;  %v1660_v39 = vsel %vm225_vm0, %v4682_v20, %v7975_v3  ;;  %v7994_v25 = vld [vmem:[#allocation56_spill] sm:$0xff]  ;;  %v7995_v42 = vld [vmem:[#allocation9_spill] sm:$0xff] }
 0x238   : > { %v1824_v19 = vsel %vm1813_vm8, %v1791_v43, %v5842_v27  ;;  %v1693_v11 = vsel %vm1681_vm4, %v1660_v39, %v7976_v41  ;;  %v1661_v27 = vsel %vm225_vm0, %v4683_v49, %v7977_v58  ;;  %v7996_v43 = vld [vmem:[#allocation130_spill] sm:$0xff]  ;;  %v7998_v3 = vld [vmem:[#allocation129_spill] sm:$0xff]  ;;  %v7999_v41 = vld [vmem:[#allocation31_spill] sm:$0xff] }
 0x239   : > { %v1568_v21 = vpop.permute.xlu1 %1567  ;;  %v1570_v4 = vpop.permute.xlu0 %1569  ;;  %v1726_v44 = vsel %vm1714_vm5, %v1693_v11, %v7978_v59  ;;  %v1694_v5 = vsel %vm1681_vm4, %v1661_v27, %v7979_v26  ;;  %v8000_v58 = vld [vmem:[#allocation78_spill] sm:$0xff] }
 0x23a   : > { %v1887_v53 = vsel %vm1879_vm10, %v1854_v6, %v1568_v21  ;;  %v1888_v15 = vsel %vm1879_vm10, %v1855_v16, %v1570_v4  ;;  %v1759_v23 = vsel %vm1747_vm6, %v1726_v44, %v7980_v60  ;;  %v1727_v31 = vsel %vm1714_vm5, %v1694_v5, %v7981_v14  ;;  %v7989_v16 = vld [vmem:[#allocation25_spill] sm:$0xff]  ;;  %v8002_v5 = vld [vmem:[#allocation99_spill] sm:$0xff] }
 0x23b   : > { %4544 = vmatmul.mubr.msk.f32.gmra.mrb[6].mxu0 %vm1924_vm11, %v1887_v53  ;;  %v1792_v34 = vsel %vm1780_vm7, %v1759_v23, %v7982_v32  ;;  %v1760_v48 = vsel %vm1747_vm6, %v1727_v31, %v7983_v38  ;;  %v1662_v6 = vsel %vm225_vm0, %v4684_v63, %v7987_v35  ;;  %v7988_v53 = vld [vmem:[#allocation76_spill] sm:$0xff]  ;;  %v1663_v4 = vsel %vm225_vm0, %v4685_v18, %v7989_v16  ;;  %v4687_v44 = vld [vmem:[#allocation2 + $0xc0] sm:$0xff]  ;;  %v8004_v32 = vld [vmem:[#allocation18_spill] sm:$0xff] }
 0x23c   : > { %4546 = vmatprep.mubr.msk.f32.mxu0 %vm1924_vm11, %v1888_v15  ;;  %v1825_v56 = vsel %vm1813_vm8, %v1792_v34, %v7984_v52  ;;  %v1793_v57 = vsel %vm1780_vm7, %v1760_v48, %v7985_v28  ;;  %v1695_v22 = vsel %vm1681_vm4, %v1662_v6, %v7988_v53  ;;  %v1696_v62 = vsel %vm1681_vm4, %v1663_v4, %v7991_v55  ;;  %v8003_v14 = vld [vmem:[#allocation77_spill] sm:$0xff]  ;;  %v8006_v48 = vld [vmem:[#allocation60_spill] sm:$0xff]  ;;  %v8007_v28 = vld [vmem:[#allocation15_spill] sm:$0xff] }
 0x23d   : > { %v1444_v54 = vpop.permute.xlu1 %1443  ;;  %v1446_v30 = vpop.permute.xlu0 %1445  ;;  %v1826_v2 = vsel %vm1813_vm8, %v1793_v57, %v7986_v9  ;;  %v1728_v15 = vsel %vm1714_vm5, %v1695_v22, %v7990_v13  ;;  %v1729_v29 = vsel %vm1714_vm5, %v1696_v62, %v7993_v10  ;;  %v8009_v9 = vld [vmem:[#allocation58_spill] sm:$0xff]  ;;  %v8010_v35 = vld [vmem:[#allocation131_spill] sm:$0xff]  ;;  %v8012_v16 = vld [vmem:[#allocation80_spill] sm:$0xff] }
 0x23e   : > { %v1856_v36 = vsel %vm1846_vm9, %v1823_v1, %v1444_v54  ;;  %v1857_v17 = vsel %vm1846_vm9, %v1824_v19, %v1446_v30  ;;  %v1761_v54 = vsel %vm1747_vm6, %v1728_v15, %v7992_v47  ;;  %v1762_v1 = vsel %vm1747_vm6, %v1729_v29, %v7995_v42  ;;  %v8011_v53 = vld [vmem:[#allocation35_spill] sm:$0xff]  ;;  %v4689_v15 = vld [vmem:[#allocation2 + $0xd8] sm:$0xff]  ;;  %v8014_v62 = vld [vmem:[#allocation101_spill] sm:$0xff] }
 0x23f   : > { %v1794_v8 = vsel %vm1780_vm7, %v1761_v54, %v7994_v25  ;;  %v8015_v10 = vld [vmem:[#allocation79_spill] sm:$0xff]  ;;  %v8016_v25 = vld [vmem:[#allocation22_spill] sm:$0xff] }
 0x241   : > { %v1572_v61 = vpop.permute.xlu1 %1571  ;;  %v1574_v24 = vpop.permute.xlu0 %1573 }
 0x242   : > { %v1889_v51 = vsel %vm1879_vm10, %v1856_v36, %v1572_v61  ;;  %v1890_v7 = vsel %vm1879_vm10, %v1857_v17, %v1574_v24  ;;  %v1827_v36 = vsel %vm1813_vm8, %v1794_v8, %v7996_v43  ;;  %v7997_v61 = vld [vmem:[#allocation54_spill] sm:$0xff]  ;;  %v4686_v24 = vld [vmem:[#allocation2 + $0xb0] sm:$0xff] }
 0x243   : > { %4547 = vmatmul.mubr.msk.f32.gmra.mrb[8].mxu0 %vm1924_vm11, %v1889_v51  ;;  %v1795_v19 = vsel %vm1780_vm7, %v1762_v1, %v7997_v61  ;;  %v1664_v11 = vsel %vm225_vm0, %v4686_v24, %v7999_v41  ;;  %v8018_v1 = vld [vmem:[#allocation64_spill] sm:$0xff]  ;;  %v8022_v41 = vld [vmem:[#allocation133_spill] sm:$0xff] }
 0x244   : > { %4549 = vmatprep.mubr.msk.f32.mxu0 %vm1924_vm11, %v1890_v7  ;;  %v1828_v39 = vsel %vm1813_vm8, %v1795_v19, %v7998_v3  ;;  %v1697_v27 = vsel %vm1681_vm4, %v1664_v11, %v8000_v58  ;;  %v8019_v61 = vld [vmem:[#allocation20_spill] sm:$0xff]  ;;  %v8021_v3 = vld [vmem:[#allocation62_spill] sm:$0xff]  ;;  %v8023_v58 = vld [vmem:[#allocation39_spill] sm:$0xff] }
 0x245   : > { %v1448_v12 = vpop.permute.xlu1 %1447  ;;  %v1450_v40 = vpop.permute.xlu0 %1449  ;;  %v1730_v60 = vsel %vm1714_vm5, %v1697_v27, %v8002_v5 }
 0x246   : > { %v1858_v45 = vsel %vm1846_vm9, %v1825_v56, %v1448_v12  ;;  %v1859_v21 = vsel %vm1846_vm9, %v1826_v2, %v1450_v40  ;;  %v8001_v12 = vld [vmem:[#allocation29_spill] sm:$0xff]  ;;  %v1763_v34 = vsel %vm1747_vm6, %v1730_v60, %v8004_v32  ;;  %v8005_v40 = vld [vmem:[#allocation98_spill] sm:$0xff]  ;;  %v4691_v60 = vld [vmem:[#allocation2 + $0xf0] sm:$0xff] }
 0x247   : > { %v1665_v26 = vsel %vm225_vm0, %v4687_v44, %v8001_v12  ;;  %v1796_v52 = vsel %vm1780_vm7, %v1763_v34, %v8006_v48  ;;  %v8024_v12 = vld [vmem:[#allocation82_spill] sm:$0xff] }
 0x248   : > { %v1698_v31 = vsel %vm1681_vm4, %v1665_v26, %v8003_v14  ;;  %v8028_v48 = vld [vmem:[#allocation26_spill] sm:$0xff] }
 0x249   : > { %v1576_v0 = vpop.permute.xlu1 %1575  ;;  %v1578_v46 = vpop.permute.xlu0 %1577  ;;  %v1731_v38 = vsel %vm1714_vm5, %v1698_v31, %v8005_v40  ;;  %v8026_v31 = vld [vmem:[#allocation103_spill] sm:$0xff]  ;;  %v8027_v40 = vld [vmem:[#allocation81_spill] sm:$0xff] }
 0x24a   : > { %v1891_v50 = vsel %vm1879_vm10, %v1858_v45, %v1576_v0  ;;  %v1892_v37 = vsel %vm1879_vm10, %v1859_v21, %v1578_v46  ;;  %v1764_v57 = vsel %vm1747_vm6, %v1731_v38, %v8007_v28  ;;  %v8008_v45 = vld [vmem:[#allocation132_spill] sm:$0xff]  ;;  %v4688_v46 = vld [vmem:[#allocation2 + $0xc8] sm:$0xff] }
 0x24b   : > { %4550 = vmatmul.mubr.msk.f32.gmra.mrb[10].mxu0 %vm1924_vm11, %v1891_v50  ;;  %v1829_v0 = vsel %vm1813_vm8, %v1796_v52, %v8008_v45  ;;  %v1797_v2 = vsel %vm1780_vm7, %v1764_v57, %v8009_v9  ;;  %v1666_v22 = vsel %vm225_vm0, %v4688_v46, %v8011_v53  ;;  %v8030_v57 = vld [vmem:[#allocation115_spill] sm:$0xff]  ;;  %v8031_v9 = vld [vmem:[#allocation24_spill] sm:$0xff] }
 0x24c   : > { %4552 = vmatprep.mubr.msk.f32.mxu0 %vm1924_vm11, %v1892_v37  ;;  %v1830_v6 = vsel %vm1813_vm8, %v1797_v2, %v8010_v35  ;;  %v1699_v4 = vsel %vm1681_vm4, %v1666_v22, %v8012_v16  ;;  %v8033_v35 = vld [vmem:[#allocation67_spill] sm:$0xff] }
 0x24d   : > { %v1452_v33 = vpop.permute.xlu1 %1451  ;;  %v1454_v30 = vpop.permute.xlu0 %1453  ;;  %v1732_v47 = vsel %vm1714_vm5, %v1699_v4, %v8014_v62  ;;  %v8034_v53 = vld [vmem:[#allocation135_spill] sm:$0xff] }
 0x24e   : > { %v1860_v51 = vsel %vm1846_vm9, %v1827_v36, %v1452_v33  ;;  %v1861_v7 = vsel %vm1846_vm9, %v1828_v39, %v1454_v30  ;;  %v8013_v33 = vld [vmem:[#allocation33_spill] sm:$0xff]  ;;  %v1765_v8 = vsel %vm1747_vm6, %v1732_v47, %v8016_v25  ;;  %v8017_v30 = vld [vmem:[#allocation100_spill] sm:$0xff]  ;;  %v8035_v16 = vld [vmem:[#allocation43_spill] sm:$0xff] }
 0x24f   : > { %v1667_v55 = vsel %vm225_vm0, %v4689_v15, %v8013_v33  ;;  %v1798_v43 = vsel %vm1780_vm7, %v1765_v8, %v8018_v1  ;;  %v8036_v33 = vld [vmem:[#allocation84_spill] sm:$0xff]  ;;  %v4693_v47 = vld [vmem:[#allocation2 + $0x108] sm:$0xff] }
 0x250   : > { %v1700_v29 = vsel %vm1681_vm4, %v1667_v55, %v8015_v10  ;;  %v8040_v1 = vld [vmem:[#allocation30_spill] sm:$0xff] }
 0x251   : > { %v1580_v20 = vpop.permute.xlu1 %1579  ;;  %v1582_v49 = vpop.permute.xlu0 %1581  ;;  %v1733_v42 = vsel %vm1714_vm5, %v1700_v29, %v8017_v30  ;;  %v8038_v29 = vld [vmem:[#allocation105_spill] sm:$0xff]  ;;  %v8039_v30 = vld [vmem:[#allocation83_spill] sm:$0xff] }
 0x252   : > { %v1893_v17 = vsel %vm1879_vm10, %v1860_v51, %v1580_v20  ;;  %v1894_v59 = vsel %vm1879_vm10, %v1861_v7, %v1582_v49  ;;  %v1766_v19 = vsel %vm1747_vm6, %v1733_v42, %v8019_v61  ;;  %v8020_v51 = vld [vmem:[#allocation134_spill] sm:$0xff]  ;;  %v4690_v49 = vld [vmem:[#allocation2 + $0xe0] sm:$0xff] }
 0x253   : > { %4553 = vmatmul.mubr.msk.f32.gmra.mrb[12].mxu0 %vm1924_vm11, %v1893_v17  ;;  %v1831_v20 = vsel %vm1813_vm8, %v1798_v43, %v8020_v51  ;;  %v1799_v39 = vsel %vm1780_vm7, %v1766_v19, %v8021_v3  ;;  %v1668_v27 = vsel %vm225_vm0, %v4690_v49, %v8023_v58  ;;  %v8042_v19 = vld [vmem:[#allocation117_spill] sm:$0xff]  ;;  %v8043_v3 = vld [vmem:[#allocation28_spill] sm:$0xff] }
 0x254   : > { %4555 = vmatprep.mubr.msk.f32.mxu0 %vm1924_vm11, %v1894_v59  ;;  %v1832_v11 = vsel %vm1813_vm8, %v1799_v39, %v8022_v41  ;;  %v1701_v26 = vsel %vm1681_vm4, %v1668_v27, %v8024_v12  ;;  %v8045_v41 = vld [vmem:[#allocation116_spill] sm:$0xff]  ;;  %v8046_v58 = vld [vmem:[#allocation137_spill] sm:$0xff]  ;;  %v8047_v12 = vld [vmem:[#allocation47_spill] sm:$0xff] }
 0x255   : > { %v1456_v23 = vpop.permute.xlu1 %1455  ;;  %v1458_v56 = vpop.permute.xlu0 %1457  ;;  %v1734_v32 = vsel %vm1714_vm5, %v1701_v26, %v8026_v31 }
 0x256   : > { %v1862_v50 = vsel %vm1846_vm9, %v1829_v0, %v1456_v23  ;;  %v1863_v37 = vsel %vm1846_vm9, %v1830_v6, %v1458_v56  ;;  %v8025_v23 = vld [vmem:[#allocation37_spill] sm:$0xff]  ;;  %v1767_v52 = vsel %vm1747_vm6, %v1734_v32, %v8028_v48  ;;  %v8029_v56 = vld [vmem:[#allocation102_spill] sm:$0xff] }
 0x257   : > { %v1669_v14 = vsel %vm225_vm0, %v4691_v60, %v8025_v23  ;;  %v1800_v45 = vsel %vm1780_vm7, %v1767_v52, %v8030_v57  ;;  %v8048_v23 = vld [vmem:[#allocation86_spill] sm:$0xff]  ;;  %v4695_v32 = vld [vmem:[#allocation2 + $0x120] sm:$0xff] }
 0x258   : > { %v1702_v38 = vsel %vm1681_vm4, %v1669_v14, %v8027_v40  ;;  %v8052_v57 = vld [vmem:[#allocation34_spill] sm:$0xff] }
 0x259   : > { %v1584_v63 = vpop.permute.xlu1 %1583  ;;  %v1586_v18 = vpop.permute.xlu0 %1585  ;;  %v1735_v28 = vsel %vm1714_vm5, %v1702_v38, %v8029_v56  ;;  %v8050_v38 = vld [vmem:[#allocation107_spill] sm:$0xff]  ;;  %v8051_v56 = vld [vmem:[#allocation85_spill] sm:$0xff] }
 0x25a   : > { %v1895_v21 = vsel %vm1879_vm10, %v1862_v50, %v1584_v63  ;;  %v1896_v13 = vsel %vm1879_vm10, %v1863_v37, %v1586_v18  ;;  %v1768_v2 = vsel %vm1747_vm6, %v1735_v28, %v8031_v9  ;;  %v8032_v50 = vld [vmem:[#allocation136_spill] sm:$0xff] }
 0x25b   : > { %4556 = vmatmul.mubr.msk.f32.gmra.mrb[14].mxu0 %vm1924_vm11, %v1895_v21  ;;  %v1833_v63 = vsel %vm1813_vm8, %v1800_v45, %v8032_v50  ;;  %v1801_v6 = vsel %vm1780_vm7, %v1768_v2, %v8033_v35  ;;  %v4692_v18 = vld [vmem:[#allocation2 + $0xf8] sm:$0xff]  ;;  %v8054_v2 = vld [vmem:[#allocation119_spill] sm:$0xff] }
 0x25c   : > { %4558 = vmatprep.mubr.msk.f32.mxu0 %vm1924_vm11, %v1896_v13  ;;  %v1834_v22 = vsel %vm1813_vm8, %v1801_v6, %v8034_v53  ;;  %v1670_v4 = vsel %vm225_vm0, %v4692_v18, %v8035_v16  ;;  %v8055_v35 = vld [vmem:[#allocation32_spill] sm:$0xff]  ;;  %v8057_v53 = vld [vmem:[#allocation118_spill] sm:$0xff]  ;;  %v8058_v16 = vld [vmem:[#allocation139_spill] sm:$0xff] }
 0x25d   : > { %v1460_v54 = vpop.permute.xlu1 %1459  ;;  %v1462_v36 = vpop.permute.xlu0 %1461  ;;  %v1703_v55 = vsel %vm1681_vm4, %v1670_v4, %v8036_v33  ;;  %v8059_v33 = vld [vmem:[#allocation51_spill] sm:$0xff] }
 0x25e   : > { %v1864_v17 = vsel %vm1846_vm9, %v1831_v20, %v1460_v54  ;;  %v1865_v59 = vsel %vm1846_vm9, %v1832_v11, %v1462_v36  ;;  %v8037_v54 = vld [vmem:[#allocation41_spill] sm:$0xff]  ;;  %v1736_v25 = vsel %vm1714_vm5, %v1703_v55, %v8038_v29  ;;  %v8041_v36 = vld [vmem:[#allocation104_spill] sm:$0xff] }
 0x25f   : > { %v1671_v10 = vsel %vm225_vm0, %v4693_v47, %v8037_v54  ;;  %v1769_v43 = vsel %vm1747_vm6, %v1736_v25, %v8040_v1  ;;  %v8060_v54 = vld [vmem:[#allocation88_spill] sm:$0xff] }
 0x260   : > { %v1704_v42 = vsel %vm1681_vm4, %v1671_v10, %v8039_v30  ;;  %v1802_v51 = vsel %vm1780_vm7, %v1769_v43, %v8042_v19  ;;  %v4697_v25 = vld [vmem:[#allocation2 + $0x138] sm:$0xff]  ;;  %v8064_v19 = vld [vmem:[#allocation38_spill] sm:$0xff] }
 0x261   : > { %v1588_v24 = vpop.permute.xlu1 %1587  ;;  %v1590_v44 = vpop.permute.xlu0 %1589  ;;  %v1737_v61 = vsel %vm1714_vm5, %v1704_v42, %v8041_v36  ;;  %v8062_v42 = vld [vmem:[#allocation109_spill] sm:$0xff]  ;;  %v8063_v36 = vld [vmem:[#allocation87_spill] sm:$0xff] }
 0x262   : > { %v1897_v7 = vsel %vm1879_vm10, %v1864_v17, %v1588_v24  ;;  %v1898_v5 = vsel %vm1879_vm10, %v1865_v59, %v1590_v44  ;;  %v1770_v39 = vsel %vm1747_vm6, %v1737_v61, %v8043_v3  ;;  %v8044_v17 = vld [vmem:[#allocation138_spill] sm:$0xff]  ;;  %v4694_v44 = vld [vmem:[#allocation2 + $0x110] sm:$0xff] }
 0x263   : > { %4559 = vmatmul.mubr.msk.f32.gmra.mrb[16].mxu0 %vm1924_vm11, %v1897_v7  ;;  %v1835_v24 = vsel %vm1813_vm8, %v1802_v51, %v8044_v17  ;;  %v1803_v11 = vsel %vm1780_vm7, %v1770_v39, %v8045_v41  ;;  %v1672_v26 = vsel %vm225_vm0, %v4694_v44, %v8047_v12  ;;  %v8066_v39 = vld [vmem:[#allocation121_spill] sm:$0xff]  ;;  %v8067_v41 = vld [vmem:[#allocation36_spill] sm:$0xff] }
 0x264   : > { %4561 = vmatprep.mubr.msk.f32.mxu0 %vm1924_vm11, %v1898_v5  ;;  %v1836_v27 = vsel %vm1813_vm8, %v1803_v11, %v8046_v58  ;;  %v1705_v14 = vsel %vm1681_vm4, %v1672_v26, %v8048_v23  ;;  %v8069_v58 = vld [vmem:[#allocation120_spill] sm:$0xff]  ;;  %v8070_v12 = vld [vmem:[#allocation141_spill] sm:$0xff]  ;;  %v8071_v23 = vld [vmem:[#allocation55_spill] sm:$0xff] }
 0x265   : > { %v1464_v34 = vpop.permute.xlu1 %1463  ;;  %v1466_v0 = vpop.permute.xlu0 %1465  ;;  %v1738_v48 = vsel %vm1714_vm5, %v1705_v14, %v8050_v38 }
 0x266   : > { %v1866_v21 = vsel %vm1846_vm9, %v1833_v63, %v1464_v34  ;;  %v1867_v13 = vsel %vm1846_vm9, %v1834_v22, %v1466_v0  ;;  %v8049_v34 = vld [vmem:[#allocation45_spill] sm:$0xff]  ;;  %v1771_v45 = vsel %vm1747_vm6, %v1738_v48, %v8052_v57  ;;  %v8053_v0 = vld [vmem:[#allocation106_spill] sm:$0xff]  ;;  %v4699_v48 = vld [vmem:[#allocation2 + $0x150] sm:$0xff] }
 0x267   : > { %v1673_v40 = vsel %vm225_vm0, %v4695_v32, %v8049_v34  ;;  %v1804_v50 = vsel %vm1780_vm7, %v1771_v45, %v8054_v2  ;;  %v8072_v34 = vld [vmem:[#allocation90_spill] sm:$0xff] }
 0x268   : > { %v1706_v28 = vsel %vm1681_vm4, %v1673_v40, %v8051_v56  ;;  %v8076_v2 = vld [vmem:[#allocation42_spill] sm:$0xff] }
 0x269   : > { %v1592_v46 = vpop.permute.xlu1 %1591  ;;  %v1594_v15 = vpop.permute.xlu0 %1593  ;;  %v1739_v9 = vsel %vm1714_vm5, %v1706_v28, %v8053_v0  ;;  %v8074_v28 = vld [vmem:[#allocation111_spill] sm:$0xff]  ;;  %v8075_v0 = vld [vmem:[#allocation89_spill] sm:$0xff] }
 0x26a   : > { %v1899_v37 = vsel %vm1879_vm10, %v1866_v21, %v1592_v46  ;;  %v1900_v62 = vsel %vm1879_vm10, %v1867_v13, %v1594_v15  ;;  %v1772_v6 = vsel %vm1747_vm6, %v1739_v9, %v8055_v35  ;;  %v8056_v21 = vld [vmem:[#allocation140_spill] sm:$0xff]  ;;  %v4696_v15 = vld [vmem:[#allocation2 + $0x128] sm:$0xff] }
 0x26b   : > { %4562 = vmatmul.mubr.msk.f32.gmra.mrb[18].mxu0 %vm1924_vm11, %v1899_v37  ;;  %v1837_v46 = vsel %vm1813_vm8, %v1804_v50, %v8056_v21  ;;  %v1805_v22 = vsel %vm1780_vm7, %v1772_v6, %v8057_v53  ;;  %v1674_v55 = vsel %vm225_vm0, %v4696_v15, %v8059_v33  ;;  %v8077_v35 = vld [vmem:[#allocation110_spill] sm:$0xff]  ;;  %v8078_v21 = vld [vmem:[#allocation123_spill] sm:$0xff] }
 0x26c   : > { %4564 = vmatprep.mubr.msk.f32.mxu0 %vm1924_vm11, %v1900_v62  ;;  %v1838_v4 = vsel %vm1813_vm8, %v1805_v22, %v8058_v16  ;;  %v1707_v10 = vsel %vm1681_vm4, %v1674_v55, %v8060_v54  ;;  %v2346_v22 = vld [vmem:[#allocation2 + $0x1] sm:$0xff]  ;;  %v8080_v16 = vld [vmem:[#allocation144_spill] sm:$0xff] }
 0x26d   : > { %v1468_v8 = vpop.permute.xlu1 %1467  ;;  %v1470_v20 = vpop.permute.xlu0 %1469  ;;  %v1740_v1 = vsel %vm1714_vm5, %v1707_v10, %v8062_v42  ;;  %2634 = vrot.lane.b32.xlu0 %v2346_v22, %s4719_s25  ;;  %v4700_v10 = vld [vmem:[#allocation2 + $0x158] sm:$0xff] }
 0x26e   : > { %v1868_v7 = vsel %vm1846_vm9, %v1835_v24, %v1468_v8  ;;  %v1869_v5 = vsel %vm1846_vm9, %v1836_v27, %v1470_v20  ;;  %v8061_v8 = vld [vmem:[#allocation49_spill] sm:$0xff]  ;;  %v1773_v51 = vsel %vm1747_vm6, %v1740_v1, %v8064_v19  ;;  %v8065_v20 = vld [vmem:[#allocation108_spill] sm:$0xff] }
 0x26f   : > { %v1675_v30 = vsel %vm225_vm0, %v4697_v25, %v8061_v8  ;;  %v1806_v17 = vsel %vm1780_vm7, %v1773_v51, %v8066_v39  ;;  %v8084_v42 = vld [vmem:[#allocation92_spill] sm:$0xff]  ;;  %v8086_v51 = vld [vmem:[#allocation113_spill] sm:$0xff]  ;;  %v8087_v39 = vld [vmem:[#allocation91_spill] sm:$0xff] }
 0x270   : > { %v1708_v61 = vsel %vm1681_vm4, %v1675_v30, %v8063_v36  ;;  %v4701_v36 = vld [vmem:[#allocation2 + $0x168] sm:$0xff] }
 0x271   : > { %v1596_v49 = vpop.permute.xlu1 %1595  ;;  %v1598_v60 = vpop.permute.xlu0 %1597  ;;  %v1741_v3 = vsel %vm1714_vm5, %v1708_v61, %v8065_v20  ;;  %v8085_v61 = vld [vmem:[#allocation57_spill] sm:$0xff] }
 0x272   : > { %v1901_v59 = vsel %vm1879_vm10, %v1868_v7, %v1596_v49  ;;  %v1902_v31 = vsel %vm1879_vm10, %v1869_v5, %v1598_v60  ;;  %v1774_v11 = vsel %vm1747_vm6, %v1741_v3, %v8067_v41  ;;  %v8068_v7 = vld [vmem:[#allocation142_spill] sm:$0xff]  ;;  %v4698_v60 = vld [vmem:[#allocation2 + $0x140] sm:$0xff]  ;;  %v1679_v19 = vsel %vm225_vm0, %v4701_v36, %v8085_v61 }
 0x273   : > { %4565 = vmatmul.mubr.msk.f32.gmra.mrb[20].mxu0 %vm1924_vm11, %v1901_v59  ;;  %v1839_v49 = vsel %vm1813_vm8, %v1806_v17, %v8068_v7  ;;  %v1807_v27 = vsel %vm1780_vm7, %v1774_v11, %v8069_v58  ;;  %v1676_v14 = vsel %vm225_vm0, %v4698_v60, %v8071_v23  ;;  %v1712_v17 = vsel %vm1681_vm4, %v1679_v19, %v8087_v39  ;;  %v8089_v11 = vld [vmem:[#allocation112_spill] sm:$0xff] }
 0x274   : > { %4567 = vmatprep.mubr.msk.f32.mxu0 %vm1924_vm11, %v1902_v31  ;;  %v1840_v26 = vsel %vm1813_vm8, %v1807_v27, %v8070_v12  ;;  %v1709_v40 = vsel %vm1681_vm4, %v1676_v14, %v8072_v34  ;;  %v1745_v7 = vsel %vm1714_vm5, %v1712_v17, %v8089_v11  ;;  %v8092_v12 = vld [vmem:[#allocation146_spill] sm:$0xff] }
 0x275   : > { %v1472_v52 = vpop.permute.xlu1 %1471  ;;  %v1474_v63 = vpop.permute.xlu0 %1473  ;;  %v1742_v57 = vsel %vm1714_vm5, %v1709_v40, %v8074_v28  ;;  %v4702_v40 = vld [vmem:[#allocation2 + $0x170] sm:$0xff]  ;;  %v8096_v28 = vld [vmem:[#allocation93_spill] sm:$0xff] }
 0x276   : > { %v1870_v37 = vsel %vm1846_vm9, %v1837_v46, %v1472_v52  ;;  %v1871_v62 = vsel %vm1846_vm9, %v1838_v4, %v1474_v63  ;;  %v8073_v52 = vld [vmem:[#allocation53_spill] sm:$0xff]  ;;  %v1775_v50 = vsel %vm1747_vm6, %v1742_v57, %v8076_v2  ;;  %v2347_v63 = vld [vmem:[#allocation2 + $0x9] sm:$0xff] }
 0x277   : > { %v1677_v56 = vsel %vm225_vm0, %v4699_v48, %v8073_v52  ;;  %v1808_v46 = vsel %vm1780_vm7, %v1775_v50, %v8078_v21  ;;  %2636 = vrot.lane.b32.xlu1 %v2347_v63, %s4719_s25  ;;  %v8098_v50 = vld [vmem:[#allocation48_spill] sm:$0xff]  ;;  %v8100_v21 = vld [vmem:[#allocation147_spill] sm:$0xff] }
 0x278   : > { %v1710_v9 = vsel %vm1681_vm4, %v1677_v56, %v8075_v0  ;;  %v1841_v4 = vsel %vm1813_vm8, %v1808_v46, %v8080_v16  ;;  %v8097_v0 = vld [vmem:[#allocation114_spill] sm:$0xff] }
 0x279   : > { %v1600_v18 = vpop.permute.xlu1 %1599  ;;  %v1602_v47 = vpop.permute.xlu0 %1601  ;;  %v1743_v6 = vsel %vm1714_vm5, %v1710_v9, %v8077_v35  ;;  %v8099_v35 = vld [vmem:[#allocation126_spill] sm:$0xff] }
 0x27a   : > { %v1903_v13 = vsel %vm1879_vm10, %v1870_v37, %v1600_v18  ;;  %v1904_v29 = vsel %vm1879_vm10, %v1871_v62, %v1602_v47  ;;  %v8079_v37 = vld [vmem:[#allocation40_spill] sm:$0xff]  ;;  %v8082_v62 = vld [vmem:[#allocation143_spill] sm:$0xff] }
 0x27b   : > { %4568 = vmatmul.mubr.msk.f32.gmra.mrb[22].mxu0 %vm1924_vm11, %v1903_v13  ;;  %v1776_v18 = vsel %vm1747_vm6, %v1743_v6, %v8079_v37  ;;  %v8081_v13 = vld [vmem:[#allocation122_spill] sm:$0xff] }
 0x27c   : > { %4570 = vmatprep.mubr.msk.f32.mxu0 %vm1924_vm11, %v1904_v29  ;;  %v1809_v15 = vsel %vm1780_vm7, %v1776_v18, %v8081_v13  ;;  %v8083_v29 = vld [vmem:[#allocation59_spill] sm:$0xff]  ;;  %v6410_v18 = vld [vmem:[%s7708_s2] ss:$0 sm:$0xff] }
 0x27d   : > { %v1476_v43 = vpop.permute.xlu1 %1475  ;;  %v1478_v24 = vpop.permute.xlu0 %1477  ;;  %v1842_v47 = vsel %vm1813_vm8, %v1809_v15, %v8082_v62  ;;  %v1678_v25 = vsel %vm225_vm0, %v4700_v10, %v8083_v29 }
 0x27e   : > { %v1872_v59 = vsel %vm1846_vm9, %v1839_v49, %v1476_v43  ;;  %v1873_v31 = vsel %vm1846_vm9, %v1840_v26, %v1478_v24  ;;  %v1711_v1 = vsel %vm1681_vm4, %v1678_v25, %v8084_v42  ;;  %v8088_v24 = vld [vmem:[#allocation46_spill] sm:$0xff]  ;;  %v8090_v49 = vld [vmem:[#allocation125_spill] sm:$0xff] }
 0x27f   : > { %v1744_v20 = vsel %vm1714_vm5, %v1711_v1, %v8086_v51 }
 0x280   : > { %v1777_v41 = vsel %vm1747_vm6, %v1744_v20, %v8088_v24 }
 0x281   : > { %v1604_v44 = vpop.permute.xlu1 %1603  ;;  %v1606_v32 = vpop.permute.xlu0 %1605  ;;  %v1810_v58 = vsel %vm1780_vm7, %v1777_v41, %v8090_v49 }
 0x282   : > { %v1905_v5 = vsel %vm1879_vm10, %v1872_v59, %v1604_v44  ;;  %v1906_v38 = vsel %vm1879_vm10, %v1873_v31, %v1606_v32  ;;  %v8091_v59 = vld [vmem:[#allocation44_spill] sm:$0xff]  ;;  %v1843_v26 = vsel %vm1813_vm8, %v1810_v58, %v8092_v12  ;;  %v8094_v31 = vld [vmem:[#allocation145_spill] sm:$0xff] }
 0x283   : > { %4571 = vmatmul.mubr.msk.f32.gmra.mrb[24].mxu0 %vm1924_vm11, %v1905_v5  ;;  %v1778_v44 = vsel %vm1747_vm6, %v1745_v7, %v8091_v59  ;;  %v8093_v5 = vld [vmem:[#allocation124_spill] sm:$0xff] }
 0x284   : > { %4573 = vmatprep.mubr.msk.f32.mxu0 %vm1924_vm11, %v1906_v38  ;;  %v1811_v60 = vsel %vm1780_vm7, %v1778_v44, %v8093_v5  ;;  %v8095_v38 = vld [vmem:[#allocation63_spill] sm:$0xff] }
 0x285   : > { %v1480_v45 = vpop.permute.xlu1 %1479  ;;  %v1482_v53 = vpop.permute.xlu0 %1481  ;;  %v1844_v32 = vsel %vm1813_vm8, %v1811_v60, %v8094_v31  ;;  %v1680_v48 = vsel %vm225_vm0, %v4702_v40, %v8095_v38 }
 0x286   : > { %v1874_v33 = vsel %vm1846_vm9, %v1841_v4, %v1480_v45  ;;  %v1875_v8 = vsel %vm1846_vm9, %v1842_v47, %v1482_v53  ;;  %v1713_v57 = vsel %vm1681_vm4, %v1680_v48, %v8096_v28 }
 0x287   : > { %v1746_v9 = vsel %vm1714_vm5, %v1713_v57, %v8097_v0 }
 0x288   : > { %v1779_v63 = vsel %vm1747_vm6, %v1746_v9, %v8098_v50 }
 0x289   : > { %v1608_v55 = vpop.permute.xlu1 %1607  ;;  %v1610_v30 = vpop.permute.xlu0 %1609  ;;  %v1812_v6 = vsel %vm1780_vm7, %v1779_v63, %v8099_v35 }
 0x28a   : > { %v1907_v54 = vsel %vm1879_vm10, %v1874_v33, %v1608_v55  ;;  %v1908_v43 = vsel %vm1879_vm10, %v1875_v8, %v1610_v30  ;;  %v1845_v46 = vsel %vm1813_vm8, %v1812_v6, %v8100_v21 }
 0x28b   : > { %4574 = vmatmul.mubr.msk.f32.gmra.mrb[26].mxu0 %vm1924_vm11, %v1907_v54 }
 0x28c   : > { %4576 = vmatprep.mubr.msk.f32.mxu0 %vm1924_vm11, %v1908_v43 }
 0x28d   : > { %v1484_v3 = vpop.permute.xlu1 %1483  ;;  %v1486_v27 = vpop.permute.xlu0 %1485 }
 0x28e   : > { %v1876_v23 = vsel %vm1846_vm9, %v1843_v26, %v1484_v3  ;;  %v1877_v52 = vsel %vm1846_vm9, %v1844_v32, %v1486_v27 }
 0x291   : > { %v1612_v14 = vpop.permute.xlu1 %1611  ;;  %v1614_v56 = vpop.permute.xlu0 %1613 }
 0x292   : > { %v1909_v34 = vsel %vm1879_vm10, %v1876_v23, %v1612_v14  ;;  %v1910_v45 = vsel %vm1879_vm10, %v1877_v52, %v1614_v56 }
 0x293   : > { %4577 = vmatmul.mubr.msk.f32.gmra.mrb[28].mxu0 %vm1924_vm11, %v1909_v34 }
 0x294   : > { %4579 = vmatprep.mubr.msk.f32.mxu0 %vm1924_vm11, %v1910_v45 }
 0x295   : > { %v1488_v2 = vpop.permute.xlu1 %1487 }
 0x296   : > { %v1878_v53 = vsel %vm1846_vm9, %v1845_v46, %v1488_v2 }
 0x299   : > { %v1616_v22 = vpop.permute.xlu1 %1615 }
 0x29a   : > { %v1911_v37 = vsel %vm1879_vm10, %v1878_v53, %v1616_v22 }
 0x29b   : > { %4580 = vmatmul.mubr.msk.f32.gmra.mrb[30].mxu0 %vm1924_vm11, %v1911_v37 }
 0x2fe   : > { %v4536_v16 = vpop.f32.mrb[0].mxu0 }
 0x2ff   : > { %v2097_v4 = vadd.f32 %v4536_v16, %v6410_v18  ;;  %v2091_v13 = vpop.f32.mrb[1].mxu0 }
 0x300   : > { %v2092_v15 = vadd.f32 %v6410_v18, %v2091_v13 }
 0x301   : > { %v2251_v33 = vmax.f32 %v2097_v4, 0.0 }
 0x302   : > { %v2250_v55 = vmax.f32 %v2092_v15, 0.0  ;;  %v4539_v62 = vpop.f32.mrb[2].mxu0 }
 0x303   : > { %2283 = vst.msk [vmem:[#allocation2 + $0x21] sm:$0xff] %vm225_vm0, %v2251_v33  ;;  %v2107_v47 = vadd.f32 %v4539_v62, %v6410_v18  ;;  %v2101_v54 = vpop.f32.mrb[3].mxu0 }
 0x304   : > { %2282 = vst.msk [vmem:[#allocation2 + $0x19] sm:$0xff] %vm225_vm0, %v2250_v55  ;;  %v2102_v10 = vadd.f32 %v6410_v18, %v2101_v54 }
 0x305   : > { %v2253_v29 = vmax.f32 %v2107_v47, 0.0 }
 0x306   : > { %v2252_v25 = vmax.f32 %v2102_v10, 0.0  ;;  %v4542_v8 = vpop.f32.mrb[4].mxu0 }
 0x307   : > { %2285 = vst.msk [vmem:[#allocation2 + $0x39] sm:$0xff] %vm225_vm0, %v2253_v29  ;;  %v2117_v30 = vadd.f32 %v4542_v8, %v6410_v18  ;;  %v2111_v42 = vpop.f32.mrb[5].mxu0 }
 0x308   : > { %2284 = vst.msk [vmem:[#allocation2 + $0x31] sm:$0xff] %vm225_vm0, %v2252_v25  ;;  %v2112_v1 = vadd.f32 %v6410_v18, %v2111_v42 }
 0x309   : > { %v2255_v43 = vmax.f32 %v2117_v30, 0.0 }
 0x30a   : > { %v2254_v36 = vmax.f32 %v2112_v1, 0.0  ;;  %v6422_v61 = vld [vmem:[#allocation2 + $0x21] sm:$0xff] }
 0x30b   : > { %2287 = vst.msk [vmem:[#allocation2 + $0x51] sm:$0xff] %vm225_vm0, %v2255_v43  ;;  %2640 = vrot.lane.b32.xlu1 %v6422_v61, %s4719_s25  ;;  %v6427_v19 = vld [vmem:[#allocation2 + $0x19] sm:$0xff] }
 0x30c   : > { %2286 = vst.msk [vmem:[#allocation2 + $0x49] sm:$0xff] %vm225_vm0, %v2254_v36  ;;  %2638 = vrot.lane.b32.xlu0 %v6427_v19, %s4719_s25 }
 0x30e   : > { %v4545_v51 = vpop.f32.mrb[6].mxu0  ;;  %v6432_v20 = vld [vmem:[#allocation2 + $0x39] sm:$0xff] }
 0x30f   : > { %v2127_v3 = vadd.f32 %v4545_v51, %v6410_v18  ;;  %2644 = vrot.lane.b32.xlu1 %v6432_v20, %s4719_s25  ;;  %v2121_v39 = vpop.f32.mrb[7].mxu0  ;;  %v6437_v17 = vld [vmem:[#allocation2 + $0x31] sm:$0xff] }
 0x310   : > { %v2122_v24 = vadd.f32 %v6410_v18, %v2121_v39  ;;  %2642 = vrot.lane.b32.xlu0 %v6437_v17, %s4719_s25 }
 0x311   : > { %v2257_v41 = vmax.f32 %v2127_v3, 0.0 }
 0x312   : > { %v2256_v11 = vmax.f32 %v2122_v24, 0.0  ;;  %v6442_v7 = vld [vmem:[#allocation2 + $0x51] sm:$0xff] }
 0x313   : > { %2289 = vst.msk [vmem:[#allocation2 + $0x69] sm:$0xff] %vm225_vm0, %v2257_v41  ;;  %2648 = vrot.lane.b32.xlu1 %v6442_v7, %s4719_s25  ;;  %v6447_v49 = vld [vmem:[#allocation2 + $0x49] sm:$0xff] }
 0x314   : > { %2288 = vst.msk [vmem:[#allocation2 + $0x61] sm:$0xff] %vm225_vm0, %v2256_v11  ;;  %2646 = vrot.lane.b32.xlu0 %v6447_v49, %s4719_s25 }
 0x316   : > { %v4548_v58 = vpop.f32.mrb[8].mxu0 }
 0x317   : > { %v2137_v27 = vadd.f32 %v4548_v58, %v6410_v18  ;;  %v2131_v59 = vpop.f32.mrb[9].mxu0 }
 0x318   : > { %v2132_v44 = vadd.f32 %v6410_v18, %v2131_v59 }
 0x319   : > { %v2259_v12 = vmax.f32 %v2137_v27, 0.0 }
 0x31a   : > { %v2258_v26 = vmax.f32 %v2132_v44, 0.0  ;;  %v6454_v5 = vld [vmem:[#allocation2 + $0x69] sm:$0xff] }
 0x31b   : > { %2291 = vst.msk [vmem:[#allocation2 + $0x81] sm:$0xff] %vm225_vm0, %v2259_v12  ;;  %2652 = vrot.lane.b32.xlu1 %v6454_v5, %s4719_s25  ;;  %v6459_v60 = vld [vmem:[#allocation2 + $0x61] sm:$0xff] }
 0x31c   : > { %2290 = vst.msk [vmem:[#allocation2 + $0x79] sm:$0xff] %vm225_vm0, %v2258_v26  ;;  %2650 = vrot.lane.b32.xlu0 %v6459_v60, %s4719_s25 }
 0x31e   : > { %v4551_v23 = vpop.f32.mrb[10].mxu0 }
 0x31f   : > { %v2147_v14 = vadd.f32 %v4551_v23, %v6410_v18  ;;  %v2141_v31 = vpop.f32.mrb[11].mxu0 }
 0x320   : > { %v2142_v32 = vadd.f32 %v6410_v18, %v2141_v31 }
 0x321   : > { %v2261_v34 = vmax.f32 %v2147_v14, 0.0 }
 0x322   : > { %v2260_v40 = vmax.f32 %v2142_v32, 0.0  ;;  %v6466_v38 = vld [vmem:[#allocation2 + $0x81] sm:$0xff] }
 0x323   : > { %2293 = vst.msk [vmem:[#allocation2 + $0x99] sm:$0xff] %vm225_vm0, %v2261_v34  ;;  %2656 = vrot.lane.b32.xlu1 %v6466_v38, %s4719_s25  ;;  %v6471_v48 = vld [vmem:[#allocation2 + $0x79] sm:$0xff] }
 0x324   : > { %2292 = vst.msk [vmem:[#allocation2 + $0x91] sm:$0xff] %vm225_vm0, %v2260_v40  ;;  %2654 = vrot.lane.b32.xlu0 %v6471_v48, %s4719_s25 }
 0x326   : > { %v4554_v52 = vpop.f32.mrb[12].mxu0 }
 0x327   : > { %v2157_v56 = vadd.f32 %v4554_v52, %v6410_v18  ;;  %v2151_v28 = vpop.f32.mrb[13].mxu0 }
 0x328   : > { %v2152_v57 = vadd.f32 %v6410_v18, %v2151_v28 }
 0x329   : > { %v2263_v45 = vmax.f32 %v2157_v56, 0.0 }
 0x32a   : > { %v2262_v0 = vmax.f32 %v2152_v57, 0.0  ;;  %v6478_v9 = vld [vmem:[#allocation2 + $0x99] sm:$0xff] }
 0x32b   : > { %2295 = vst.msk [vmem:[#allocation2 + $0xb1] sm:$0xff] %vm225_vm0, %v2263_v45  ;;  %2660 = vrot.lane.b32.xlu1 %v6478_v9, %s4719_s25  ;;  %v6483_v2 = vld [vmem:[#allocation2 + $0x91] sm:$0xff] }
 0x32c   : > { %2294 = vst.msk [vmem:[#allocation2 + $0xa9] sm:$0xff] %vm225_vm0, %v2262_v0  ;;  %2658 = vrot.lane.b32.xlu0 %v6483_v2, %s4719_s25 }
 0x32e   : > { %v4557_v50 = vpop.f32.mrb[14].mxu0 }
 0x32f   : > { %v2167_v63 = vadd.f32 %v4557_v50, %v6410_v18  ;;  %v2161_v35 = vpop.f32.mrb[15].mxu0 }
 0x330   : > { %v2162_v6 = vadd.f32 %v6410_v18, %v2161_v35 }
 0x331   : > { %v2265_v21 = vmax.f32 %v2167_v63, 0.0 }
 0x332   : > { %v2264_v46 = vmax.f32 %v2162_v6, 0.0  ;;  %v2361_v53 = vld [vmem:[#allocation2 + $0xb1] sm:$0xff] }
 0x333   : > { %2297 = vst.msk [vmem:[#allocation2 + $0xc9] sm:$0xff] %vm225_vm0, %v2265_v21  ;;  %2664 = vrot.lane.b32.xlu1 %v2361_v53, %s4719_s25  ;;  %v2360_v22 = vld [vmem:[#allocation2 + $0xa9] sm:$0xff] }
 0x334   : > { %2296 = vst.msk [vmem:[#allocation2 + $0xc1] sm:$0xff] %vm225_vm0, %v2264_v46  ;;  %2662 = vrot.lane.b32.xlu0 %v2360_v22, %s4719_s25 }
 0x336   : > { %v4560_v37 = vpop.f32.mrb[16].mxu0 }
 0x337   : > { %v2177_v16 = vadd.f32 %v4560_v37, %v6410_v18  ;;  %v2171_v4 = vpop.f32.mrb[17].mxu0 }
 0x338   : > { %v2172_v13 = vadd.f32 %v6410_v18, %v2171_v4 }
 0x339   : > { %v2267_v15 = vmax.f32 %v2177_v16, 0.0 }
 0x33a   : > { %v2266_v33 = vmax.f32 %v2172_v13, 0.0  ;;  %v2363_v55 = vld [vmem:[#allocation2 + $0xc9] sm:$0xff] }
 0x33b   : > { %2299 = vst.msk [vmem:[#allocation2 + $0xe1] sm:$0xff] %vm225_vm0, %v2267_v15  ;;  %2668 = vrot.lane.b32.xlu1 %v2363_v55, %s4719_s25  ;;  %v2362_v62 = vld [vmem:[#allocation2 + $0xc1] sm:$0xff] }
 0x33c   : > { %2298 = vst.msk [vmem:[#allocation2 + $0xd9] sm:$0xff] %vm225_vm0, %v2266_v33  ;;  %2666 = vrot.lane.b32.xlu0 %v2362_v62, %s4719_s25 }
 0x33e   : > { %v4563_v47 = vpop.f32.mrb[18].mxu0 }
 0x33f   : > { %v2187_v54 = vadd.f32 %v4563_v47, %v6410_v18  ;;  %v2181_v10 = vpop.f32.mrb[19].mxu0 }
 0x340   : > { %v2182_v29 = vadd.f32 %v6410_v18, %v2181_v10 }
 0x341   : > { %v2269_v25 = vmax.f32 %v2187_v54, 0.0 }
 0x342   : > { %v2268_v8 = vmax.f32 %v2182_v29, 0.0  ;;  %v2365_v30 = vld [vmem:[#allocation2 + $0xe1] sm:$0xff] }
 0x343   : > { %2301 = vst.msk [vmem:[#allocation2 + $0xf9] sm:$0xff] %vm225_vm0, %v2269_v25  ;;  %2672 = vrot.lane.b32.xlu1 %v2365_v30, %s4719_s25  ;;  %v2364_v42 = vld [vmem:[#allocation2 + $0xd9] sm:$0xff]  ;;  %v2378_v30 = vld [vmem:[#allocation2 + $0x2] sm:$0xff] }
 0x344   : > { %2300 = vst.msk [vmem:[#allocation2 + $0xf1] sm:$0xff] %vm225_vm0, %v2268_v8  ;;  %2670 = vrot.lane.b32.xlu0 %v2364_v42, %s4719_s25  ;;  %v2379_v8 = vld [vmem:[#allocation2 + $0xa] sm:$0xff]  ;;  %v6544_v42 = vld [vmem:[#allocation2 + $0x22] sm:$0xff] }
 0x346   : > { %v4566_v1 = vpop.f32.mrb[20].mxu0 }
 0x347   : > { %v2197_v43 = vadd.f32 %v4566_v1, %v6410_v18  ;;  %v2191_v36 = vpop.f32.mrb[21].mxu0  ;;  %v6552_v1 = vld [vmem:[#allocation2 + $0x3a] sm:$0xff] }
 0x348   : > { %v2192_v51 = vadd.f32 %v6410_v18, %v2191_v36  ;;  %v6560_v36 = vld [vmem:[#allocation2 + $0x52] sm:$0xff] }
 0x349   : > { %v2271_v3 = vmax.f32 %v2197_v43, 0.0  ;;  %v6556_v43 = vld [vmem:[#allocation2 + $0x32] sm:$0xff] }
 0x34a   : > { %v2270_v39 = vmax.f32 %v2192_v51, 0.0  ;;  %v2367_v24 = vld [vmem:[#allocation2 + $0xf9] sm:$0xff]  ;;  %v6564_v51 = vld [vmem:[#allocation2 + $0x4a] sm:$0xff] }
 0x34b   : > { %2303 = vst.msk [vmem:[#allocation2 + $0x111] sm:$0xff] %vm225_vm0, %v2271_v3  ;;  %2676 = vrot.lane.b32.xlu1 %v2367_v24, %s4719_s25  ;;  %v2366_v41 = vld [vmem:[#allocation2 + $0xf1] sm:$0xff]  ;;  %v6576_v24 = vld [vmem:[#allocation2 + $0x82] sm:$0xff] }
 0x34c   : > { %2302 = vst.msk [vmem:[#allocation2 + $0x109] sm:$0xff] %vm225_vm0, %v2270_v39  ;;  %2674 = vrot.lane.b32.xlu0 %v2366_v41, %s4719_s25  ;;  %v6568_v3 = vld [vmem:[#allocation2 + $0x6a] sm:$0xff]  ;;  %v6572_v39 = vld [vmem:[#allocation2 + $0x62] sm:$0xff]  ;;  %v6580_v41 = vld [vmem:[#allocation2 + $0x7a] sm:$0xff] }
 0x34e   : > { %v4569_v11 = vpop.f32.mrb[22].mxu0 }
 0x34f   : > { %v2207_v58 = vadd.f32 %v4569_v11, %v6410_v18  ;;  %v2201_v27 = vpop.f32.mrb[23].mxu0  ;;  %v6584_v11 = vld [vmem:[#allocation2 + $0x9a] sm:$0xff] }
 0x350   : > { %v2202_v59 = vadd.f32 %v6410_v18, %v2201_v27  ;;  %v6592_v27 = vld [vmem:[#allocation2 + $0xb2] sm:$0xff] }
 0x351   : > { %v2273_v44 = vmax.f32 %v2207_v58, 0.0  ;;  %v6588_v58 = vld [vmem:[#allocation2 + $0x92] sm:$0xff] }
 0x352   : > { %v2272_v12 = vmax.f32 %v2202_v59, 0.0  ;;  %v2369_v26 = vld [vmem:[#allocation2 + $0x111] sm:$0xff] }
 0x353   : > { %2305 = vst.msk [vmem:[#allocation2 + $0x129] sm:$0xff] %vm225_vm0, %v2273_v44  ;;  %2680 = vrot.lane.b32.xlu1 %v2369_v26, %s4719_s25  ;;  %v2368_v23 = vld [vmem:[#allocation2 + $0x109] sm:$0xff] }
 0x354   : > { %2304 = vst.msk [vmem:[#allocation2 + $0x121] sm:$0xff] %vm225_vm0, %v2272_v12  ;;  %2678 = vrot.lane.b32.xlu0 %v2368_v23, %s4719_s25  ;;  %v6596_v59 = vld [vmem:[#allocation2 + $0xaa] sm:$0xff]  ;;  %v6604_v12 = vld [vmem:[#allocation2 + $0xc2] sm:$0xff]  ;;  %v6612_v23 = vld [vmem:[#allocation2 + $0xda] sm:$0xff] }
 0x355   : > { %v6600_v44 = vld [vmem:[#allocation2 + $0xca] sm:$0xff]  ;;  %v6608_v26 = vld [vmem:[#allocation2 + $0xe2] sm:$0xff] }
 0x356   : > { %v4572_v14 = vpop.f32.mrb[24].mxu0 }
 0x357   : > { %v2217_v31 = vadd.f32 %v4572_v14, %v6410_v18  ;;  %v2211_v32 = vpop.f32.mrb[25].mxu0  ;;  %v6616_v14 = vld [vmem:[#allocation2 + $0xfa] sm:$0xff] }
 0x358   : > { %v2212_v34 = vadd.f32 %v6410_v18, %v2211_v32  ;;  %8101 = vst [vmem:[#allocation3_spill] sm:$0xff] %v6616_v14  ;;  %v2401_v32 = vld [vmem:[#allocation2 + $0x112] sm:$0xff] }
 0x359   : > { %v2275_v40 = vmax.f32 %v2217_v31, 0.0  ;;  %v6620_v31 = vld [vmem:[#allocation2 + $0xf2] sm:$0xff] }
 0x35a   : > { %v2274_v52 = vmax.f32 %v2212_v34, 0.0  ;;  %v2371_v56 = vld [vmem:[#allocation2 + $0x129] sm:$0xff]  ;;  %v6624_v34 = vpop.permute.xlu1 %2636 }
 0x35b   : > { %2307 = vst.msk [vmem:[#allocation2 + $0x141] sm:$0xff] %vm225_vm0, %v2275_v40  ;;  %2684 = vrot.lane.b32.xlu1 %v2371_v56, %s4719_s25  ;;  %v2370_v28 = vld [vmem:[#allocation2 + $0x121] sm:$0xff]  ;;  %v2400_v40 = vld [vmem:[#allocation2 + $0x10a] sm:$0xff] }
 0x35c   : > { %2306 = vst.msk [vmem:[#allocation2 + $0x139] sm:$0xff] %vm225_vm0, %v2274_v52  ;;  %2682 = vrot.lane.b32.xlu0 %v2370_v28, %s4719_s25  ;;  %v6627_v52 = vpop.permute.xlu0 %2634  ;;  %v2403_v56 = vld [vmem:[#allocation2 + $0x12a] sm:$0xff]  ;;  %v2402_v28 = vld [vmem:[#allocation2 + $0x122] sm:$0xff] }
 0x35e   : > { %v4575_v57 = vpop.f32.mrb[26].mxu0 }
 0x35f   : > { %v2227_v45 = vadd.f32 %v4575_v57, %v6410_v18  ;;  %v2221_v0 = vpop.f32.mrb[27].mxu0 }
 0x360   : > { %v2222_v50 = vadd.f32 %v6410_v18, %v2221_v0 }
 0x361   : > { %v2277_v63 = vmax.f32 %v2227_v45, 0.0 }
 0x362   : > { %v2276_v35 = vmax.f32 %v2222_v50, 0.0  ;;  %v2373_v6 = vld [vmem:[#allocation2 + $0x141] sm:$0xff] }
 0x363   : > { %2309 = vst.msk [vmem:[#allocation2 + $0x159] sm:$0xff] %vm225_vm0, %v2277_v63  ;;  %2688 = vrot.lane.b32.xlu1 %v2373_v6, %s4719_s25  ;;  %v2372_v21 = vld [vmem:[#allocation2 + $0x139] sm:$0xff]  ;;  %v2405_v0 = vld [vmem:[#allocation2 + $0x142] sm:$0xff] }
 0x364   : > { %2308 = vst.msk [vmem:[#allocation2 + $0x151] sm:$0xff] %vm225_vm0, %v2276_v35  ;;  %2686 = vrot.lane.b32.xlu0 %v2372_v21, %s4719_s25  ;;  %v2404_v50 = vld [vmem:[#allocation2 + $0x13a] sm:$0xff] }
 0x366   : > { %v4578_v46 = vpop.f32.mrb[28].mxu0 }
 0x367   : > { %v2237_v53 = vadd.f32 %v4578_v46, %v6410_v18  ;;  %v2231_v22 = vpop.f32.mrb[29].mxu0 }
 0x368   : > { %v2232_v37 = vadd.f32 %v6410_v18, %v2231_v22 }
 0x369   : > { %v2279_v16 = vmax.f32 %v2237_v53, 0.0 }
 0x36a   : > { %v2278_v4 = vmax.f32 %v2232_v37, 0.0  ;;  %v2375_v13 = vld [vmem:[#allocation2 + $0x159] sm:$0xff] }
 0x36b   : > { %2311 = vst.msk [vmem:[#allocation2 + $0x171] sm:$0xff] %vm225_vm0, %v2279_v16  ;;  %2692 = vrot.lane.b32.xlu1 %v2375_v13, %s4719_s25  ;;  %v2374_v15 = vld [vmem:[#allocation2 + $0x151] sm:$0xff]  ;;  %v2407_v63 = vld [vmem:[#allocation2 + $0x15a] sm:$0xff] }
 0x36c   : > { %2310 = vst.msk [vmem:[#allocation2 + $0x169] sm:$0xff] %vm225_vm0, %v2278_v4  ;;  %2690 = vrot.lane.b32.xlu0 %v2374_v15, %s4719_s25  ;;  %v2406_v6 = vld [vmem:[#allocation2 + $0x152] sm:$0xff]  ;;  %v6648_v37 = vld [vmem:[#allocation2 + $0x20] sm:$0xff] }
 0x36d   : > { %v6652_v4 = vld [vmem:[#allocation2 + $0x18] sm:$0xff] }
 0x36e   : > { %v4581_v33 = vpop.f32.mrb[30].mxu0  ;;  %v6660_v15 = vld [vmem:[#allocation2 + $0x38] sm:$0xff] }
 0x36f   : > { %v2247_v55 = vadd.f32 %v4581_v33, %v6410_v18  ;;  %v2241_v62 = vpop.f32.mrb[31].mxu0 }
 0x370   : > { %v2242_v47 = vadd.f32 %v6410_v18, %v2241_v62  ;;  %v6548_v18 = vld [vmem:[#allocation2 + $0x1a] sm:$0xff] }
 0x371   : > { %v2281_v54 = vmax.f32 %v2247_v55, 0.0  ;;  %v6664_v55 = vld [vmem:[#allocation2 + $0x30] sm:$0xff] }
 0x372   : > { %v2280_v10 = vmax.f32 %v2242_v47, 0.0  ;;  %v2377_v29 = vld [vmem:[#allocation2 + $0x171] sm:$0xff] }
 0x373   : > { %2313 = vst.msk [vmem:[#allocation2 + $0x189] sm:$0xff] %vm225_vm0, %v2281_v54  ;;  %2696 = vrot.lane.b32.xlu1 %v2377_v29, %s4719_s25  ;;  %v2376_v25 = vld [vmem:[#allocation2 + $0x169] sm:$0xff]  ;;  %v2409_v46 = vld [vmem:[#allocation2 + $0x172] sm:$0xff] }
 0x374   : > { %2312 = vst.msk [vmem:[#allocation2 + $0x181] sm:$0xff] %vm225_vm0, %v2280_v10  ;;  %2694 = vrot.lane.b32.xlu0 %v2376_v25, %s4719_s25  ;;  %v2408_v53 = vld [vmem:[#allocation2 + $0x16a] sm:$0xff] }
 0x375   : > { %v6672_v47 = vld [vmem:[#allocation2 + $0x50] sm:$0xff]  ;;  %v6676_v10 = vld [vmem:[#allocation2 + $0x48] sm:$0xff] }
 0x376   : > { %v6684_v25 = vld [vmem:[#allocation2 + $0x68] sm:$0xff] }
 0x377   : > { %2764 = vrot.lane.b32.xlu1 %v2379_v8, %s4720_s26 }
 0x378   : > { %2762 = vrot.lane.b32.xlu0 %v2378_v30, %s4720_s26  ;;  %v6688_v30 = vld [vmem:[#allocation2 + $0x60] sm:$0xff] }
 0x37b   : > { %2768 = vrot.lane.b32.xlu1 %v6544_v42, %s4720_s26 }
 0x37c   : > { %2766 = vrot.lane.b32.xlu0 %v6548_v18, %s4720_s26 }
 0x37d   : > { %v6632_v57 = vpop.permute.xlu1 %2640 }
 0x37e   : > { %v6634_v45 = vpop.permute.xlu0 %2638 }
 0x37f   : > { %2772 = vrot.lane.b32.xlu1 %v6552_v1, %s4720_s26 }
 0x380   : > { %2770 = vrot.lane.b32.xlu0 %v6556_v43, %s4720_s26 }
 0x381   : > { %v6638_v35 = vpop.permute.xlu1 %2644 }
 0x382   : > { %v6641_v21 = vpop.permute.xlu0 %2642 }
 0x383   : > { %2776 = vrot.lane.b32.xlu1 %v6560_v36, %s4720_s26 }
 0x384   : > { %2774 = vrot.lane.b32.xlu0 %v6564_v51, %s4720_s26 }
 0x385   : > { %v6646_v22 = vpop.permute.xlu1 %2648 }
 0x386   : > { %8102 = vst [vmem:[#allocation61_spill] sm:$0xff] %v6646_v22  ;;  %v6650_v16 = vpop.permute.xlu0 %2646 }
 0x387   : > { %2780 = vrot.lane.b32.xlu1 %v6568_v3, %s4720_s26 }
 0x388   : > { %2778 = vrot.lane.b32.xlu0 %v6572_v39, %s4720_s26 }
 0x38b   : > { %2784 = vrot.lane.b32.xlu1 %v6576_v24, %s4720_s26 }
 0x38c   : > { %2782 = vrot.lane.b32.xlu0 %v6580_v41, %s4720_s26 }
 0x38d   : > { %v6658_v13 = vpop.permute.xlu1 %2652 }
 0x38e   : > { %8103 = vst [vmem:[#allocation4_spill] sm:$0xff] %v6658_v13  ;;  %v6662_v33 = vpop.permute.xlu0 %2650 }
 0x38f   : > { %2788 = vrot.lane.b32.xlu1 %v6584_v11, %s4720_s26  ;;  %8104 = vst [vmem:[#allocation6_spill] sm:$0xff] %v6662_v33  ;;  %v6760_v33 = vld [vmem:[#allocation2 + $0xf0] sm:$0xff] }
 0x390   : > { %2786 = vrot.lane.b32.xlu0 %v6588_v58, %s4720_s26 }
 0x393   : > { %2792 = vrot.lane.b32.xlu1 %v6592_v27, %s4720_s26 }
 0x394   : > { %2790 = vrot.lane.b32.xlu0 %v6596_v59, %s4720_s26 }
 0x395   : > { %v6670_v62 = vpop.permute.xlu1 %2656 }
 0x396   : > { %8105 = vst [vmem:[#allocation66_spill] sm:$0xff] %v6670_v62  ;;  %v6674_v54 = vpop.permute.xlu0 %2654 }
 0x397   : > { %2796 = vrot.lane.b32.xlu1 %v6600_v44, %s4720_s26  ;;  %8106 = vst [vmem:[#allocation65_spill] sm:$0xff] %v6674_v54  ;;  %v6748_v54 = vld [vmem:[#allocation2 + $0xd8] sm:$0xff] }
 0x398   : > { %2794 = vrot.lane.b32.xlu0 %v6604_v12, %s4720_s26 }
 0x39b   : > { %2800 = vrot.lane.b32.xlu1 %v6608_v26, %s4720_s26 }
 0x39c   : > { %2798 = vrot.lane.b32.xlu0 %v6612_v23, %s4720_s26 }
 0x39d   : > { %v6682_v29 = vpop.permute.xlu1 %2660 }
 0x39e   : > { %8107 = vst [vmem:[#allocation10_spill] sm:$0xff] %v6682_v29  ;;  %v6686_v8 = vpop.permute.xlu0 %2658 }
 0x39f   : > { %2804 = vrot.lane.b32.xlu1 %v6616_v14, %s4720_s26  ;;  %8108 = vst [vmem:[#allocation8_spill] sm:$0xff] %v6686_v8  ;;  %v6736_v8 = vld [vmem:[#allocation2 + $0xc0] sm:$0xff]  ;;  %v6772_v14 = vld [vmem:[#allocation2 + $0x108] sm:$0xff] }
 0x3a0   : > { %2802 = vrot.lane.b32.xlu0 %v6620_v31, %s4720_s26  ;;  %8128 = vst [vmem:[#allocation5_spill] sm:$0xff] %v6772_v14 }
 0x3a3   : > { %2808 = vrot.lane.b32.xlu1 %v2401_v32, %s4720_s26 }
 0x3a4   : > { %2806 = vrot.lane.b32.xlu0 %v2400_v40, %s4720_s26  ;;  %v6696_v40 = vld [vmem:[#allocation2 + $0x80] sm:$0xff] }
 0x3a5   : > { %v6694_v32 = vpop.permute.xlu1 %2664 }
 0x3a6   : > { %8109 = vst [vmem:[#allocation69_spill] sm:$0xff] %v6694_v32 }
 0x3a7   : > { %2812 = vrot.lane.b32.xlu1 %v2403_v56, %s4720_s26  ;;  %v6698_v56 = vpop.permute.xlu0 %2662 }
 0x3a8   : > { %2810 = vrot.lane.b32.xlu0 %v2402_v28, %s4720_s26  ;;  %8110 = vst [vmem:[#allocation68_spill] sm:$0xff] %v6698_v56  ;;  %v6700_v28 = vld [vmem:[#allocation2 + $0x78] sm:$0xff]  ;;  %v6724_v56 = vld [vmem:[#allocation2 + $0xa8] sm:$0xff] }
 0x3a9   : > { %8118 = vst [vmem:[#allocation19_spill] sm:$0xff] %v6724_v56 }
 0x3ab   : > { %2816 = vrot.lane.b32.xlu1 %v2405_v0, %s4720_s26 }
 0x3ac   : > { %2814 = vrot.lane.b32.xlu0 %v2404_v50, %s4720_s26  ;;  %v6708_v50 = vld [vmem:[#allocation2 + $0x98] sm:$0xff] }
 0x3ad   : > { %v6706_v0 = vpop.permute.xlu1 %2668  ;;  %8112 = vst [vmem:[#allocation71_spill] sm:$0xff] %v6708_v50 }
 0x3ae   : > { %8111 = vst [vmem:[#allocation13_spill] sm:$0xff] %v6706_v0 }
 0x3af   : > { %2820 = vrot.lane.b32.xlu1 %v2407_v63, %s4720_s26  ;;  %v6710_v63 = vpop.permute.xlu0 %2666 }
 0x3b0   : > { %2818 = vrot.lane.b32.xlu0 %v2406_v6, %s4720_s26  ;;  %8113 = vst [vmem:[#allocation11_spill] sm:$0xff] %v6710_v63  ;;  %v6712_v6 = vld [vmem:[#allocation2 + $0x90] sm:$0xff]  ;;  %v6732_v63 = vld [vmem:[#allocation2 + $0xc8] sm:$0xff] }
 0x3b1   : > { %8114 = vst [vmem:[#allocation70_spill] sm:$0xff] %v6712_v6 }
 0x3b3   : > { %2824 = vrot.lane.b32.xlu1 %v2409_v46, %s4720_s26 }
 0x3b4   : > { %2822 = vrot.lane.b32.xlu0 %v2408_v53, %s4720_s26  ;;  %v6720_v53 = vld [vmem:[#allocation2 + $0xb0] sm:$0xff] }
 0x3b5   : > { %v6718_v46 = vpop.permute.xlu1 %2672  ;;  %8116 = vst [vmem:[#allocation14_spill] sm:$0xff] %v6720_v53 }
 0x3b6   : > { %8115 = vst [vmem:[#allocation16_spill] sm:$0xff] %v6718_v46  ;;  %v6722_v32 = vpop.permute.xlu0 %2670 }
 0x3b7   : > { %2892 = vrot.lane.b32.xlu1 %v6648_v37, %s4721_s27  ;;  %8117 = vst [vmem:[#allocation72_spill] sm:$0xff] %v6722_v32  ;;  %v6744_v32 = vld [vmem:[#allocation2 + $0xe0] sm:$0xff] }
 0x3b8   : > { %2890 = vrot.lane.b32.xlu0 %v6652_v4, %s4721_s27 }
 0x3bb   : > { %2896 = vrot.lane.b32.xlu1 %v6660_v15, %s4721_s27 }
 0x3bc   : > { %2894 = vrot.lane.b32.xlu0 %v6664_v55, %s4721_s27 }
 0x3bd   : > { %v6730_v0 = vpop.permute.xlu1 %2676 }
 0x3be   : > { %8119 = vst [vmem:[#allocation17_spill] sm:$0xff] %v6730_v0  ;;  %v6734_v29 = vpop.permute.xlu0 %2674 }
 0x3bf   : > { %2900 = vrot.lane.b32.xlu1 %v6672_v47, %s4721_s27  ;;  %8120 = vst [vmem:[#allocation23_spill] sm:$0xff] %v6734_v29  ;;  %v6756_v29 = vld [vmem:[#allocation2 + $0xf8] sm:$0xff] }
 0x3c0   : > { %2898 = vrot.lane.b32.xlu0 %v6676_v10, %s4721_s27 }
 0x3c3   : > { %2904 = vrot.lane.b32.xlu1 %v6684_v25, %s4721_s27 }
 0x3c4   : > { %2902 = vrot.lane.b32.xlu0 %v6688_v30, %s4721_s27 }
 0x3c5   : > { %v6742_v46 = vpop.permute.xlu1 %2680 }
 0x3c6   : > { %8121 = vst [vmem:[#allocation74_spill] sm:$0xff] %v6742_v46  ;;  %v6746_v62 = vpop.permute.xlu0 %2678 }
 0x3c7   : > { %2908 = vrot.lane.b32.xlu1 %v6696_v40, %s4721_s27  ;;  %8122 = vst [vmem:[#allocation21_spill] sm:$0xff] %v6746_v62  ;;  %v6768_v62 = vld [vmem:[#allocation2 + $0x110] sm:$0xff] }
 0x3c8   : > { %2906 = vrot.lane.b32.xlu0 %v6700_v28, %s4721_s27  ;;  %8126 = vst [vmem:[#allocation94_spill] sm:$0xff] %v6768_v62 }
 0x3cb   : > { %2912 = vrot.lane.b32.xlu1 %v6708_v50, %s4721_s27 }
 0x3cc   : > { %2910 = vrot.lane.b32.xlu0 %v6712_v6, %s4721_s27 }
 0x3cd   : > { %v6754_v0 = vpop.permute.xlu1 %2684 }
 0x3ce   : > { %8123 = vst [vmem:[#allocation95_spill] sm:$0xff] %v6754_v0  ;;  %v6758_v13 = vpop.permute.xlu0 %2682 }
 0x3cf   : > { %2916 = vrot.lane.b32.xlu1 %v6720_v53, %s4721_s27  ;;  %8124 = vst [vmem:[#allocation73_spill] sm:$0xff] %v6758_v13 }
 0x3d0   : > { %2914 = vrot.lane.b32.xlu0 %v6724_v56, %s4721_s27 }
 0x3d3   : > { %2920 = vrot.lane.b32.xlu1 %v6732_v63, %s4721_s27 }
 0x3d4   : > { %2918 = vrot.lane.b32.xlu0 %v6736_v8, %s4721_s27 }
 0x3d5   : > { %v6766_v46 = vpop.permute.xlu1 %2688 }
 0x3d6   : > { %8125 = vst [vmem:[#allocation7_spill] sm:$0xff] %v6766_v46  ;;  %v6770_v22 = vpop.permute.xlu0 %2686  ;;  %v3882_v46 = vld [vmem:[%s7709_s3] sm:$0xff] }
 0x3d7   : > { %2924 = vrot.lane.b32.xlu1 %v6744_v32, %s4721_s27  ;;  %8127 = vst [vmem:[#allocation52_spill] sm:$0xff] %v6770_v22  ;;  %v3883_v22 = vld [vmem:[%s7709_s3 + $0x8] sm:$0xff] }
 0x3d8   : > { %2922 = vrot.lane.b32.xlu0 %v6748_v54, %s4721_s27 }
 0x3db   : > { %2928 = vrot.lane.b32.xlu1 %v6756_v29, %s4721_s27 }
 0x3dc   : > { %2926 = vrot.lane.b32.xlu0 %v6760_v33, %s4721_s27 }
 0x3dd   : > { %v6778_v0 = vpop.permute.xlu1 %2692 }
 0x3de   : > { %8129 = vst [vmem:[#allocation128_spill] sm:$0xff] %v6778_v0  ;;  %v6780_v13 = vpop.permute.xlu0 %2690 }
 0x3df   : > { %2932 = vrot.lane.b32.xlu1 %v6768_v62, %s4721_s27  ;;  %8130 = vst [vmem:[#allocation50_spill] sm:$0xff] %v6780_v13 }
 0x3e0   : > { %2930 = vrot.lane.b32.xlu0 %v6772_v14, %s4721_s27  ;;  %v4648_v14 = vpack.c.bf16 %v3883_v22, %v3882_v46 }
 0x3e2   : > { %4649 = vmatprep.subr.bf16.mxu1 %v4648_v14 }
 0x3e3   : > { %3020 = vrot.lane.b32.xlu1 %v6422_v61, %s4722_s28  ;;  %4651 = vmatpush3.bf16.msra.mxu1 %v4648_v14  ;;  %v3884_v61 = vld [vmem:[%s7709_s3 + $0x10] sm:$0xff]  ;;  %v3886_v14 = vld [vmem:[%s7709_s3 + $0x20] sm:$0xf] }
 0x3e4   : > { %3018 = vrot.lane.b32.xlu0 %v6427_v19, %s4722_s28  ;;  %v3885_v19 = vld [vmem:[%s7709_s3 + $0x18] sm:$0xff] }
 0x3e5   : > { %v6792_v62 = vpop.permute.xlu1 %2696  ;;  %v4652_v22 = vpack.c.bf16 %v3885_v19, %v3884_v61 }
 0x3e6   : > { %8131 = vst [vmem:[#allocation127_spill] sm:$0xff] %v6792_v62  ;;  %v6794_v0 = vpop.permute.xlu0 %2694 }
 0x3e7   : > { %8132 = vst [vmem:[#allocation27_spill] sm:$0xff] %v6794_v0  ;;  %3148 = vrot.lane.b32.xlu1 %v6544_v42, %s4723_s29  ;;  %4653 = vmatprep.subr.bf16.mxu1 %v4652_v22 }
 0x3e8   : > { %3146 = vrot.lane.b32.xlu0 %v6548_v18, %s4723_s29  ;;  %4655 = vmatpush3.bf16.msra.mxu1 %v4652_v22 }
 0x3e9   : > { %v6806_v62 = vpop.permute.xlu1 %2764  ;;  %4590 = vmatprep.subr.msk.mxu1 %vm2021_vm3, %v3886_v14 }
 0x3ea   : > { %v6808_v46 = vpop.permute.xlu0 %2762 }
 0x3eb   : > { %3276 = vrot.lane.b32.xlu1 %v6660_v15, %s4724_s30 }
 0x3ec   : > { %3274 = vrot.lane.b32.xlu0 %v6664_v55, %s4724_s30  ;;  %4591 = vmatpush3.msk.msra.mxu1 %vm2021_vm3, %v3886_v14 }
 0x3ed   : > { %v6814_v42 = vpop.permute.xlu1 %2768 }
 0x3ee   : > { %v6816_v18 = vpop.permute.xlu0 %2766 }
 0x3ef   : > { %3022 = vrot.lane.b32.xlu1 %v6437_v17, %s4722_s28 }
 0x3f0   : > { %3402 = vrot.lane.b32.xlu0 %v6437_v17, %s4725_s14 }
 0x3f1   : > { %v6827_v61 = vpop.permute.xlu1 %2772 }
 0x3f2   : > { %v6829_v19 = vpop.permute.xlu0 %2770 }
 0x3f3   : > { %3530 = vrot.lane.b32.xlu1 %v6556_v43, %s4726_s17 }
 0x3f4   : > { %3404 = vrot.lane.b32.xlu0 %v6432_v20, %s4725_s14 }
 0x3f5   : > { %v6835_v22 = vpop.permute.xlu1 %2776 }
 0x3f6   : > { %8133 = vst [vmem:[#allocation76_spill] sm:$0xff] %v6835_v22  ;;  %v6837_v0 = vpop.permute.xlu0 %2774 }
 0x3f7   : > { %3150 = vrot.lane.b32.xlu1 %v6556_v43, %s4723_s29 }
 0x3f8   : > { %3024 = vrot.lane.b32.xlu0 %v6432_v20, %s4722_s28 }
 0x3f9   : > { %v6843_v17 = vpop.permute.xlu1 %2780 }
 0x3fa   : > { %v6845_v14 = vpop.permute.xlu0 %2778 }
 0x3fb   : > { %3152 = vrot.lane.b32.xlu1 %v6552_v1, %s4723_s29 }
 0x3fc   : > { %3532 = vrot.lane.b32.xlu0 %v6552_v1, %s4726_s17 }
 0x3fd   : > { %v6851_v13 = vpop.permute.xlu1 %2784 }
 0x3fe   : > { %8134 = vst [vmem:[#allocation25_spill] sm:$0xff] %v6851_v13  ;;  %v6853_v22 = vpop.permute.xlu0 %2782 }
 0x3ff   : > { %8135 = vst [vmem:[#allocation97_spill] sm:$0xff] %v6853_v22  ;;  %3280 = vrot.lane.b32.xlu1 %v6672_v47, %s4724_s30 }
 0x400   : > { %3278 = vrot.lane.b32.xlu0 %v6676_v10, %s4724_s30 }
 0x401   : > { %v6859_v20 = vpop.permute.xlu1 %2788 }
 0x402   : > { %8136 = vst [vmem:[#allocation75_spill] sm:$0xff] %v6859_v20  ;;  %v6861_v43 = vpop.permute.xlu0 %2786 }
 0x403   : > { %8137 = vst [vmem:[#allocation12_spill] sm:$0xff] %v6861_v43  ;;  %3026 = vrot.lane.b32.xlu1 %v6447_v49, %s4722_s28 }
 0x404   : > { %3406 = vrot.lane.b32.xlu0 %v6447_v49, %s4725_s14 }
 0x405   : > { %v6867_v1 = vpop.permute.xlu1 %2792 }
 0x406   : > { %8138 = vst [vmem:[#allocation96_spill] sm:$0xff] %v6867_v1  ;;  %v6869_v13 = vpop.permute.xlu0 %2790 }
 0x407   : > { %8139 = vst [vmem:[#allocation56_spill] sm:$0xff] %v6869_v13  ;;  %3534 = vrot.lane.b32.xlu1 %v6564_v51, %s4726_s17 }
 0x408   : > { %3408 = vrot.lane.b32.xlu0 %v6442_v7, %s4725_s14 }
 0x409   : > { %v6875_v22 = vpop.permute.xlu1 %2796 }
 0x40a   : > { %8140 = vst [vmem:[#allocation9_spill] sm:$0xff] %v6875_v22  ;;  %v6877_v20 = vpop.permute.xlu0 %2794 }
 0x40b   : > { %8141 = vst [vmem:[#allocation130_spill] sm:$0xff] %v6877_v20  ;;  %3154 = vrot.lane.b32.xlu1 %v6564_v51, %s4723_s29 }
 0x40c   : > { %3028 = vrot.lane.b32.xlu0 %v6442_v7, %s4722_s28 }
 0x40d   : > { %v6883_v49 = vpop.permute.xlu1 %2800 }
 0x40e   : > { %8142 = vst [vmem:[#allocation54_spill] sm:$0xff] %v6883_v49  ;;  %v6885_v1 = vpop.permute.xlu0 %2798 }
 0x40f   : > { %8143 = vst [vmem:[#allocation129_spill] sm:$0xff] %v6885_v1  ;;  %3156 = vrot.lane.b32.xlu1 %v6560_v36, %s4723_s29 }
 0x410   : > { %3536 = vrot.lane.b32.xlu0 %v6560_v36, %s4726_s17 }
 0x411   : > { %v6891_v13 = vpop.permute.xlu1 %2804 }
 0x412   : > { %8144 = vst [vmem:[#allocation31_spill] sm:$0xff] %v6891_v13  ;;  %v6893_v22 = vpop.permute.xlu0 %2802 }
 0x413   : > { %8145 = vst [vmem:[#allocation78_spill] sm:$0xff] %v6893_v22  ;;  %3284 = vrot.lane.b32.xlu1 %v6684_v25, %s4724_s30 }
 0x414   : > { %3282 = vrot.lane.b32.xlu0 %v6688_v30, %s4724_s30 }
 0x415   : > { %v6899_v7 = vpop.permute.xlu1 %2808 }
 0x416   : > { %8146 = vst [vmem:[#allocation29_spill] sm:$0xff] %v6899_v7  ;;  %v6901_v51 = vpop.permute.xlu0 %2806 }
 0x417   : > { %8147 = vst [vmem:[#allocation99_spill] sm:$0xff] %v6901_v51  ;;  %3030 = vrot.lane.b32.xlu1 %v6459_v60, %s4722_s28 }
 0x418   : > { %3410 = vrot.lane.b32.xlu0 %v6459_v60, %s4725_s14 }
 0x419   : > { %v6907_v36 = vpop.permute.xlu1 %2812 }
 0x41a   : > { %8148 = vst [vmem:[#allocation77_spill] sm:$0xff] %v6907_v36  ;;  %v6909_v13 = vpop.permute.xlu0 %2810 }
 0x41b   : > { %8149 = vst [vmem:[#allocation18_spill] sm:$0xff] %v6909_v13  ;;  %3538 = vrot.lane.b32.xlu1 %v6572_v39, %s4726_s17 }
 0x41c   : > { %3412 = vrot.lane.b32.xlu0 %v6454_v5, %s4725_s14 }
 0x41d   : > { %v6915_v22 = vpop.permute.xlu1 %2816 }
 0x41e   : > { %8150 = vst [vmem:[#allocation98_spill] sm:$0xff] %v6915_v22  ;;  %v6917_v7 = vpop.permute.xlu0 %2814 }
 0x41f   : > { %8151 = vst [vmem:[#allocation60_spill] sm:$0xff] %v6917_v7  ;;  %3158 = vrot.lane.b32.xlu1 %v6572_v39, %s4723_s29 }
 0x420   : > { %3032 = vrot.lane.b32.xlu0 %v6454_v5, %s4722_s28 }
 0x421   : > { %v6923_v60 = vpop.permute.xlu1 %2820 }
 0x422   : > { %8152 = vst [vmem:[#allocation15_spill] sm:$0xff] %v6923_v60  ;;  %v6925_v36 = vpop.permute.xlu0 %2818 }
 0x423   : > { %8153 = vst [vmem:[#allocation132_spill] sm:$0xff] %v6925_v36  ;;  %3160 = vrot.lane.b32.xlu1 %v6568_v3, %s4723_s29 }
 0x424   : > { %3540 = vrot.lane.b32.xlu0 %v6568_v3, %s4726_s17 }
 0x425   : > { %v6931_v13 = vpop.permute.xlu1 %2824 }
 0x426   : > { %8154 = vst [vmem:[#allocation58_spill] sm:$0xff] %v6931_v13  ;;  %v6933_v22 = vpop.permute.xlu0 %2822 }
 0x427   : > { %8155 = vst [vmem:[#allocation131_spill] sm:$0xff] %v6933_v22  ;;  %3288 = vrot.lane.b32.xlu1 %v6696_v40, %s4724_s30 }
 0x428   : > { %3286 = vrot.lane.b32.xlu0 %v6700_v28, %s4724_s30 }
 0x429   : > { %v6939_v5 = vpop.permute.xlu1 %2892 }
 0x42a   : > { %v2891_v39 = vpop.permute.xlu0 %2890 }
 0x42b   : > { %3034 = vrot.lane.b32.xlu1 %v6471_v48, %s4722_s28 }
 0x42c   : > { %3414 = vrot.lane.b32.xlu0 %v6471_v48, %s4725_s14 }
 0x42d   : > { %v6945_v3 = vpop.permute.xlu1 %2896 }
 0x42e   : > { %v6947_v13 = vpop.permute.xlu0 %2894 }
 0x42f   : > { %3542 = vrot.lane.b32.xlu1 %v6580_v41, %s4726_s17 }
 0x430   : > { %3416 = vrot.lane.b32.xlu0 %v6466_v38, %s4725_s14 }
 0x431   : > { %v6953_v22 = vpop.permute.xlu1 %2900 }
 0x432   : > { %v6955_v60 = vpop.permute.xlu0 %2898 }
 0x433   : > { %3162 = vrot.lane.b32.xlu1 %v6580_v41, %s4723_s29 }
 0x434   : > { %3036 = vrot.lane.b32.xlu0 %v6466_v38, %s4722_s28 }
 0x435   : > { %v6961_v48 = vpop.permute.xlu1 %2904 }
 0x436   : > { %v6963_v36 = vpop.permute.xlu0 %2902 }
 0x437   : > { %3164 = vrot.lane.b32.xlu1 %v6576_v24, %s4723_s29 }
 0x438   : > { %3544 = vrot.lane.b32.xlu0 %v6576_v24, %s4726_s17 }
 0x439   : > { %v6969_v7 = vpop.permute.xlu1 %2908 }
 0x43a   : > { %v6971_v51 = vpop.permute.xlu0 %2906 }
 0x43b   : > { %3292 = vrot.lane.b32.xlu1 %v6708_v50, %s4724_s30  ;;  %v2453_v50 = vld [vmem:[#allocation2 + $0x99] sm:$0xff] }
 0x43c   : > { %3290 = vrot.lane.b32.xlu0 %v6712_v6, %s4724_s30 }
 0x43d   : > { %v6977_v38 = vpop.permute.xlu1 %2912 }
 0x43e   : > { %v6979_v41 = vpop.permute.xlu0 %2910 }
 0x43f   : > { %3038 = vrot.lane.b32.xlu1 %v6483_v2, %s4722_s28 }
 0x440   : > { %3418 = vrot.lane.b32.xlu0 %v6483_v2, %s4725_s14 }
 0x441   : > { %v6985_v24 = vpop.permute.xlu1 %2916 }
 0x442   : > { %8156 = vst [vmem:[#allocation35_spill] sm:$0xff] %v6985_v24  ;;  %v6987_v49 = vpop.permute.xlu0 %2914 }
 0x443   : > { %8157 = vst [vmem:[#allocation80_spill] sm:$0xff] %v6987_v49  ;;  %3546 = vrot.lane.b32.xlu1 %v6588_v58, %s4726_s17 }
 0x444   : > { %3420 = vrot.lane.b32.xlu0 %v6478_v9, %s4725_s14 }
 0x445   : > { %v6993_v1 = vpop.permute.xlu1 %2920 }
 0x446   : > { %8158 = vst [vmem:[#allocation33_spill] sm:$0xff] %v6993_v1  ;;  %v6995_v20 = vpop.permute.xlu0 %2918 }
 0x447   : > { %8159 = vst [vmem:[#allocation101_spill] sm:$0xff] %v6995_v20  ;;  %3166 = vrot.lane.b32.xlu1 %v6588_v58, %s4723_s29 }
 0x448   : > { %3040 = vrot.lane.b32.xlu0 %v2453_v50, %s4722_s28 }
 0x449   : > { %v7000_v2 = vpop.permute.xlu1 %2924 }
 0x44a   : > { %8160 = vst [vmem:[#allocation79_spill] sm:$0xff] %v7000_v2  ;;  %v7002_v24 = vpop.permute.xlu0 %2922  ;;  %v2454_v2 = vld [vmem:[#allocation2 + $0xa9] sm:$0xff] }
 0x44b   : > { %8161 = vst [vmem:[#allocation22_spill] sm:$0xff] %v7002_v24  ;;  %3168 = vrot.lane.b32.xlu1 %v6584_v11, %s4723_s29 }
 0x44c   : > { %3548 = vrot.lane.b32.xlu0 %v6584_v11, %s4726_s17 }
 0x44d   : > { %v7008_v9 = vpop.permute.xlu1 %2928 }
 0x44e   : > { %8162 = vst [vmem:[#allocation100_spill] sm:$0xff] %v7008_v9  ;;  %v7010_v1 = vpop.permute.xlu0 %2926  ;;  %v2549_v9 = vld [vmem:[#allocation2 + $0xb1] sm:$0xff] }
 0x44f   : > { %8163 = vst [vmem:[#allocation64_spill] sm:$0xff] %v7010_v1  ;;  %3296 = vrot.lane.b32.xlu1 %v6720_v53, %s4724_s30 }
 0x450   : > { %3294 = vrot.lane.b32.xlu0 %v6724_v56, %s4724_s30 }
 0x451   : > { %v7016_v58 = vpop.permute.xlu1 %2932 }
 0x452   : > { %8164 = vst [vmem:[#allocation20_spill] sm:$0xff] %v7016_v58  ;;  %v7018_v50 = vpop.permute.xlu0 %2930  ;;  %v2314_v58 = vld [vmem:[#allocation2] sm:$0xff] }
 0x453   : > { %8165 = vst [vmem:[#allocation134_spill] sm:$0xff] %v7018_v50  ;;  %3042 = vrot.lane.b32.xlu1 %v2454_v2, %s4722_s28 }
 0x454   : > { %3422 = vrot.lane.b32.xlu0 %v2454_v2, %s4725_s14  ;;  %v3626_v2 = vsel %vm225_vm0, %v2314_v58, %v6627_v52 }
 0x455   : > { %v3021_v11 = vpop.permute.xlu1 %3020  ;;  %v3658_v56 = vsel %vm1681_vm4, %v3626_v2, %v6808_v46  ;;  %v2315_v46 = vld [vmem:[#allocation2 + $0x8] sm:$0xff] }
 0x456   : > { %v3019_v24 = vpop.permute.xlu0 %3018  ;;  %v3690_v49 = vsel %vm1714_vm5, %v3658_v56, %v2891_v39  ;;  %v2456_v56 = vld [vmem:[#allocation2 + $0xc1] sm:$0xff] }
 0x457   : > { %3550 = vrot.lane.b32.xlu1 %v6596_v59, %s4726_s17  ;;  %v3722_v43 = vsel %vm1747_vm6, %v3690_v49, %v3019_v24  ;;  %v2551_v24 = vld [vmem:[#allocation2 + $0xc9] sm:$0xff] }
 0x458   : > { %3424 = vrot.lane.b32.xlu0 %v2549_v9, %s4725_s14 }
 0x459   : > { %v3149_v1 = vpop.permute.xlu1 %3148 }
 0x45a   : > { %v3147_v53 = vpop.permute.xlu0 %3146 }
 0x45b   : > { %3170 = vrot.lane.b32.xlu1 %v6596_v59, %s4723_s29  ;;  %v3754_v6 = vsel %vm1780_vm7, %v3722_v43, %v3147_v53 }
 0x45c   : > { %3044 = vrot.lane.b32.xlu0 %v2549_v9, %s4722_s28 }
 0x45d   : > { %v3277_v50 = vpop.permute.xlu1 %3276 }
 0x45e   : > { %v3275_v20 = vpop.permute.xlu0 %3274 }
 0x45f   : > { %3172 = vrot.lane.b32.xlu1 %v6592_v27, %s4723_s29  ;;  %v3786_v52 = vsel %vm1813_vm8, %v3754_v6, %v3275_v20 }
 0x460   : > { %3552 = vrot.lane.b32.xlu0 %v6592_v27, %s4726_s17 }
 0x461   : > { %v3023_v59 = vpop.permute.xlu1 %3022 }
 0x462   : > { %v3403_v9 = vpop.permute.xlu0 %3402 }
 0x463   : > { %3300 = vrot.lane.b32.xlu1 %v6732_v63, %s4724_s30  ;;  %v3818_v58 = vsel %vm1846_vm9, %v3786_v52, %v3403_v9  ;;  %v3627_v63 = vsel %vm225_vm0, %v2315_v46, %v6624_v34 }
 0x464   : > { %3298 = vrot.lane.b32.xlu0 %v6736_v8, %s4724_s30  ;;  %v3659_v6 = vsel %vm1681_vm4, %v3627_v63, %v6806_v62  ;;  %v2458_v63 = vld [vmem:[#allocation2 + $0xd9] sm:$0xff] }
 0x465   : > { %v3531_v27 = vpop.permute.xlu1 %3530  ;;  %v3691_v20 = vsel %vm1714_vm5, %v3659_v6, %v6939_v5 }
 0x466   : > { %v3405_v2 = vpop.permute.xlu0 %3404  ;;  %v3850_v39 = vsel %vm1879_vm10, %v3818_v58, %v3531_v27  ;;  %v3723_v49 = vsel %vm1747_vm6, %v3691_v20, %v3021_v11 }
 0x467   : > { %3046 = vrot.lane.b32.xlu1 %v2456_v56, %s4722_s28  ;;  %4592 = vmatprep.mubr.msk.f32.mxu1 %vm1924_vm11, %v3850_v39  ;;  %v3755_v9 = vsel %vm1780_vm7, %v3723_v49, %v3149_v1  ;;  %v3628_v1 = vsel %vm225_vm0, %v6652_v4, %v6634_v45  ;;  %v2553_v49 = vld [vmem:[#allocation2 + $0xe1] sm:$0xff] }
 0x468   : > { %3426 = vrot.lane.b32.xlu0 %v2456_v56, %s4725_s14  ;;  %v3787_v34 = vsel %vm1813_vm8, %v3755_v9, %v3277_v50  ;;  %v3660_v50 = vsel %vm1681_vm4, %v3628_v1, %v6816_v18  ;;  %v2460_v1 = vld [vmem:[#allocation2 + $0xf1] sm:$0xff] }
 0x469   : > { %v3151_v53 = vpop.permute.xlu1 %3150  ;;  %v3819_v62 = vsel %vm1846_vm9, %v3787_v34, %v3405_v2 }
 0x46a   : > { %v3025_v43 = vpop.permute.xlu0 %3024 }
 0x46b   : > { %3554 = vrot.lane.b32.xlu1 %v6604_v12, %s4726_s17 }
 0x46c   : > { %3428 = vrot.lane.b32.xlu0 %v2551_v24, %s4725_s14 }
 0x46d   : > { %v3153_v52 = vpop.permute.xlu1 %3152 }
 0x46e   : > { %v3533_v46 = vpop.permute.xlu0 %3532 }
 0x46f   : > { %v3851_v58 = vsel %vm1879_vm10, %v3819_v62, %v3533_v46  ;;  %3174 = vrot.lane.b32.xlu1 %v6604_v12, %s4723_s29  ;;  %v3692_v12 = vsel %vm1714_vm5, %v3660_v50, %v6947_v13 }
 0x470   : > { %3048 = vrot.lane.b32.xlu0 %v2551_v24, %s4722_s28  ;;  %4593 = vmatmul.mubr.msk.f32.vlgmr.msra.gmra.mrb[0].mxu1 %vm1924_vm11, %v3851_v58  ;;  %v3724_v2 = vsel %vm1747_vm6, %v3692_v12, %v3023_v59 }
 0x471   : > { %v3281_v5 = vpop.permute.xlu1 %3280  ;;  %v3756_v39 = vsel %vm1780_vm7, %v3724_v2, %v3151_v53 }
 0x472   : > { %v3279_v11 = vpop.permute.xlu0 %3278 }
 0x473   : > { %3176 = vrot.lane.b32.xlu1 %v6600_v44, %s4723_s29  ;;  %v3788_v45 = vsel %vm1813_vm8, %v3756_v39, %v3279_v11 }
 0x474   : > { %3556 = vrot.lane.b32.xlu0 %v6600_v44, %s4726_s17 }
 0x475   : > { %v3027_v27 = vpop.permute.xlu1 %3026 }
 0x476   : > { %v3407_v56 = vpop.permute.xlu0 %3406 }
 0x477   : > { %3304 = vrot.lane.b32.xlu1 %v6744_v32, %s4724_s30  ;;  %v3820_v4 = vsel %vm1846_vm9, %v3788_v45, %v3407_v56  ;;  %v3629_v32 = vsel %vm225_vm0, %v6648_v37, %v6632_v57  ;;  %v2555_v56 = vld [vmem:[#allocation2 + $0xf9] sm:$0xff] }
 0x478   : > { %3302 = vrot.lane.b32.xlu0 %v6748_v54, %s4724_s30  ;;  %v3661_v54 = vsel %vm1681_vm4, %v3629_v32, %v6814_v42 }
 0x479   : > { %v3535_v44 = vpop.permute.xlu1 %3534  ;;  %v3693_v6 = vsel %vm1714_vm5, %v3661_v54, %v6945_v3 }
 0x47a   : > { %v3852_v18 = vsel %vm1879_vm10, %v3820_v4, %v3535_v44  ;;  %v3409_v13 = vpop.permute.xlu0 %3408  ;;  %v3725_v20 = vsel %vm1747_vm6, %v3693_v6, %v3025_v43 }
 0x47b   : > { %3050 = vrot.lane.b32.xlu1 %v2458_v63, %s4722_s28  ;;  %4595 = vmatprep.mubr.msk.f32.mxu1 %vm1924_vm11, %v3852_v18  ;;  %v3757_v24 = vsel %vm1780_vm7, %v3725_v20, %v3153_v52  ;;  %v3630_v52 = vsel %vm225_vm0, %v6664_v55, %v6641_v21  ;;  %v3632_v18 = vsel %vm225_vm0, %v6676_v10, %v6650_v16  ;;  %v8167_v16 = vld [vmem:[#allocation94_spill] sm:$0xff] }
 0x47c   : > { %3430 = vrot.lane.b32.xlu0 %v2458_v63, %s4725_s14  ;;  %v3789_v57 = vsel %vm1813_vm8, %v3757_v24, %v3281_v5  ;;  %v3662_v62 = vsel %vm1681_vm4, %v3630_v52, %v6829_v19  ;;  %v3664_v63 = vsel %vm1681_vm4, %v3632_v18, %v6837_v0  ;;  %v2462_v24 = vld [vmem:[#allocation2 + $0x109] sm:$0xff] }
 0x47d   : > { %v3155_v59 = vpop.permute.xlu1 %3154  ;;  %v3821_v42 = vsel %vm1846_vm9, %v3789_v57, %v3409_v13  ;;  %v8166_v13 = vld [vmem:[#allocation3_spill] sm:$0xff]  ;;  %v8169_v57 = vld [vmem:[#allocation61_spill] sm:$0xff] }
 0x47e   : > { %v3029_v53 = vpop.permute.xlu0 %3028  ;;  %v2588_v52 = vld [vmem:[#allocation2 + $0x10a] sm:$0xff] }
 0x47f   : > { %3558 = vrot.lane.b32.xlu1 %v6612_v23, %s4726_s17 }
 0x480   : > { %3432 = vrot.lane.b32.xlu0 %v2553_v49, %s4725_s14 }
 0x481   : > { %v3157_v37 = vpop.permute.xlu1 %3156 }
 0x482   : > { %v3537_v9 = vpop.permute.xlu0 %3536 }
 0x483   : > { %v3853_v34 = vsel %vm1879_vm10, %v3821_v42, %v3537_v9  ;;  %3178 = vrot.lane.b32.xlu1 %v6612_v23, %s4723_s29  ;;  %v3694_v23 = vsel %vm1714_vm5, %v3662_v62, %v6955_v60  ;;  %v8170_v42 = vld [vmem:[#allocation76_spill] sm:$0xff] }
 0x484   : > { %3052 = vrot.lane.b32.xlu0 %v2553_v49, %s4722_s28  ;;  %4596 = vmatmul.mubr.msk.f32.gmra.mrb[2].mxu1 %vm1924_vm11, %v3853_v34  ;;  %v3726_v58 = vsel %vm1747_vm6, %v3694_v23, %v3027_v27  ;;  %v2557_v23 = vld [vmem:[#allocation2 + $0x111] sm:$0xff] }
 0x485   : > { %v3285_v3 = vpop.permute.xlu1 %3284  ;;  %v3758_v11 = vsel %vm1780_vm7, %v3726_v58, %v3155_v59 }
 0x486   : > { %v3283_v43 = vpop.permute.xlu0 %3282 }
 0x487   : > { %3180 = vrot.lane.b32.xlu1 %v6608_v26, %s4723_s29  ;;  %v3790_v21 = vsel %vm1813_vm8, %v3758_v11, %v3283_v43 }
 0x488   : > { %3560 = vrot.lane.b32.xlu0 %v6608_v26, %s4726_s17 }
 0x489   : > { %v3031_v46 = vpop.permute.xlu1 %3030 }
 0x48a   : > { %v3411_v5 = vpop.permute.xlu0 %3410 }
 0x48b   : > { %3308 = vrot.lane.b32.xlu1 %v6756_v29, %s4724_s30  ;;  %v3822_v55 = vsel %vm1846_vm9, %v3790_v21, %v3411_v5  ;;  %v3631_v29 = vsel %vm225_vm0, %v6660_v15, %v6638_v35 }
 0x48c   : > { %3306 = vrot.lane.b32.xlu0 %v6760_v33, %s4724_s30  ;;  %v3663_v33 = vsel %vm1681_vm4, %v3631_v29, %v6827_v61 }
 0x48d   : > { %v3539_v26 = vpop.permute.xlu1 %3538  ;;  %v3695_v12 = vsel %vm1714_vm5, %v3663_v33, %v6953_v22 }
 0x48e   : > { %v3854_v19 = vsel %vm1879_vm10, %v3822_v55, %v3539_v26  ;;  %v3413_v60 = vpop.permute.xlu0 %3412  ;;  %v3727_v2 = vsel %vm1747_vm6, %v3695_v12, %v3029_v53  ;;  %v8168_v53 = vld [vmem:[#allocation5_spill] sm:$0xff]  ;;  %v2495_v26 = vld [vmem:[#allocation2 + $0x112] sm:$0xff] }
 0x48f   : > { %3054 = vrot.lane.b32.xlu1 %v2460_v1, %s4722_s28  ;;  %4598 = vmatprep.mubr.msk.f32.mxu1 %vm1924_vm11, %v3854_v19  ;;  %v3759_v39 = vsel %vm1780_vm7, %v3727_v2, %v3157_v37  ;;  %v3633_v37 = vsel %vm225_vm0, %v6672_v47, %v8169_v57  ;;  %v8171_v19 = vld [vmem:[#allocation6_spill] sm:$0xff] }
 0x490   : > { %3434 = vrot.lane.b32.xlu0 %v2460_v1, %s4725_s14  ;;  %v3791_v35 = vsel %vm1813_vm8, %v3759_v39, %v3285_v3  ;;  %v3665_v9 = vsel %vm1681_vm4, %v3633_v37, %v8170_v42  ;;  %v2497_v37 = vld [vmem:[#allocation2 + $0x12a] sm:$0xff] }
 0x491   : > { %v3159_v50 = vpop.permute.xlu1 %3158  ;;  %v3823_v61 = vsel %vm1846_vm9, %v3791_v35, %v3413_v60  ;;  %v3697_v3 = vsel %vm1714_vm5, %v3665_v9, %v6961_v48  ;;  %v3634_v60 = vsel %vm225_vm0, %v6688_v30, %v8171_v19  ;;  %v2558_v35 = vld [vmem:[#allocation2 + $0x121] sm:$0xff] }
 0x492   : > { %v3033_v27 = vpop.permute.xlu0 %3032  ;;  %v3666_v1 = vsel %vm1681_vm4, %v3634_v60, %v6845_v14 }
 0x493   : > { %3562 = vrot.lane.b32.xlu1 %v6620_v31, %s4726_s17  ;;  %v3729_v62 = vsel %vm1747_vm6, %v3697_v3, %v3033_v27  ;;  %v3698_v29 = vsel %vm1714_vm5, %v3666_v1, %v6971_v51  ;;  %v7250_v3 = vld [vmem:[#allocation2 + $0x138] sm:$0xff] }
 0x494   : > { %3436 = vrot.lane.b32.xlu0 %v2555_v56, %s4725_s14 }
 0x495   : > { %v3161_v15 = vpop.permute.xlu1 %3160 }
 0x496   : > { %v3541_v45 = vpop.permute.xlu0 %3540 }
 0x497   : > { %v3855_v4 = vsel %vm1879_vm10, %v3823_v61, %v3541_v45  ;;  %3182 = vrot.lane.b32.xlu1 %v6620_v31, %s4723_s29  ;;  %v3696_v31 = vsel %vm1714_vm5, %v3664_v63, %v6963_v36  ;;  %v8172_v61 = vld [vmem:[#allocation4_spill] sm:$0xff] }
 0x498   : > { %3056 = vrot.lane.b32.xlu0 %v2555_v56, %s4722_s28  ;;  %4599 = vmatmul.mubr.msk.f32.gmra.mrb[4].mxu1 %vm1924_vm11, %v3855_v4  ;;  %v3728_v54 = vsel %vm1747_vm6, %v3696_v31, %v3031_v46  ;;  %v3761_v46 = vsel %vm1780_vm7, %v3729_v62, %v3161_v15  ;;  %v7211_v15 = vld [vmem:[#allocation2 + $0x128] sm:$0xff]  ;;  %v3635_v45 = vsel %vm225_vm0, %v6684_v25, %v8172_v61 }
 0x499   : > { %v3289_v22 = vpop.permute.xlu1 %3288  ;;  %v3760_v6 = vsel %vm1780_vm7, %v3728_v54, %v3159_v50  ;;  %v7200_v50 = vld [vmem:[#allocation2 + $0x120] sm:$0xff]  ;;  %v3667_v4 = vsel %vm1681_vm4, %v3635_v45, %v6843_v17  ;;  %v8175_v62 = vld [vmem:[#allocation66_spill] sm:$0xff] }
 0x49a   : > { %v3287_v44 = vpop.permute.xlu0 %3286  ;;  %v3793_v47 = vsel %vm1813_vm8, %v3761_v46, %v3289_v22  ;;  %v2590_v54 = vld [vmem:[#allocation2 + $0x122] sm:$0xff] }
 0x49b   : > { %3184 = vrot.lane.b32.xlu1 %v8166_v13, %s4723_s29  ;;  %v3792_v10 = vsel %vm1813_vm8, %v3760_v6, %v3287_v44  ;;  %v3699_v44 = vsel %vm1714_vm5, %v3667_v4, %v6969_v7  ;;  %v2559_v7 = vld [vmem:[#allocation2 + $0x129] sm:$0xff]  ;;  %v8176_v46 = vld [vmem:[#allocation25_spill] sm:$0xff] }
 0x49c   : > { %3564 = vrot.lane.b32.xlu0 %v8166_v13, %s4726_s17 }
 0x49d   : > { %v3035_v32 = vpop.permute.xlu1 %3034 }
 0x49e   : > { %v3415_v59 = vpop.permute.xlu0 %3414  ;;  %v3730_v12 = vsel %vm1747_vm6, %v3698_v29, %v3035_v32 }
 0x49f   : > { %3312 = vrot.lane.b32.xlu1 %v8167_v16, %s4724_s30  ;;  %v3824_v0 = vsel %vm1846_vm9, %v3792_v10, %v3415_v59  ;;  %v8173_v10 = vld [vmem:[#allocation65_spill] sm:$0xff] }
 0x4a0   : > { %3310 = vrot.lane.b32.xlu0 %v8168_v53, %s4724_s30  ;;  %v3636_v53 = vsel %vm225_vm0, %v6700_v28, %v8173_v10 }
 0x4a1   : > { %v3543_v20 = vpop.permute.xlu1 %3542 }
 0x4a2   : > { %v3856_v49 = vsel %vm1879_vm10, %v3824_v0, %v3543_v20  ;;  %v3417_v36 = vpop.permute.xlu0 %3416  ;;  %v8174_v0 = vld [vmem:[#allocation97_spill] sm:$0xff] }
 0x4a3   : > { %3058 = vrot.lane.b32.xlu1 %v2462_v24, %s4722_s28  ;;  %4601 = vmatprep.mubr.msk.f32.mxu1 %vm1924_vm11, %v3856_v49  ;;  %v3825_v5 = vsel %vm1846_vm9, %v3793_v47, %v3417_v36  ;;  %v3668_v20 = vsel %vm1681_vm4, %v3636_v53, %v8174_v0  ;;  %v2436_v0 = vld [vmem:[#allocation2 + $0x150] sm:$0xff] }
 0x4a4   : > { %3438 = vrot.lane.b32.xlu0 %v2462_v24, %s4725_s14  ;;  %v3700_v49 = vsel %vm1714_vm5, %v3668_v20, %v6979_v41 }
 0x4a5   : > { %v3163_v34 = vpop.permute.xlu1 %3162 }
 0x4a6   : > { %v3037_v43 = vpop.permute.xlu0 %3036  ;;  %v3762_v2 = vsel %vm1780_vm7, %v3730_v12, %v3163_v34  ;;  %v2592_v12 = vld [vmem:[#allocation2 + $0x13a] sm:$0xff] }
 0x4a7   : > { %3566 = vrot.lane.b32.xlu1 %v2588_v52, %s4726_s17  ;;  %v3731_v13 = vsel %vm1747_vm6, %v3699_v44, %v3037_v43 }
 0x4a8   : > { %3440 = vrot.lane.b32.xlu0 %v2557_v23, %s4725_s14 }
 0x4a9   : > { %v3165_v58 = vpop.permute.xlu1 %3164 }
 0x4aa   : > { %v3545_v11 = vpop.permute.xlu0 %3544  ;;  %v3763_v63 = vsel %vm1780_vm7, %v3731_v13, %v3165_v58 }
 0x4ab   : > { %v3857_v21 = vsel %vm1879_vm10, %v3825_v5, %v3545_v11  ;;  %3186 = vrot.lane.b32.xlu1 %v2588_v52, %s4723_s29  ;;  %v2528_v52 = vld [vmem:[#allocation2 + $0x138] sm:$0xff] }
 0x4ac   : > { %3060 = vrot.lane.b32.xlu0 %v2557_v23, %s4722_s28  ;;  %4602 = vmatmul.mubr.msk.f32.gmra.mrb[6].mxu1 %vm1924_vm11, %v3857_v21  ;;  %v3637_v23 = vsel %vm225_vm0, %v6696_v40, %v8175_v62  ;;  %v2560_v21 = vld [vmem:[#allocation2 + $0x139] sm:$0xff] }
 0x4ad   : > { %v3293_v48 = vpop.permute.xlu1 %3292  ;;  %v3669_v47 = vsel %vm1681_vm4, %v3637_v23, %v8176_v46  ;;  %v8187_v23 = vld [vmem:[#allocation56_spill] sm:$0xff] }
 0x4ae   : > { %v3291_v55 = vpop.permute.xlu0 %3290  ;;  %v3795_v25 = vsel %vm1813_vm8, %v3763_v63, %v3293_v48  ;;  %v3701_v5 = vsel %vm1714_vm5, %v3669_v47, %v6977_v38  ;;  %v8188_v47 = vld [vmem:[#allocation101_spill] sm:$0xff] }
 0x4af   : > { %3188 = vrot.lane.b32.xlu1 %v2495_v26, %s4723_s29  ;;  %v3794_v30 = vsel %vm1813_vm8, %v3762_v2, %v3291_v55  ;;  %v2529_v55 = vld [vmem:[#allocation2 + $0x140] sm:$0xff]  ;;  %v8178_v2 = vld [vmem:[#allocation70_spill] sm:$0xff] }
 0x4b0   : > { %3568 = vrot.lane.b32.xlu0 %v2495_v26, %s4726_s17 }
 0x4b1   : > { %v3039_v33 = vpop.permute.xlu1 %3038 }
 0x4b2   : > { %v3419_v27 = vpop.permute.xlu0 %3418  ;;  %v3732_v24 = vsel %vm1747_vm6, %v3700_v49, %v3039_v33 }
 0x4b3   : > { %2934 = vrot.lane.b32.xlu1 %v7200_v50, %s4721_s27  ;;  %v3826_v14 = vsel %vm1846_vm9, %v3794_v30, %v3419_v27  ;;  %v8177_v27 = vld [vmem:[#allocation8_spill] sm:$0xff] }
 0x4b4   : > { %3314 = vrot.lane.b32.xlu0 %v7200_v50, %s4724_s30  ;;  %v3638_v30 = vsel %vm225_vm0, %v8178_v2, %v8177_v27  ;;  %v8191_v27 = vld [vmem:[#allocation96_spill] sm:$0xff] }
 0x4b5   : > { %v3547_v56 = vpop.permute.xlu1 %3546 }
 0x4b6   : > { %v3858_v51 = vsel %vm1879_vm10, %v3826_v14, %v3547_v56  ;;  %v3421_v39 = vpop.permute.xlu0 %3420  ;;  %v2561_v14 = vld [vmem:[#allocation2 + $0x141] sm:$0xff]  ;;  %v8179_v56 = vld [vmem:[#allocation12_spill] sm:$0xff] }
 0x4b7   : > { %3442 = vrot.lane.b32.xlu1 %v2558_v35, %s4725_s14  ;;  %4604 = vmatprep.mubr.msk.f32.mxu1 %vm1924_vm11, %v3858_v51  ;;  %v3827_v32 = vsel %vm1846_vm9, %v3795_v25, %v3421_v39  ;;  %v3670_v51 = vsel %vm1681_vm4, %v3638_v30, %v8179_v56  ;;  %v8180_v39 = vld [vmem:[#allocation80_spill] sm:$0xff] }
 0x4b8   : > { %3316 = vrot.lane.b32.xlu0 %v7211_v15, %s4724_s30 }
 0x4b9   : > { %v3167_v22 = vpop.permute.xlu1 %3166 }
 0x4ba   : > { %v3041_v18 = vpop.permute.xlu0 %3040  ;;  %v3764_v42 = vsel %vm1780_vm7, %v3732_v24, %v3167_v22 }
 0x4bb   : > { %3062 = vrot.lane.b32.xlu1 %v2558_v35, %s4722_s28  ;;  %v3733_v48 = vsel %vm1747_vm6, %v3701_v5, %v3041_v18  ;;  %v3702_v35 = vsel %vm1714_vm5, %v3670_v51, %v8180_v39  ;;  %v2501_v39 = vld [vmem:[#allocation2 + $0x15a] sm:$0xff] }
 0x4bc   : > { %2936 = vrot.lane.b32.xlu0 %v7211_v15, %s4721_s27 }
 0x4bd   : > { %v3169_v31 = vpop.permute.xlu1 %3168 }
 0x4be   : > { %v3549_v17 = vpop.permute.xlu0 %3548  ;;  %v3765_v26 = vsel %vm1780_vm7, %v3733_v48, %v3169_v31  ;;  %v2499_v31 = vld [vmem:[#allocation2 + $0x142] sm:$0xff]  ;;  %v2594_v48 = vld [vmem:[#allocation2 + $0x152] sm:$0xff] }
 0x4bf   : > { %v3859_v59 = vsel %vm1879_vm10, %v3827_v32, %v3549_v17  ;;  %3570 = vrot.lane.b32.xlu1 %v2590_v54, %s4726_s17  ;;  %v8181_v32 = vld [vmem:[#allocation10_spill] sm:$0xff]  ;;  %v8182_v17 = vld [vmem:[#allocation71_spill] sm:$0xff] }
 0x4c0   : > { %3444 = vrot.lane.b32.xlu0 %v2559_v7, %s4725_s14  ;;  %4605 = vmatmul.mubr.msk.f32.gmra.mrb[8].mxu1 %vm1924_vm11, %v3859_v59  ;;  %v8183_v59 = vld [vmem:[#allocation75_spill] sm:$0xff] }
 0x4c1   : > { %v3297_v6 = vpop.permute.xlu1 %3296 }
 0x4c2   : > { %v3295_v16 = vpop.permute.xlu0 %3294  ;;  %v3797_v40 = vsel %vm1813_vm8, %v3765_v26, %v3297_v6  ;;  %v2563_v26 = vld [vmem:[#allocation2 + $0x159] sm:$0xff] }
 0x4c3   : > { %3190 = vrot.lane.b32.xlu1 %v2590_v54, %s4723_s29  ;;  %v3796_v28 = vsel %vm1813_vm8, %v3764_v42, %v3295_v16  ;;  %v3639_v54 = vsel %vm225_vm0, %v8182_v17, %v8181_v32  ;;  %v8184_v16 = vld [vmem:[#allocation35_spill] sm:$0xff] }
 0x4c4   : > { %3064 = vrot.lane.b32.xlu0 %v2559_v7, %s4722_s28  ;;  %v3671_v7 = vsel %vm1681_vm4, %v3639_v54, %v8183_v59  ;;  %v2562_v42 = vld [vmem:[#allocation2 + $0x151] sm:$0xff]  ;;  %v8194_v59 = vld [vmem:[#allocation130_spill] sm:$0xff] }
 0x4c5   : > { %v3043_v36 = vpop.permute.xlu1 %3042  ;;  %v3703_v10 = vsel %vm1714_vm5, %v3671_v7, %v8184_v16  ;;  %v8193_v32 = vld [vmem:[#allocation11_spill] sm:$0xff] }
 0x4c6   : > { %v3423_v57 = vpop.permute.xlu0 %3422  ;;  %v3734_v45 = vsel %vm1747_vm6, %v3702_v35, %v3043_v36  ;;  %v3642_v17 = vsel %vm225_vm0, %v6736_v8, %v8193_v32  ;;  %v2533_v54 = vld [vmem:[#allocation2 + $0x170] sm:$0xff] }
 0x4c7   : > { %3192 = vrot.lane.b32.xlu1 %v2497_v37, %s4723_s29  ;;  %v3828_v9 = vsel %vm1846_vm9, %v3796_v28, %v3423_v57  ;;  %v3674_v7 = vsel %vm1681_vm4, %v3642_v17, %v8194_v59  ;;  %v8204_v17 = vld [vmem:[#allocation100_spill] sm:$0xff] }
 0x4c8   : > { %3572 = vrot.lane.b32.xlu0 %v2497_v37, %s4726_s17 }
 0x4c9   : > { %v3551_v34 = vpop.permute.xlu1 %3550 }
 0x4ca   : > { %v3860_v41 = vsel %vm1879_vm10, %v3828_v9, %v3551_v34  ;;  %v3425_v43 = vpop.permute.xlu0 %3424  ;;  %v2531_v9 = vld [vmem:[#allocation2 + $0x158] sm:$0xff] }
 0x4cb   : > { %2938 = vrot.lane.b32.xlu1 %v7250_v3, %s4721_s27  ;;  %4607 = vmatprep.mubr.msk.f32.mxu1 %vm1924_vm11, %v3860_v41  ;;  %v3829_v60 = vsel %vm1846_vm9, %v3797_v40, %v3425_v43  ;;  %v8185_v43 = vld [vmem:[#allocation68_spill] sm:$0xff] }
 0x4cc   : > { %3318 = vrot.lane.b32.xlu0 %v2528_v52, %s4724_s30  ;;  %v8186_v52 = vld [vmem:[#allocation19_spill] sm:$0xff] }
 0x4cd   : > { %v3171_v58 = vpop.permute.xlu1 %3170  ;;  %v3640_v62 = vsel %vm225_vm0, %v8186_v52, %v8185_v43 }
 0x4ce   : > { %v3045_v11 = vpop.permute.xlu0 %3044  ;;  %v3766_v22 = vsel %vm1780_vm7, %v3734_v45, %v3171_v58  ;;  %v3672_v46 = vsel %vm1681_vm4, %v3640_v62, %v8187_v23  ;;  %v8198_v62 = vld [vmem:[#allocation79_spill] sm:$0xff] }
 0x4cf   : > { %3446 = vrot.lane.b32.xlu1 %v2560_v21, %s4725_s14  ;;  %v3735_v20 = vsel %vm1747_vm6, %v3703_v10, %v3045_v11  ;;  %v3704_v58 = vsel %vm1714_vm5, %v3672_v46, %v8188_v47 }
 0x4d0   : > { %3320 = vrot.lane.b32.xlu0 %v2529_v55, %s4724_s30 }
 0x4d1   : > { %v3173_v19 = vpop.permute.xlu1 %3172 }
 0x4d2   : > { %v3553_v1 = vpop.permute.xlu0 %3552  ;;  %v3767_v49 = vsel %vm1780_vm7, %v3735_v20, %v3173_v19 }
 0x4d3   : > { %v3861_v29 = vsel %vm1879_vm10, %v3829_v60, %v3553_v1  ;;  %3066 = vrot.lane.b32.xlu1 %v2560_v21, %s4722_s28 }
 0x4d4   : > { %2940 = vrot.lane.b32.xlu0 %v2529_v55, %s4721_s27  ;;  %4608 = vmatmul.mubr.msk.f32.gmra.mrb[10].mxu1 %vm1924_vm11, %v3861_v29 }
 0x4d5   : > { %v3301_v38 = vpop.permute.xlu1 %3300 }
 0x4d6   : > { %v3299_v33 = vpop.permute.xlu0 %3298  ;;  %v3799_v36 = vsel %vm1813_vm8, %v3767_v49, %v3301_v38  ;;  %v8189_v38 = vld [vmem:[#allocation69_spill] sm:$0xff] }
 0x4d7   : > { %3574 = vrot.lane.b32.xlu1 %v2592_v12, %s4726_s17  ;;  %v3798_v44 = vsel %vm1813_vm8, %v3766_v22, %v3299_v33  ;;  %v8190_v33 = vld [vmem:[#allocation14_spill] sm:$0xff] }
 0x4d8   : > { %3448 = vrot.lane.b32.xlu0 %v2561_v14, %s4725_s14 }
 0x4d9   : > { %v3047_v61 = vpop.permute.xlu1 %3046 }
 0x4da   : > { %v3427_v4 = vpop.permute.xlu0 %3426  ;;  %v3736_v11 = vsel %vm1747_vm6, %v3704_v58, %v3047_v61 }
 0x4db   : > { %3194 = vrot.lane.b32.xlu1 %v2592_v12, %s4723_s29  ;;  %v3830_v18 = vsel %vm1846_vm9, %v3798_v44, %v3427_v4  ;;  %v3641_v12 = vsel %vm225_vm0, %v8190_v33, %v8189_v38  ;;  %v8200_v33 = vld [vmem:[#allocation129_spill] sm:$0xff] }
 0x4dc   : > { %3068 = vrot.lane.b32.xlu0 %v2561_v14, %s4722_s28  ;;  %v3673_v2 = vsel %vm1681_vm4, %v3641_v12, %v8191_v27  ;;  %v8192_v14 = vld [vmem:[#allocation33_spill] sm:$0xff]  ;;  %v8201_v27 = vld [vmem:[#allocation64_spill] sm:$0xff] }
 0x4dd   : > { %v3555_v13 = vpop.permute.xlu1 %3554  ;;  %v3705_v56 = vsel %vm1714_vm5, %v3673_v2, %v8192_v14 }
 0x4de   : > { %v3862_v63 = vsel %vm1879_vm10, %v3830_v18, %v3555_v13  ;;  %v3429_v25 = vpop.permute.xlu0 %3428  ;;  %v2438_v18 = vld [vmem:[#allocation2 + $0x168] sm:$0xff] }
 0x4df   : > { %3196 = vrot.lane.b32.xlu1 %v2499_v31, %s4723_s29  ;;  %4610 = vmatprep.mubr.msk.f32.mxu1 %vm1924_vm11, %v3862_v63  ;;  %v3831_v57 = vsel %vm1846_vm9, %v3799_v36, %v3429_v25 }
 0x4e0   : > { %3576 = vrot.lane.b32.xlu0 %v2499_v31, %s4726_s17  ;;  %v2564_v31 = vld [vmem:[#allocation2 + $0x169] sm:$0xff] }
 0x4e1   : > { %v3175_v6 = vpop.permute.xlu1 %3174 }
 0x4e2   : > { %v3049_v53 = vpop.permute.xlu0 %3048  ;;  %v3768_v55 = vsel %vm1780_vm7, %v3736_v11, %v3175_v6  ;;  %v8195_v6 = vld [vmem:[#allocation22_spill] sm:$0xff] }
 0x4e3   : > { %2942 = vrot.lane.b32.xlu1 %v2436_v0, %s4721_s27  ;;  %v3737_v35 = vsel %vm1747_vm6, %v3705_v56, %v3049_v53  ;;  %v3706_v16 = vsel %vm1714_vm5, %v3674_v7, %v8195_v6  ;;  %v2598_v7 = vld [vmem:[#allocation2 + $0x182] sm:$0xff] }
 0x4e4   : > { %3322 = vrot.lane.b32.xlu0 %v2436_v0, %s4724_s30 }
 0x4e5   : > { %v3177_v24 = vpop.permute.xlu1 %3176 }
 0x4e6   : > { %v3557_v37 = vpop.permute.xlu0 %3556  ;;  %v3769_v61 = vsel %vm1780_vm7, %v3737_v35, %v3177_v24  ;;  %v2535_v35 = vld [vmem:[#allocation2 + $0x188] sm:$0xff] }
 0x4e7   : > { %v3863_v28 = vsel %vm1879_vm10, %v3831_v57, %v3557_v37  ;;  %3450 = vrot.lane.b32.xlu1 %v2562_v42, %s4725_s14  ;;  %v2596_v37 = vld [vmem:[#allocation2 + $0x16a] sm:$0xff] }
 0x4e8   : > { %3324 = vrot.lane.b32.xlu0 %v2531_v9, %s4724_s30  ;;  %4611 = vmatmul.mubr.msk.f32.gmra.mrb[12].mxu1 %vm1924_vm11, %v3863_v28  ;;  %v4703_v28 = vld [vmem:[#allocation2 + $0xc8] sm:$0xff] }
 0x4e9   : > { %v3305_v34 = vpop.permute.xlu1 %3304 }
 0x4ea   : > { %v3303_v41 = vpop.permute.xlu0 %3302  ;;  %v3801_v45 = vsel %vm1813_vm8, %v3769_v61, %v3305_v34 }
 0x4eb   : > { %3070 = vrot.lane.b32.xlu1 %v2562_v42, %s4722_s28  ;;  %v3800_v40 = vsel %vm1813_vm8, %v3768_v55, %v3303_v41  ;;  %v2565_v42 = vld [vmem:[#allocation2 + $0x171] sm:$0xff]  ;;  %v8197_v41 = vld [vmem:[#allocation9_spill] sm:$0xff] }
 0x4ec   : > { %2944 = vrot.lane.b32.xlu0 %v2531_v9, %s4721_s27  ;;  %v8196_v9 = vld [vmem:[#allocation13_spill] sm:$0xff]  ;;  %v2503_v55 = vld [vmem:[#allocation2 + $0x172] sm:$0xff] }
 0x4ed   : > { %v3051_v5 = vpop.permute.xlu1 %3050  ;;  %v3643_v34 = vsel %vm225_vm0, %v4703_v28, %v8196_v9  ;;  %v2536_v28 = vld [vmem:[#allocation2 + $0x198] sm:$0xff] }
 0x4ee   : > { %v3431_v21 = vpop.permute.xlu0 %3430  ;;  %v3738_v53 = vsel %vm1747_vm6, %v3706_v16, %v3051_v5  ;;  %v3675_v43 = vsel %vm1681_vm4, %v3643_v34, %v8197_v41  ;;  %v2567_v16 = vld [vmem:[#allocation2 + $0x189] sm:$0xff] }
 0x4ef   : > { %3578 = vrot.lane.b32.xlu1 %v2594_v48, %s4726_s17  ;;  %v3832_v19 = vsel %vm1846_vm9, %v3800_v40, %v3431_v21  ;;  %v3707_v23 = vsel %vm1714_vm5, %v3675_v43, %v8198_v62  ;;  %v4706_v34 = vld [vmem:[#allocation2 + $0xf0] sm:$0xff] }
 0x4f0   : > { %3452 = vrot.lane.b32.xlu0 %v2563_v26, %s4725_s14  ;;  %v8205_v41 = vld [vmem:[#allocation23_spill] sm:$0xff] }
 0x4f1   : > { %v3559_v60 = vpop.permute.xlu1 %3558  ;;  %v3646_v43 = vsel %vm225_vm0, %v4706_v34, %v8205_v41 }
 0x4f2   : > { %v3864_v1 = vsel %vm1879_vm10, %v3832_v19, %v3559_v60  ;;  %v3433_v29 = vpop.permute.xlu0 %3432  ;;  %v2440_v60 = vld [vmem:[#allocation2 + $0x180] sm:$0xff] }
 0x4f3   : > { %3198 = vrot.lane.b32.xlu1 %v2594_v48, %s4723_s29  ;;  %4613 = vmatprep.mubr.msk.f32.mxu1 %vm1924_vm11, %v3864_v1  ;;  %v3833_v22 = vsel %vm1846_vm9, %v3801_v45, %v3433_v29  ;;  %v4704_v1 = vld [vmem:[#allocation2 + $0xd8] sm:$0xff] }
 0x4f4   : > { %3072 = vrot.lane.b32.xlu0 %v2563_v26, %s4722_s28  ;;  %v8199_v29 = vld [vmem:[#allocation72_spill] sm:$0xff] }
 0x4f5   : > { %v3179_v30 = vpop.permute.xlu1 %3178  ;;  %v3644_v38 = vsel %vm225_vm0, %v4704_v1, %v8199_v29 }
 0x4f6   : > { %v3053_v51 = vpop.permute.xlu0 %3052  ;;  %v3770_v20 = vsel %vm1780_vm7, %v3738_v53, %v3179_v30  ;;  %v3676_v12 = vsel %vm1681_vm4, %v3644_v38, %v8200_v33  ;;  %v4707_v38 = vld [vmem:[#allocation2 + $0xf8] sm:$0xff]  ;;  %v8208_v33 = vld [vmem:[#allocation17_spill] sm:$0xff] }
 0x4f7   : > { %3200 = vrot.lane.b32.xlu1 %v2501_v39, %s4723_s29  ;;  %v3739_v47 = vsel %vm1747_vm6, %v3707_v23, %v3053_v51  ;;  %v3708_v2 = vsel %vm1714_vm5, %v3676_v12, %v8201_v27  ;;  %v2566_v51 = vld [vmem:[#allocation2 + $0x181] sm:$0xff]  ;;  %v3647_v12 = vsel %vm225_vm0, %v4707_v38, %v8208_v33  ;;  %v8209_v27 = vld [vmem:[#allocation31_spill] sm:$0xff]  ;;  %v4221_v33 = vld [vmem:[%s4823_s24 + $0x18] sm:$0xff] }
 0x4f8   : > { %3580 = vrot.lane.b32.xlu0 %v2501_v39, %s4726_s17  ;;  %v2569_v23 = vld [vmem:[#allocation2 + $0x1a1] sm:$0xff] }
 0x4f9   : > { %v3181_v4 = vpop.permute.xlu1 %3180 }
 0x4fa   : > { %v3561_v44 = vpop.permute.xlu0 %3560  ;;  %v3771_v58 = vsel %vm1780_vm7, %v3739_v47, %v3181_v4 }
 0x4fb   : > { %v3865_v13 = vsel %vm1879_vm10, %v3833_v22, %v3561_v44  ;;  %2946 = vrot.lane.b32.xlu1 %v2438_v18, %s4721_s27 }
 0x4fc   : > { %3326 = vrot.lane.b32.xlu0 %v2438_v18, %s4724_s30  ;;  %4614 = vmatmul.mubr.msk.f32.gmra.mrb[14].mxu1 %vm1924_vm11, %v3865_v13  ;;  %v4705_v18 = vld [vmem:[#allocation2 + $0xe0] sm:$0xff]  ;;  %v8202_v13 = vld [vmem:[#allocation16_spill] sm:$0xff] }
 0x4fd   : > { %v3309_v63 = vpop.permute.xlu1 %3308 }
 0x4fe   : > { %v3307_v25 = vpop.permute.xlu0 %3306  ;;  %v3803_v5 = vsel %vm1813_vm8, %v3771_v58, %v3309_v63  ;;  %v3645_v63 = vsel %vm225_vm0, %v4705_v18, %v8202_v13 }
 0x4ff   : > { %3454 = vrot.lane.b32.xlu1 %v2564_v31, %s4725_s14  ;;  %v3802_v8 = vsel %vm1813_vm8, %v3770_v20, %v3307_v25  ;;  %v8203_v25 = vld [vmem:[#allocation54_spill] sm:$0xff] }
 0x500   : > { %3328 = vrot.lane.b32.xlu0 %v2533_v54, %s4724_s30 }
 0x501   : > { %v3055_v10 = vpop.permute.xlu1 %3054 }
 0x502   : > { %v3435_v0 = vpop.permute.xlu0 %3434  ;;  %v3740_v14 = vsel %vm1747_vm6, %v3708_v2, %v3055_v10  ;;  %v3679_v2 = vsel %vm1681_vm4, %v3647_v12, %v8209_v27 }
 0x503   : > { %3074 = vrot.lane.b32.xlu1 %v2564_v31, %s4722_s28  ;;  %v3834_v49 = vsel %vm1846_vm9, %v3802_v8, %v3435_v0  ;;  %v3677_v31 = vsel %vm1681_vm4, %v3645_v63, %v8203_v25  ;;  %v7452_v25 = vld [vmem:[%s7710_s4] ss:$0 sm:$0xff] }
 0x504   : > { %2948 = vrot.lane.b32.xlu0 %v2533_v54, %s4721_s27  ;;  %v3709_v54 = vsel %vm1714_vm5, %v3677_v31, %v8204_v17  ;;  %v8211_v17 = vld [vmem:[#allocation21_spill] sm:$0xff] }
 0x505   : > { %v3563_v36 = vpop.permute.xlu1 %3562 }
 0x506   : > { %v3866_v24 = vsel %vm1879_vm10, %v3834_v49, %v3563_v36  ;;  %v3437_v57 = vpop.permute.xlu0 %3436 }
 0x507   : > { %3582 = vrot.lane.b32.xlu1 %v2596_v37, %s4726_s17  ;;  %4616 = vmatprep.mubr.msk.f32.mxu1 %vm1924_vm11, %v3866_v24  ;;  %v3835_v21 = vsel %vm1846_vm9, %v3803_v5, %v3437_v57  ;;  %v2505_v57 = vld [vmem:[#allocation2 + $0x18a] sm:$0xff]  ;;  %v2568_v5 = vld [vmem:[#allocation2 + $0x199] sm:$0xff] }
 0x508   : > { %3456 = vrot.lane.b32.xlu0 %v2565_v42, %s4725_s14 }
 0x509   : > { %v3183_v52 = vpop.permute.xlu1 %3182 }
 0x50a   : > { %v3057_v46 = vpop.permute.xlu0 %3056  ;;  %v3772_v39 = vsel %vm1780_vm7, %v3740_v14, %v3183_v52  ;;  %v8206_v52 = vld [vmem:[#allocation78_spill] sm:$0xff]  ;;  %v8210_v14 = vld [vmem:[#allocation20_spill] sm:$0xff] }
 0x50b   : > { %3202 = vrot.lane.b32.xlu1 %v2596_v37, %s4723_s29  ;;  %v3741_v6 = vsel %vm1747_vm6, %v3709_v54, %v3057_v46  ;;  %v2537_v37 = vld [vmem:[#allocation2 + $0x1a0] sm:$0xff]  ;;  %v3678_v62 = vsel %vm1681_vm4, %v3646_v43, %v8206_v52  ;;  %v8207_v46 = vld [vmem:[#allocation134_spill] sm:$0xff]  ;;  %v4709_v52 = vld [vmem:[#allocation2 + $0x110] sm:$0xff] }
 0x50c   : > { %3076 = vrot.lane.b32.xlu0 %v2565_v42, %s4722_s28  ;;  %v3710_v47 = vsel %vm1714_vm5, %v3678_v62, %v8207_v46  ;;  %v8213_v62 = vld [vmem:[#allocation74_spill] sm:$0xff]  ;;  %v8214_v46 = vld [vmem:[#allocation29_spill] sm:$0xff] }
 0x50d   : > { %v3185_v11 = vpop.permute.xlu1 %3184 }
 0x50e   : > { %v3565_v48 = vpop.permute.xlu0 %3564  ;;  %v3773_v10 = vsel %vm1780_vm7, %v3741_v6, %v3185_v11  ;;  %v8212_v6 = vld [vmem:[#allocation99_spill] sm:$0xff] }
 0x50f   : > { %v3867_v26 = vsel %vm1879_vm10, %v3835_v21, %v3565_v48  ;;  %3204 = vrot.lane.b32.xlu1 %v2503_v55, %s4723_s29 }
 0x510   : > { %3584 = vrot.lane.b32.xlu0 %v2503_v55, %s4726_s17  ;;  %4617 = vmatmul.mubr.msk.f32.gmra.mrb[16].mxu1 %vm1924_vm11, %v3867_v26  ;;  %v2601_v26 = vld [vmem:[#allocation2 + $0x1a2] sm:$0xff] }
 0x511   : > { %v3313_v40 = vpop.permute.xlu1 %3312 }
 0x512   : > { %v3311_v19 = vpop.permute.xlu0 %3310  ;;  %v3805_v53 = vsel %vm1813_vm8, %v3773_v10, %v3313_v40 }
 0x513   : > { %2950 = vrot.lane.b32.xlu1 %v2440_v60, %s4721_s27  ;;  %v3804_v61 = vsel %vm1813_vm8, %v3772_v39, %v3311_v19 }
 0x514   : > { %3330 = vrot.lane.b32.xlu0 %v2440_v60, %s4724_s30  ;;  %v2600_v60 = vld [vmem:[#allocation2 + $0x19a] sm:$0xff] }
 0x515   : > { %v3059_v30 = vpop.permute.xlu1 %3058 }
 0x516   : > { %v3439_v56 = vpop.permute.xlu0 %3438  ;;  %v3742_v11 = vsel %vm1747_vm6, %v3710_v47, %v3059_v30 }
 0x517   : > { %3458 = vrot.lane.b32.xlu1 %v2566_v51, %s4725_s14  ;;  %v3836_v45 = vsel %vm1846_vm9, %v3804_v61, %v3439_v56  ;;  %v3711_v56 = vsel %vm1714_vm5, %v3679_v2, %v8210_v14  ;;  %v4220_v2 = vld [vmem:[%s4823_s24 + $0x10] sm:$0xff] }
 0x518   : > { %3332 = vrot.lane.b32.xlu0 %v2535_v35, %s4724_s30 }
 0x519   : > { %v3567_v4 = vpop.permute.xlu1 %3566 }
 0x51a   : > { %v3868_v22 = vsel %vm1879_vm10, %v3836_v45, %v3567_v4  ;;  %v3441_v44 = vpop.permute.xlu0 %3440 }
 0x51b   : > { %3078 = vrot.lane.b32.xlu1 %v2566_v51, %s4722_s28  ;;  %4619 = vmatprep.mubr.msk.f32.mxu1 %vm1924_vm11, %v3868_v22  ;;  %v3837_v20 = vsel %vm1846_vm9, %v3805_v53, %v3441_v44 }
 0x51c   : > { %2952 = vrot.lane.b32.xlu0 %v2535_v35, %s4721_s27 }
 0x51d   : > { %v3187_v32 = vpop.permute.xlu1 %3186 }
 0x51e   : > { %v3061_v59 = vpop.permute.xlu0 %3060  ;;  %v3774_v48 = vsel %vm1780_vm7, %v3742_v11, %v3187_v32  ;;  %v4708_v32 = vld [vmem:[#allocation2 + $0x108] sm:$0xff] }
 0x51f   : > { %3586 = vrot.lane.b32.xlu1 %v2598_v7, %s4726_s17  ;;  %v3743_v39 = vsel %vm1747_vm6, %v3711_v56, %v3061_v59  ;;  %v3648_v54 = vsel %vm225_vm0, %v4708_v32, %v8211_v17 }
 0x520   : > { %3460 = vrot.lane.b32.xlu0 %v2567_v16, %s4725_s14 }
 0x521   : > { %v3189_v0 = vpop.permute.xlu1 %3188 }
 0x522   : > { %v3569_v8 = vpop.permute.xlu0 %3568  ;;  %v3775_v35 = vsel %vm1780_vm7, %v3743_v39, %v3189_v0  ;;  %v4218_v0 = vld [vmem:[%s4823_s24] sm:$0xff] }
 0x523   : > { %v3869_v49 = vsel %vm1879_vm10, %v3837_v20, %v3569_v8  ;;  %3206 = vrot.lane.b32.xlu1 %v2598_v7, %s4723_s29  ;;  %v4219_v7 = vld [vmem:[%s4823_s24 + $0x8] sm:$0xff]  ;;  %v8215_v39 = vld [vmem:[#allocation73_spill] sm:$0xff] }
 0x524   : > { %3080 = vrot.lane.b32.xlu0 %v2567_v16, %s4722_s28  ;;  %4620 = vmatmul.mubr.msk.f32.gmra.mrb[18].mxu1 %vm1924_vm11, %v3869_v49  ;;  %v3680_v16 = vsel %vm1681_vm4, %v3648_v54, %v8212_v6  ;;  %v8218_v6 = vld [vmem:[#allocation77_spill] sm:$0xff] }
 0x525   : > { %v2935_v36 = vpop.permute.xlu1 %2934 }
 0x526   : > { %v3315_v24 = vpop.permute.xlu0 %3314  ;;  %v3712_v20 = vsel %vm1714_vm5, %v3680_v16, %v2935_v36 }
 0x527   : > { %3208 = vrot.lane.b32.xlu1 %v2505_v57, %s4723_s29  ;;  %v3806_v55 = vsel %vm1813_vm8, %v3774_v48, %v3315_v24 }
 0x528   : > { %3588 = vrot.lane.b32.xlu0 %v2505_v57, %s4726_s17 }
 0x529   : > { %v3443_v42 = vpop.permute.xlu1 %3442 }
 0x52a   : > { %v3317_v9 = vpop.permute.xlu0 %3316  ;;  %v3838_v40 = vsel %vm1846_vm9, %v3806_v55, %v3443_v42 }
 0x52b   : > { %3336 = vrot.lane.b32.xlu1 %v2537_v37, %s4724_s30  ;;  %v3807_v61 = vsel %vm1813_vm8, %v3775_v35, %v3317_v9  ;;  %v3650_v35 = vsel %vm225_vm0, %v7200_v50, %v8215_v39 }
 0x52c   : > { %3334 = vrot.lane.b32.xlu0 %v2536_v28, %s4724_s30 }
 0x52d   : > { %v3063_v58 = vpop.permute.xlu1 %3062 }
 0x52e   : > { %v7426_v21 = vpop.permute.xlu0 %2936  ;;  %v3744_v24 = vsel %vm1747_vm6, %v3712_v20, %v3063_v58 }
 0x52f   : > { %3464 = vrot.lane.b32.xlu1 %v2569_v23, %s4725_s14  ;;  %v3649_v23 = vsel %vm225_vm0, %v4709_v52, %v8213_v62 }
 0x530   : > { %3462 = vrot.lane.b32.xlu0 %v2568_v5, %s4725_s14  ;;  %v3681_v47 = vsel %vm1681_vm4, %v3649_v23, %v8214_v46 }
 0x531   : > { %v3571_v19 = vpop.permute.xlu1 %3570  ;;  %v3713_v5 = vsel %vm1714_vm5, %v3681_v47, %v7426_v21 }
 0x532   : > { %v3870_v1 = vsel %vm1879_vm10, %v3838_v40, %v3571_v19  ;;  %v3445_v29 = vpop.permute.xlu0 %3444 }
 0x533   : > { %3592 = vrot.lane.b32.xlu1 %v2601_v26, %s4726_s17  ;;  %4622 = vmatprep.mubr.msk.f32.mxu1 %vm1924_vm11, %v3870_v1  ;;  %v3839_v4 = vsel %vm1846_vm9, %v3807_v61, %v3445_v29 }
 0x534   : > { %3590 = vrot.lane.b32.xlu0 %v2600_v60, %s4726_s17 }
 0x535   : > { %v3191_v30 = vpop.permute.xlu1 %3190 }
 0x536   : > { %v3065_v51 = vpop.permute.xlu0 %3064  ;;  %v3776_v42 = vsel %vm1780_vm7, %v3744_v24, %v3191_v30 }
 0x537   : > { %v3745_v48 = vsel %vm1747_vm6, %v3713_v5, %v3065_v51 }
 0x539   : > { %v3193_v45 = vpop.permute.xlu1 %3192 }
 0x53a   : > { %v3573_v22 = vpop.permute.xlu0 %3572  ;;  %v3777_v55 = vsel %vm1780_vm7, %v3745_v48, %v3193_v45  ;;  %v8216_v45 = vld [vmem:[#allocation18_spill] sm:$0xff] }
 0x53b   : > { %v3871_v44 = vsel %vm1879_vm10, %v3839_v4, %v3573_v22  ;;  %v3682_v4 = vsel %vm1681_vm4, %v3650_v35, %v8216_v45 }
 0x53c   : > { %4623 = vmatmul.mubr.msk.f32.gmra.mrb[20].mxu1 %vm1924_vm11, %v3871_v44 }
 0x53d   : > { %v2939_v18 = vpop.permute.xlu1 %2938 }
 0x53e   : > { %v3319_v13 = vpop.permute.xlu0 %3318  ;;  %v3714_v22 = vsel %vm1714_vm5, %v3682_v4, %v2939_v18  ;;  %v8217_v18 = vld [vmem:[#allocation95_spill] sm:$0xff] }
 0x53f   : > { %v3808_v36 = vsel %vm1813_vm8, %v3776_v42, %v3319_v13 }
 0x541   : > { %v3447_v63 = vpop.permute.xlu1 %3446 }
 0x542   : > { %v3321_v31 = vpop.permute.xlu0 %3320  ;;  %v3840_v9 = vsel %vm1846_vm9, %v3808_v36, %v3447_v63  ;;  %v4223_v36 = vld [vmem:[%s4823_s24 + $0x28] sm:$0xff] }
 0x543   : > { %v4594_v59 = vpop.f32.mrb[0].mxu1  ;;  %v3809_v26 = vsel %vm1813_vm8, %v3777_v55, %v3321_v31 }
 0x544   : > { %v4065_v10 = vadd.f32 %v4594_v59, %v7452_v25  ;;  %v4059_v53 = vpop.f32.mrb[1].mxu1 }
 0x545   : > { %v4060_v8 = vadd.f32 %v7452_v25, %v4059_v53  ;;  %v3067_v49 = vpop.permute.xlu1 %3066 }
 0x546   : > { %v4251_v57 = vadd.f32 %v4219_v7, %v4065_v10  ;;  %v2941_v37 = vpop.permute.xlu0 %2940  ;;  %v3746_v13 = vsel %vm1747_vm6, %v3714_v22, %v3067_v49  ;;  %v3651_v7 = vsel %vm225_vm0, %v7211_v15, %v8217_v18 }
 0x547   : > { %v4250_v28 = vadd.f32 %v4218_v0, %v4060_v8  ;;  %v3683_v16 = vsel %vm1681_vm4, %v3651_v7, %v8218_v6 }
 0x548   : > { %4283 = vst.msk [vmem:[%s7467_s13 + $0x8] sm:$0xff] %vm225_vm0, %v4251_v57  ;;  %v3715_v53 = vsel %vm1714_vm5, %v3683_v16, %v2941_v37  ;;  %v2342_v16 = vld [vmem:[#allocation2 + $0x150] sm:$0xff] }
 0x549   : > { %4282 = vst.msk [vmem:[%s7467_s13] sm:$0xff] %vm225_vm0, %v4250_v28  ;;  %v3575_v34 = vpop.permute.xlu1 %3574 }
 0x54a   : > { %v3872_v41 = vsel %vm1879_vm10, %v3840_v9, %v3575_v34  ;;  %v3449_v43 = vpop.permute.xlu0 %3448  ;;  %v4222_v34 = vld [vmem:[%s4823_s24 + $0x20] sm:$0xff] }
 0x54b   : > { %4625 = vmatprep.mubr.msk.f32.mxu1 %vm1924_vm11, %v3872_v41  ;;  %v3841_v19 = vsel %vm1846_vm9, %v3809_v26, %v3449_v43 }
 0x54d   : > { %v3195_v58 = vpop.permute.xlu1 %3194 }
 0x54e   : > { %v3069_v11 = vpop.permute.xlu0 %3068  ;;  %v3778_v31 = vsel %vm1780_vm7, %v3746_v13, %v3195_v58  ;;  %v8219_v58 = vld [vmem:[#allocation52_spill] sm:$0xff] }
 0x54f   : > { %v3747_v20 = vsel %vm1747_vm6, %v3715_v53, %v3069_v11  ;;  %v3652_v5 = vsel %vm225_vm0, %v7250_v3, %v8219_v58  ;;  %v8220_v11 = vld [vmem:[#allocation60_spill] sm:$0xff]  ;;  %v8223_v53 = vld [vmem:[#allocation50_spill] sm:$0xff]  ;;  %v4226_v58 = vld [vmem:[%s4823_s24 + $0x40] sm:$0xff] }
 0x550   : > { %v3684_v48 = vsel %vm1681_vm4, %v3652_v5, %v8220_v11  ;;  %v8226_v5 = vld [vmem:[#allocation15_spill] sm:$0xff] }
 0x551   : > { %v3197_v40 = vpop.permute.xlu1 %3196 }
 0x552   : > { %v3577_v60 = vpop.permute.xlu0 %3576  ;;  %v3779_v8 = vsel %vm1780_vm7, %v3747_v20, %v3197_v40  ;;  %v8224_v20 = vld [vmem:[#allocation132_spill] sm:$0xff] }
 0x553   : > { %v3873_v1 = vsel %vm1879_vm10, %v3841_v19, %v3577_v60 }
 0x554   : > { %4626 = vmatmul.mubr.msk.f32.gmra.mrb[22].mxu1 %vm1924_vm11, %v3873_v1 }
 0x555   : > { %v2943_v29 = vpop.permute.xlu1 %2942 }
 0x556   : > { %v3323_v21 = vpop.permute.xlu0 %3322  ;;  %v3716_v55 = vsel %vm1714_vm5, %v3684_v48, %v2943_v29  ;;  %v8221_v29 = vld [vmem:[#allocation7_spill] sm:$0xff] }
 0x557   : > { %v4597_v38 = vpop.f32.mrb[2].mxu1  ;;  %v3810_v32 = vsel %vm1813_vm8, %v3778_v31, %v3323_v21 }
 0x558   : > { %v4075_v12 = vadd.f32 %v4597_v38, %v7452_v25  ;;  %v4069_v27 = vpop.f32.mrb[3].mxu1 }
 0x559   : > { %v4070_v30 = vadd.f32 %v7452_v25, %v4069_v27  ;;  %v3451_v14 = vpop.permute.xlu1 %3450 }
 0x55a   : > { %v4253_v56 = vadd.f32 %v4221_v33, %v4075_v12  ;;  %v3325_v51 = vpop.permute.xlu0 %3324  ;;  %v3842_v50 = vsel %vm1846_vm9, %v3810_v32, %v3451_v14  ;;  %v2341_v12 = vld [vmem:[#allocation2 + $0x140] sm:$0xff] }
 0x55b   : > { %v4252_v61 = vadd.f32 %v4220_v2, %v4070_v30  ;;  %v3811_v49 = vsel %vm1813_vm8, %v3779_v8, %v3325_v51  ;;  %v3653_v27 = vsel %vm225_vm0, %v2341_v12, %v8221_v29  ;;  %v8222_v2 = vld [vmem:[#allocation98_spill] sm:$0xff] }
 0x55c   : > { %4285 = vst.msk [vmem:[%s7467_s13 + $0x18] sm:$0xff] %vm225_vm0, %v4253_v56  ;;  %v3685_v30 = vsel %vm1681_vm4, %v3653_v27, %v8222_v2 }
 0x55d   : > { %4284 = vst.msk [vmem:[%s7467_s13 + $0x10] sm:$0xff] %vm225_vm0, %v4252_v61  ;;  %v3071_v44 = vpop.permute.xlu1 %3070  ;;  %v4225_v61 = vld [vmem:[%s4823_s24 + $0x38] sm:$0xff] }
 0x55e   : > { %v2945_v63 = vpop.permute.xlu0 %2944  ;;  %v3748_v40 = vsel %vm1747_vm6, %v3716_v55, %v3071_v44  ;;  %v4224_v44 = vld [vmem:[%s4823_s24 + $0x30] sm:$0xff] }
 0x55f   : > { %v3717_v56 = vsel %vm1714_vm5, %v3685_v30, %v2945_v63  ;;  %v2344_v30 = vld [vmem:[#allocation2 + $0x168] sm:$0xff] }
 0x561   : > { %v3579_v17 = vpop.permute.xlu1 %3578 }
 0x562   : > { %v3874_v54 = vsel %vm1879_vm10, %v3842_v50, %v3579_v17  ;;  %v3453_v59 = vpop.permute.xlu0 %3452 }
 0x563   : > { %4628 = vmatprep.mubr.msk.f32.mxu1 %vm1924_vm11, %v3874_v54  ;;  %v3843_v57 = vsel %vm1846_vm9, %v3811_v49, %v3453_v59 }
 0x565   : > { %v3199_v10 = vpop.permute.xlu1 %3198 }
 0x566   : > { %v3073_v0 = vpop.permute.xlu0 %3072  ;;  %v3780_v60 = vsel %vm1780_vm7, %v3748_v40, %v3199_v10 }
 0x567   : > { %v3749_v39 = vsel %vm1747_vm6, %v3717_v56, %v3073_v0  ;;  %v3654_v0 = vsel %vm225_vm0, %v2342_v16, %v8223_v53  ;;  %v8227_v56 = vld [vmem:[#allocation27_spill] sm:$0xff] }
 0x568   : > { %v3686_v8 = vsel %vm1681_vm4, %v3654_v0, %v8224_v20  ;;  %v4229_v20 = vld [vmem:[%s4823_s24 + $0x58] sm:$0xff] }
 0x569   : > { %v3201_v24 = vpop.permute.xlu1 %3200 }
 0x56a   : > { %v3581_v15 = vpop.permute.xlu0 %3580  ;;  %v3781_v45 = vsel %vm1780_vm7, %v3749_v39, %v3201_v24  ;;  %v8228_v39 = vld [vmem:[#allocation127_spill] sm:$0xff] }
 0x56b   : > { %v3875_v42 = vsel %vm1879_vm10, %v3843_v57, %v3581_v15  ;;  %v4600_v28 = vpop.f32.mrb[4].mxu1 }
 0x56c   : > { %v4085_v9 = vadd.f32 %v4600_v28, %v7452_v25  ;;  %v4079_v37 = vpop.f32.mrb[5].mxu1  ;;  %4629 = vmatmul.mubr.msk.f32.gmra.mrb[24].mxu1 %vm1924_vm11, %v3875_v42 }
 0x56d   : > { %v4080_v41 = vadd.f32 %v7452_v25, %v4079_v37  ;;  %v2947_v43 = vpop.permute.xlu1 %2946 }
 0x56e   : > { %v4255_v52 = vadd.f32 %v4223_v36, %v4085_v9  ;;  %v3327_v62 = vpop.permute.xlu0 %3326  ;;  %v3718_v49 = vsel %vm1714_vm5, %v3686_v8, %v2947_v43  ;;  %v8225_v43 = vld [vmem:[#allocation128_spill] sm:$0xff] }
 0x56f   : > { %v4254_v23 = vadd.f32 %v4222_v34, %v4080_v41  ;;  %v3812_v1 = vsel %vm1813_vm8, %v3780_v60, %v3327_v62  ;;  %v2343_v41 = vld [vmem:[#allocation2 + $0x158] sm:$0xff]  ;;  %v4227_v62 = vld [vmem:[%s4823_s24 + $0x48] sm:$0xff] }
 0x570   : > { %4287 = vst.msk [vmem:[%s7467_s13 + $0x28] sm:$0xff] %vm225_vm0, %v4255_v52 }
 0x571   : > { %4286 = vst.msk [vmem:[%s7467_s13 + $0x20] sm:$0xff] %vm225_vm0, %v4254_v23  ;;  %v3455_v46 = vpop.permute.xlu1 %3454  ;;  %v3655_v23 = vsel %vm225_vm0, %v2343_v41, %v8225_v43  ;;  %v4230_v41 = vld [vmem:[%s4823_s24 + $0x60] sm:$0xff] }
 0x572   : > { %v3329_v47 = vpop.permute.xlu0 %3328  ;;  %v3844_v21 = vsel %vm1846_vm9, %v3812_v1, %v3455_v46  ;;  %v3687_v11 = vsel %vm1681_vm4, %v3655_v23, %v8226_v5  ;;  %v4232_v5 = vld [vmem:[%s4823_s24 + $0x70] sm:$0xff] }
 0x573   : > { %v3813_v13 = vsel %vm1813_vm8, %v3781_v45, %v3329_v47 }
 0x575   : > { %v3075_v26 = vpop.permute.xlu1 %3074 }
 0x576   : > { %v2949_v19 = vpop.permute.xlu0 %2948  ;;  %v3750_v57 = vsel %vm1747_vm6, %v3718_v49, %v3075_v26 }
 0x577   : > { %v3719_v26 = vsel %vm1714_vm5, %v3687_v11, %v2949_v19 }
 0x579   : > { %v3583_v38 = vpop.permute.xlu1 %3582 }
 0x57a   : > { %v3876_v3 = vsel %vm1879_vm10, %v3844_v21, %v3583_v38  ;;  %v3457_v33 = vpop.permute.xlu0 %3456 }
 0x57b   : > { %4631 = vmatprep.mubr.msk.f32.mxu1 %vm1924_vm11, %v3876_v3  ;;  %v3845_v63 = vsel %vm1846_vm9, %v3813_v13, %v3457_v33 }
 0x57d   : > { %v3203_v14 = vpop.permute.xlu1 %3202 }
 0x57e   : > { %v3077_v51 = vpop.permute.xlu0 %3076  ;;  %v3782_v42 = vsel %vm1780_vm7, %v3750_v57, %v3203_v14  ;;  %v2345_v14 = vld [vmem:[#allocation2 + $0x170] sm:$0xff] }
 0x57f   : > { %v4603_v35 = vpop.f32.mrb[6].mxu1  ;;  %v3751_v1 = vsel %vm1747_vm6, %v3719_v26, %v3077_v51  ;;  %v3656_v51 = vsel %vm225_vm0, %v2344_v30, %v8227_v56  ;;  %v4228_v57 = vld [vmem:[%s4823_s24 + $0x50] sm:$0xff] }
 0x580   : > { %v4095_v4 = vadd.f32 %v4603_v35, %v7452_v25  ;;  %v4089_v22 = vpop.f32.mrb[7].mxu1  ;;  %v3657_v35 = vsel %vm225_vm0, %v2345_v14, %v8228_v39  ;;  %v4239_v39 = vld [vmem:[%s4823_s24 + $0xa8] sm:$0xff] }
 0x581   : > { %v4090_v31 = vadd.f32 %v7452_v25, %v4089_v22  ;;  %v3205_v32 = vpop.permute.xlu1 %3204  ;;  %v8230_v22 = vld [vmem:[#allocation58_spill] sm:$0xff] }
 0x582   : > { %v4257_v50 = vadd.f32 %v4225_v61, %v4095_v4  ;;  %v3585_v17 = vpop.permute.xlu0 %3584  ;;  %v3783_v38 = vsel %vm1780_vm7, %v3751_v1, %v3205_v32  ;;  %v8229_v61 = vld [vmem:[#allocation131_spill] sm:$0xff] }
 0x583   : > { %v4256_v54 = vadd.f32 %v4224_v44, %v4090_v31  ;;  %v3877_v59 = vsel %vm1879_vm10, %v3845_v63, %v3585_v17  ;;  %v3688_v45 = vsel %vm1681_vm4, %v3656_v51, %v8229_v61  ;;  %v3689_v44 = vsel %vm1681_vm4, %v3657_v35, %v8230_v22 }
 0x584   : > { %4289 = vst.msk [vmem:[%s7467_s13 + $0x38] sm:$0xff] %vm225_vm0, %v4257_v50  ;;  %4632 = vmatmul.mubr.msk.f32.gmra.mrb[26].mxu1 %vm1924_vm11, %v3877_v59 }
 0x585   : > { %4288 = vst.msk [vmem:[%s7467_s13 + $0x30] sm:$0xff] %vm225_vm0, %v4256_v54  ;;  %v2951_v18 = vpop.permute.xlu1 %2950 }
 0x586   : > { %v3331_v7 = vpop.permute.xlu0 %3330  ;;  %v3720_v13 = vsel %vm1714_vm5, %v3688_v45, %v2951_v18  ;;  %v4238_v45 = vld [vmem:[%s4823_s24 + $0xa0] sm:$0xff] }
 0x587   : > { %v3814_v28 = vsel %vm1813_vm8, %v3782_v42, %v3331_v7 }
 0x589   : > { %v3459_v6 = vpop.permute.xlu1 %3458 }
 0x58a   : > { %v3333_v10 = vpop.permute.xlu0 %3332  ;;  %v3846_v36 = vsel %vm1846_vm9, %v3814_v28, %v3459_v6 }
 0x58b   : > { %v3815_v3 = vsel %vm1813_vm8, %v3783_v38, %v3333_v10 }
 0x58d   : > { %v3079_v24 = vpop.permute.xlu1 %3078 }
 0x58e   : > { %v2953_v15 = vpop.permute.xlu0 %2952  ;;  %v3752_v32 = vsel %vm1747_vm6, %v3720_v13, %v3079_v24 }
 0x58f   : > { %v3721_v63 = vsel %vm1714_vm5, %v3689_v44, %v2953_v15 }
 0x591   : > { %v3587_v9 = vpop.permute.xlu1 %3586 }
 0x592   : > { %v3878_v37 = vsel %vm1879_vm10, %v3846_v36, %v3587_v9  ;;  %v3461_v34 = vpop.permute.xlu0 %3460  ;;  %v4231_v9 = vld [vmem:[%s4823_s24 + $0x68] sm:$0xff] }
 0x593   : > { %v4606_v52 = vpop.f32.mrb[8].mxu1  ;;  %4634 = vmatprep.mubr.msk.f32.mxu1 %vm1924_vm11, %v3878_v37  ;;  %v3847_v12 = vsel %vm1846_vm9, %v3815_v3, %v3461_v34 }
 0x594   : > { %v4105_v46 = vadd.f32 %v4606_v52, %v7452_v25  ;;  %v4099_v47 = vpop.f32.mrb[9].mxu1 }
 0x595   : > { %v4100_v48 = vadd.f32 %v7452_v25, %v4099_v47  ;;  %v3207_v55 = vpop.permute.xlu1 %3206 }
 0x596   : > { %v4259_v40 = vadd.f32 %v4227_v62, %v4105_v46  ;;  %v3081_v60 = vpop.permute.xlu0 %3080  ;;  %v3784_v50 = vsel %vm1780_vm7, %v3752_v32, %v3207_v55  ;;  %v4233_v46 = vld [vmem:[%s4823_s24 + $0x78] sm:$0xff] }
 0x597   : > { %v4258_v21 = vadd.f32 %v4226_v58, %v4100_v48  ;;  %v3753_v17 = vsel %vm1747_vm6, %v3721_v63, %v3081_v60 }
 0x598   : > { %4291 = vst.msk [vmem:[%s7467_s13 + $0x48] sm:$0xff] %vm225_vm0, %v4259_v40  ;;  %v4235_v40 = vld [vmem:[%s4823_s24 + $0x88] sm:$0xff] }
 0x599   : > { %4290 = vst.msk [vmem:[%s7467_s13 + $0x40] sm:$0xff] %vm225_vm0, %v4258_v21  ;;  %v3209_v33 = vpop.permute.xlu1 %3208  ;;  %v4234_v21 = vld [vmem:[%s4823_s24 + $0x80] sm:$0xff] }
 0x59a   : > { %v3589_v29 = vpop.permute.xlu0 %3588  ;;  %v3785_v54 = vsel %vm1780_vm7, %v3753_v17, %v3209_v33 }
 0x59b   : > { %v3879_v27 = vsel %vm1879_vm10, %v3847_v12, %v3589_v29  ;;  %v4237_v29 = vld [vmem:[%s4823_s24 + $0x98] sm:$0xff] }
 0x59c   : > { %4635 = vmatmul.mubr.msk.f32.gmra.mrb[28].mxu1 %vm1924_vm11, %v3879_v27 }
 0x59d   : > { %v3337_v19 = vpop.permute.xlu1 %3336 }
 0x59e   : > { %v3335_v2 = vpop.permute.xlu0 %3334  ;;  %v3817_v6 = vsel %vm1813_vm8, %v3785_v54, %v3337_v19 }
 0x59f   : > { %v3816_v59 = vsel %vm1813_vm8, %v3784_v50, %v3335_v2  ;;  %v4236_v2 = vld [vmem:[%s4823_s24 + $0x90] sm:$0xff] }
 0x5a0   : > { %v4240_v50 = vld [vmem:[%s4823_s24 + $0xb0] sm:$0xff] }
 0x5a1   : > { %v3465_v4 = vpop.permute.xlu1 %3464 }
 0x5a2   : > { %v3463_v31 = vpop.permute.xlu0 %3462  ;;  %v3849_v10 = vsel %vm1846_vm9, %v3817_v6, %v3465_v4  ;;  %v4243_v6 = vld [vmem:[%s4823_s24 + $0xc8] sm:$0xff] }
 0x5a3   : > { %v3848_v18 = vsel %vm1846_vm9, %v3816_v59, %v3463_v31  ;;  %v4241_v31 = vld [vmem:[%s4823_s24 + $0xb8] sm:$0xff] }
 0x5a5   : > { %v3593_v7 = vpop.permute.xlu1 %3592 }
 0x5a6   : > { %v3591_v16 = vpop.permute.xlu0 %3590  ;;  %v3881_v8 = vsel %vm1879_vm10, %v3849_v10, %v3593_v7  ;;  %v4242_v10 = vld [vmem:[%s4823_s24 + $0xc0] sm:$0xff] }
 0x5a7   : > { %v3880_v53 = vsel %vm1879_vm10, %v3848_v18, %v3591_v16  ;;  %v4609_v0 = vpop.f32.mrb[10].mxu1 }
 0x5a8   : > { %v4115_v49 = vadd.f32 %v4609_v0, %v7452_v25  ;;  %v4109_v24 = vpop.f32.mrb[11].mxu1  ;;  %4637 = vmatprep.mubr.msk.f32.mxu1 %vm1924_vm11, %v3880_v53 }
 0x5a9   : > { %v4110_v15 = vadd.f32 %v7452_v25, %v4109_v24  ;;  %4638 = vmatmul.mubr.msk.f32.gmra.mrb[30].mxu1 %vm1924_vm11, %v3881_v8 }
 0x5aa   : > { %v4261_v42 = vadd.f32 %v4229_v20, %v4115_v49  ;;  %v4245_v49 = vld [vmem:[%s4823_s24 + $0xd8] sm:$0xff] }
 0x5ab   : > { %v4260_v28 = vadd.f32 %v4228_v57, %v4110_v15  ;;  %v4244_v15 = vld [vmem:[%s4823_s24 + $0xd0] sm:$0xff] }
 0x5ac   : > { %4293 = vst.msk [vmem:[%s7467_s13 + $0x58] sm:$0xff] %vm225_vm0, %v4261_v42 }
 0x5ad   : > { %4292 = vst.msk [vmem:[%s7467_s13 + $0x50] sm:$0xff] %vm225_vm0, %v4260_v28 }
 0x5bb   : > { %v4612_v36 = vpop.f32.mrb[12].mxu1 }
 0x5bc   : > { %v4125_v37 = vadd.f32 %v4612_v36, %v7452_v25  ;;  %v4119_v34 = vpop.f32.mrb[13].mxu1 }
 0x5bd   : > { %v4120_v52 = vadd.f32 %v7452_v25, %v4119_v34 }
 0x5be   : > { %v4263_v62 = vadd.f32 %v4231_v9, %v4125_v37  ;;  %v4247_v37 = vld [vmem:[%s4823_s24 + $0xe8] sm:$0xff] }
 0x5bf   : > { %v4262_v43 = vadd.f32 %v4230_v41, %v4120_v52  ;;  %v4246_v52 = vld [vmem:[%s4823_s24 + $0xe0] sm:$0xff] }
 0x5c0   : > { %4295 = vst.msk [vmem:[%s7467_s13 + $0x68] sm:$0xff] %vm225_vm0, %v4263_v62 }
 0x5c1   : > { %4294 = vst.msk [vmem:[%s7467_s13 + $0x60] sm:$0xff] %vm225_vm0, %v4262_v43 }
 0x5cf   : > { %v4615_v23 = vpop.f32.mrb[14].mxu1 }
 0x5d0   : > { %v4135_v47 = vadd.f32 %v4615_v23, %v7452_v25  ;;  %v4129_v58 = vpop.f32.mrb[15].mxu1 }
 0x5d1   : > { %v4130_v11 = vadd.f32 %v7452_v25, %v4129_v58 }
 0x5d2   : > { %v4265_v48 = vadd.f32 %v4233_v46, %v4135_v47  ;;  %v4249_v47 = vld [vmem:[%s4823_s24 + $0xf8] sm:$0xff] }
 0x5d3   : > { %v4264_v55 = vadd.f32 %v4232_v5, %v4130_v11  ;;  %v4248_v11 = vld [vmem:[%s4823_s24 + $0xf0] sm:$0xff] }
 0x5d4   : > { %4297 = vst.msk [vmem:[%s7467_s13 + $0x78] sm:$0xff] %vm225_vm0, %v4265_v48 }
 0x5d5   : > { %4296 = vst.msk [vmem:[%s7467_s13 + $0x70] sm:$0xff] %vm225_vm0, %v4264_v55 }
 0x5e3   : > { %v4618_v26 = vpop.f32.mrb[16].mxu1 }
 0x5e4   : > { %v4145_v60 = vadd.f32 %v4618_v26, %v7452_v25  ;;  %v4139_v1 = vpop.f32.mrb[17].mxu1 }
 0x5e5   : > { %v4140_v38 = vadd.f32 %v7452_v25, %v4139_v1 }
 0x5e6   : > { %v4267_v3 = vadd.f32 %v4235_v40, %v4145_v60 }
 0x5e7   : > { %v4266_v33 = vadd.f32 %v4234_v21, %v4140_v38 }
 0x5e8   : > { %4299 = vst.msk [vmem:[%s7467_s13 + $0x88] sm:$0xff] %vm225_vm0, %v4267_v3 }
 0x5e9   : > { %4298 = vst.msk [vmem:[%s7467_s13 + $0x80] sm:$0xff] %vm225_vm0, %v4266_v33 }
 0x5f7   : > { %v4621_v12 = vpop.f32.mrb[18].mxu1 }
 0x5f8   : > { %v4155_v27 = vadd.f32 %v4621_v12, %v7452_v25  ;;  %v4149_v19 = vpop.f32.mrb[19].mxu1 }
 0x5f9   : > { %v4150_v30 = vadd.f32 %v7452_v25, %v4149_v19 }
 0x5fa   : > { %v4269_v14 = vadd.f32 %v4237_v29, %v4155_v27 }
 0x5fb   : > { %v4268_v56 = vadd.f32 %v4236_v2, %v4150_v30 }
 0x5fc   : > { %4301 = vst.msk [vmem:[%s7467_s13 + $0x98] sm:$0xff] %vm225_vm0, %v4269_v14 }
 0x5fd   : > { %4300 = vst.msk [vmem:[%s7467_s13 + $0x90] sm:$0xff] %vm225_vm0, %v4268_v56 }
 0x60f   : > { %v4624_v51 = vpop.f32.mrb[20].mxu1 }
 0x610   : > { %v4165_v35 = vadd.f32 %v4624_v51, %v7452_v25  ;;  %v4159_v61 = vpop.f32.mrb[21].mxu1 }
 0x611   : > { %v4160_v4 = vadd.f32 %v7452_v25, %v4159_v61 }
 0x612   : > { %v4271_v22 = vadd.f32 %v4239_v39, %v4165_v35 }
 0x613   : > { %v4270_v44 = vadd.f32 %v4238_v45, %v4160_v4 }
 0x614   : > { %4303 = vst.msk [vmem:[%s7467_s13 + $0xa8] sm:$0xff] %vm225_vm0, %v4271_v22 }
 0x615   : > { %4302 = vst.msk [vmem:[%s7467_s13 + $0xa0] sm:$0xff] %vm225_vm0, %v4270_v44 }
 0x627   : > { %v4627_v13 = vpop.f32.mrb[22].mxu1 }
 0x628   : > { %v4175_v32 = vadd.f32 %v4627_v13, %v7452_v25  ;;  %v4169_v63 = vpop.f32.mrb[23].mxu1 }
 0x629   : > { %v4170_v17 = vadd.f32 %v7452_v25, %v4169_v63 }
 0x62a   : > { %v4273_v54 = vadd.f32 %v4241_v31, %v4175_v32 }
 0x62b   : > { %v4272_v59 = vadd.f32 %v4240_v50, %v4170_v17 }
 0x62c   : > { %4305 = vst.msk [vmem:[%s7467_s13 + $0xb8] sm:$0xff] %vm225_vm0, %v4273_v54 }
 0x62d   : > { %4304 = vst.msk [vmem:[%s7467_s13 + $0xb0] sm:$0xff] %vm225_vm0, %v4272_v59 }
 0x63f   : > { %v4630_v7 = vpop.f32.mrb[24].mxu1 }
 0x640   : > { %v4185_v18 = vadd.f32 %v4630_v7, %v7452_v25  ;;  %v4179_v16 = vpop.f32.mrb[25].mxu1 }
 0x641   : > { %v4180_v53 = vadd.f32 %v7452_v25, %v4179_v16 }
 0x642   : > { %v4275_v0 = vadd.f32 %v4243_v6, %v4185_v18 }
 0x643   : > { %v4274_v20 = vadd.f32 %v4242_v10, %v4180_v53 }
 0x644   : > { %4307 = vst.msk [vmem:[%s7467_s13 + $0xc8] sm:$0xff] %vm225_vm0, %v4275_v0 }
 0x645   : > { %4306 = vst.msk [vmem:[%s7467_s13 + $0xc0] sm:$0xff] %vm225_vm0, %v4274_v20 }
 0x657   : > { %v4633_v8 = vpop.f32.mrb[26].mxu1 }
 0x658   : > { %v4195_v24 = vadd.f32 %v4633_v8, %v7452_v25  ;;  %v4189_v57 = vpop.f32.mrb[27].mxu1 }
 0x659   : > { %v4190_v42 = vadd.f32 %v7452_v25, %v4189_v57 }
 0x65a   : > { %v4277_v28 = vadd.f32 %v4245_v49, %v4195_v24 }
 0x65b   : > { %v4276_v36 = vadd.f32 %v4244_v15, %v4190_v42 }
 0x65c   : > { %4309 = vst.msk [vmem:[%s7467_s13 + $0xd8] sm:$0xff] %vm225_vm0, %v4277_v28 }
 0x65d   : > { %4308 = vst.msk [vmem:[%s7467_s13 + $0xd0] sm:$0xff] %vm225_vm0, %v4276_v36 }
 0x66f   : > { %v4636_v9 = vpop.f32.mrb[28].mxu1 }
 0x670   : > { %v4205_v34 = vadd.f32 %v4636_v9, %v7452_v25  ;;  %v4199_v41 = vpop.f32.mrb[29].mxu1 }
 0x671   : > { %v4200_v62 = vadd.f32 %v7452_v25, %v4199_v41 }
 0x672   : > { %v4279_v43 = vadd.f32 %v4247_v37, %v4205_v34 }
 0x673   : > { %v4278_v23 = vadd.f32 %v4246_v52, %v4200_v62 }
 0x674   : > { %4311 = vst.msk [vmem:[%s7467_s13 + $0xe8] sm:$0xff] %vm225_vm0, %v4279_v43 }
 0x675   : > { %4310 = vst.msk [vmem:[%s7467_s13 + $0xe0] sm:$0xff] %vm225_vm0, %v4278_v23 }
 0x67c   : > { %v4639_v46 = vpop.f32.mrb[30].mxu1 }
 0x67d   : > { %v4215_v58 = vadd.f32 %v4639_v46, %v7452_v25  ;;  %v4209_v5 = vpop.f32.mrb[31].mxu1 }
 0x67e   : > { %v4210_v48 = vadd.f32 %v7452_v25, %v4209_v5 }
 0x67f   : > { %v4281_v55 = vadd.f32 %v4249_v47, %v4215_v58 }
 0x680   : > { %v4280_v26 = vadd.f32 %v4248_v11, %v4210_v48 }
 0x681   : > { %4313 = vst.msk [vmem:[%s7467_s13 + $0xf8] sm:$0xff] %vm225_vm0, %v4281_v55 }
 0x682   : > { %4312 = vst.msk [vmem:[%s7467_s13 + $0xf0] sm:$0xff] %vm225_vm0, %v4280_v26 }
 0x683 PF: > { %s15_s18 = sadd.s32 1, %s4716_s18  }
 0x684   : > { %p12_p4 = scmp.ge.s32.totalorder %s15_s18, 4  }
 0x686   :  { %14 = sbr.rel (!%p12_p4) target bundleno = 1 (0x1), region = 73 }

</bundles_post_ra>
